<compile_context>
chip_gen: v7x
topology: tpu7x:2x2x1
jax: 0.10.0
libtpu: 0.0.40
codegen_flags: <defaults>
</compile_context>

<pallas_src>
import functools

import jax
import jax.numpy as jnp
from jax.experimental import pallas as pl
from jax.experimental.pallas import tpu as pltpu


OUT_ROWS = 8  # fused output slab: row 0 = alpha, rows 1..3 = rgb, rest = padding


# ---------------------------------------------------------------------------
# Pallas kernel: encoding + full NeRF MLP (block1, block2, alpha head, block3)
# ---------------------------------------------------------------------------
def nerf_mlp_kernel(
    pos_ref, dir_ref,
    w1_ref, w2_ref, w3_ref, w4_ref, w5_ref, w6_ref, w7_ref, w8_ref,
    b1_ref, b2_ref, b3_ref, b4_ref, b5_ref, b6_ref, b7_ref, b8_ref,
    out_ref,
    *, points_per_ray, pos_freqs, dir_freqs, compute_dtype,
):
    cd = lambda x: x.astype(compute_dtype)

    def encode(x, num_freqs):
        # Standard NeRF encoding [x, sin(2^i x), cos(2^i x)], features on sublanes.
        # f32 math on VPU/EUP (both have slack in this kernel).
        feats = [x]
        for i in range(num_freqs):
            freq = 2.0 ** i
            feats.append(jnp.sin(freq * x))
            feats.append(jnp.cos(freq * x))
        return jnp.concatenate(feats, axis=0)

    def lin(w_ref, x_bf16, b_ref):
        # bf16 operands, f32 accumulation; bias add in f32.
        return jnp.dot(w_ref[...], x_bf16,
                       preferred_element_type=jnp.float32) + b_ref[...]

    def lin_relu(w_ref, x_bf16, b_ref):
        # ReLU in f32, then a single cast; only the bf16 tensor stays live.
        return cd(jnp.maximum(lin(w_ref, x_bf16, b_ref), 0.0))

    # In-kernel positional encodings (inputs streamed as raw f32 coordinates).
    pos_enc = cd(encode(pos_ref[...], pos_freqs))                 # (Dp, TILE)
    dir_enc = cd(encode(dir_ref[...], dir_freqs))                 # (Dd, tile_rays)
    # Point-major column order -> per-point direction columns are a plain lane
    # broadcast of the per-ray block (whole-vreg copies, no expand matmul).
    dirs = jnp.concatenate([dir_enc] * points_per_ray, axis=1)    # (Dd, TILE)

    # block1: Linear + ReLU, x3
    h = lin_relu(w1_ref, pos_enc, b1_ref)
    h = lin_relu(w2_ref, h, b2_ref)
    feat1 = lin_relu(w3_ref, h, b3_ref)

    # block2: single fused dot on concat(feat1, pos_enc) (sublane concat, aligned)
    h = lin_relu(w4_ref, jnp.concatenate([feat1, pos_enc], axis=0), b4_ref)
    h = lin_relu(w5_ref, h, b5_ref)
    feat2 = lin_relu(w6_ref, h, b6_ref)

    # block3 layer 1 on concat(feat2, dirs); the alpha head (Linear(H,1)+ReLU)
    # is folded in as the last output row of w7_ref.
    he = lin_relu(w7_ref, jnp.concatenate([feat2, dirs], axis=0), b7_ref)  # (H+1, TILE)

    # Fused final layer: row 0 picks alpha (identity row), rows 1..3 = rgb
    # pre-activation, rows 4..7 = zero padding for sublane-aligned stores.
    pre = lin(w8_ref, he, b8_ref)                                 # (OUT_ROWS, TILE) f32
    row = jax.lax.broadcasted_iota(jnp.int32, pre.shape, 0)
    out = jnp.where(row == 0, pre, jax.nn.sigmoid(pre))           # alpha | sigmoid(rgb)
    out_ref[...] = out.astype(out_ref.dtype)


def nerf_mlp_pallas(pos_t, dir_t, params, *, points_per_ray, tile_rays,
                    pos_freqs, dir_freqs, compute_dtype=jnp.bfloat16,
                    vmem_limit_bytes=48 * 1024 * 1024):
    """pos_t: (3, NR*P) raw xyz, point-major inside each ray tile;
    dir_t: (3, NR) raw directions.  Returns (OUT_ROWS, NR*P):
    row 0 = alpha, rows 1..3 = rgb (same column order as pos_t)."""
    f32 = jnp.float32
    _, NP = pos_t.shape
    _, NR = dir_t.shape
    P = points_per_ray
    assert NP == NR * P and NR % tile_rays == 0
    TILE = tile_rays * P
    H = params["w1"].shape[0]
    Dp = params["w1"].shape[1]
    Dd = params["w7"].shape[1] - H
    assert Dp == 3 + 6 * pos_freqs and Dd == 3 + 6 * dir_freqs

    # Fold the alpha head (Linear+ReLU) into block3's first Linear+ReLU.
    w7e = jnp.concatenate(
        [params["w7"],
         jnp.concatenate([params["wa"], jnp.zeros((1, Dd), f32)], axis=1)],
        axis=0)                                                   # (H+1, H+Dd)
    b7e = jnp.concatenate([params["b7"], params["ba"]], axis=0)   # (H+1, 1)

    # Fused final layer: row 0 selects the alpha row of `he`, rows 1..3 = w8,
    # rows 4..7 = zero padding (sublane-aligned output slab).
    pick_alpha = jnp.concatenate([jnp.zeros((1, H), f32), jnp.ones((1, 1), f32)], axis=1)
    rgb_rows = jnp.concatenate([params["w8"], jnp.zeros((3, 1), f32)], axis=1)
    w8e = jnp.concatenate(
        [pick_alpha, rgb_rows, jnp.zeros((OUT_ROWS - 4, H + 1), f32)], axis=0)  # (8, H+1)
    b8e = jnp.concatenate(
        [jnp.zeros((1, 1), f32), params["b8"], jnp.zeros((OUT_ROWS - 4, 1), f32)],
        axis=0)                                                   # (8, 1)

    cd = lambda a: a.astype(compute_dtype)
    weights = [cd(w) for w in (params["w1"], params["w2"], params["w3"],
                               params["w4"], params["w5"], params["w6"],
                               w7e, w8e)]
    biases = [params["b1"], params["b2"], params["b3"], params["b4"],
              params["b5"], params["b6"], b7e, b8e]               # f32

    col_block = lambda rows, width: pl.BlockSpec((rows, width), lambda i: (0, i))
    const_block = lambda a: pl.BlockSpec(a.shape, lambda i: (0, 0))

    in_specs = ([col_block(3, TILE), col_block(3, tile_rays)]
                + [const_block(w) for w in weights]
                + [const_block(b) for b in biases])
    out_spec = col_block(OUT_ROWS, TILE)

    kernel = functools.partial(
        nerf_mlp_kernel, points_per_ray=P, pos_freqs=pos_freqs,
        dir_freqs=dir_freqs, compute_dtype=compute_dtype)

    out = pl.pallas_call(
        kernel,
        out_shape=jax.ShapeDtypeStruct((OUT_ROWS, NP), f32),
        grid_spec=pltpu.PrefetchScalarGridSpec(
            num_scalar_prefetch=0,
            grid=(NR // tile_rays,),
            in_specs=in_specs,
            out_specs=out_spec),
        compiler_params=pltpu.CompilerParams(
            dimension_semantics=("parallel",),
            # <= 48 MiB: fits v7x's 64 MiB physical VMEM with headroom, and is a
            # raise over the v5e/v6e scoped defaults.  Per-tile working set at
            # H=32, TILE=1024 is well under 1 MiB, so this is never the limiter.
            vmem_limit_bytes=vmem_limit_bytes),
    )(pos_t.astype(f32), dir_t.astype(f32), *weights, *biases)
    return out


# ---------------------------------------------------------------------------
# Plain-JAX glue: ray points, positional encodings, parameter init
# ---------------------------------------------------------------------------
def ray_bundle_to_ray_points(origins, directions, lengths):
    # origins/directions: (B, R, 3), lengths: (B, R, P) -> points: (B, R, P, 3)
    return origins[..., None, :] + lengths[..., :, None] * directions[..., None, :]


def positional_encoding(x, num_freqs):
    # standard NeRF encoding: [x, sin(2^i x), cos(2^i x)] -> dim = 3 + 2*3*num_freqs
    feats = [x]
    for i in range(num_freqs):
        freq = 2.0 ** i
        feats.append(jnp.sin(freq * x))
        feats.append(jnp.cos(freq * x))
    return jnp.concatenate(feats, axis=-1)


def init_params(key, dp, dd, hidden):
    # Weights stored as (out, in) (nn.Linear layout), biases as (out, 1).
    def linear(k, fan_in, fan_out):
        kw, kb = jax.random.split(k)
        bound = 1.0 / jnp.sqrt(jnp.float32(fan_in))
        w = jax.random.uniform(kw, (fan_out, fan_in), jnp.float32, -bound, bound)
        b = jax.random.uniform(kb, (fan_out, 1), jnp.float32, -bound, bound)
        return w, b

    ks = jax.random.split(key, 9)
    p = {}
    p["w1"], p["b1"] = linear(ks[0], dp, hidden)
    p["w2"], p["b2"] = linear(ks[1], hidden, hidden)
    p["w3"], p["b3"] = linear(ks[2], hidden, hidden)
    p["w4"], p["b4"] = linear(ks[3], hidden + dp, hidden)   # input = concat(feat1, pos)
    p["w5"], p["b5"] = linear(ks[4], hidden, hidden)
    p["w6"], p["b6"] = linear(ks[5], hidden, hidden)
    p["wa"], p["ba"] = linear(ks[6], hidden, 1)             # alpha head
    p["w7"], p["b7"] = linear(ks[7], hidden + dd, hidden)   # input = concat(feat2, dir)
    p["w8"], p["b8"] = linear(ks[8], hidden, 3)
    return p


def nerf_forward(origins, directions, lengths, params,
                 emb_pos_freqs, emb_dir_freqs, *, tile_rays=128):
    B, R, P = lengths.shape
    points = ray_bundle_to_ray_points(origins, directions, lengths)      # (B,R,P,3)
    NR = B * R
    pts = points.reshape(NR, P, 3)
    dirs = directions.reshape(NR, 3)

    if NR <= tile_rays:
        tr = NR                     # single tile: block == full array, no alignment needed
    else:
        assert tile_rays % 128 == 0  # multi-tile: keep lane alignment of the blocks
        tr = tile_rays
    NR_pad = ((NR + tr - 1) // tr) * tr
    if NR_pad != NR:
        pts = jnp.pad(pts, ((0, NR_pad - NR), (0, 0), (0, 0)))
        dirs = jnp.pad(dirs, ((0, NR_pad - NR), (0, 0)))
    n_tiles = NR_pad // tr

    # Point-major column order inside each tile (column = p*tr + r), so the
    # kernel broadcasts per-ray directions to per-point columns by lane tiling.
    pos_t = pts.reshape(n_tiles, tr, P, 3).transpose(3, 0, 2, 1).reshape(3, NR_pad * P)
    dir_t = dirs.reshape(n_tiles, tr, 3).transpose(2, 0, 1).reshape(3, NR_pad)

    out = nerf_mlp_pallas(pos_t, dir_t, params, points_per_ray=P, tile_rays=tr,
                          pos_freqs=emb_pos_freqs, dir_freqs=emb_dir_freqs)  # (8, NR_pad*P)

    out = (out.reshape(OUT_ROWS, n_tiles, P, tr)
              .transpose(1, 3, 2, 0)
              .reshape(NR_pad, P, OUT_ROWS))[:NR].reshape(B, R, P, OUT_ROWS)
    alpha = out[..., 0:1]
    rgb = out[..., 1:4]
    return alpha, rgb


def nerf_forward_reference(origins, directions, lengths, params,
                           emb_pos_freqs, emb_dir_freqs):
    """Pure-JAX f32 reference matching the PyTorch module forward."""
    points = ray_bundle_to_ray_points(origins, directions, lengths)
    pos = positional_encoding(points, emb_pos_freqs)
    dir_emb = positional_encoding(directions, emb_dir_freqs)
    B, R, P = lengths.shape
    dir_exp = jnp.broadcast_to(dir_emb[:, :, None, :],
                               (B, R, P, dir_emb.shape[-1]))
    relu = lambda x: jnp.maximum(x, 0.0)
    lin = lambda x, w, b: x @ w.T + b[:, 0]
    p = params
    h = relu(lin(pos, p["w1"], p["b1"]))
    h = relu(lin(h, p["w2"], p["b2"]))
    feat1 = relu(lin(h, p["w3"], p["b3"]))
    h = relu(lin(jnp.concatenate([feat1, pos], axis=-1), p["w4"], p["b4"]))
    h = relu(lin(h, p["w5"], p["b5"]))
    feat2 = relu(lin(h, p["w6"], p["b6"]))
    alpha = relu(lin(feat2, p["wa"], p["ba"]))
    h = relu(lin(jnp.concatenate([feat2, dir_exp], axis=-1), p["w7"], p["b7"]))
    rgb = jax.nn.sigmoid(lin(h, p["w8"], p["b8"]))
    return alpha, rgb


if __name__ == "__main__":
    # Small shapes: 2 cameras, 256 rays each, 8 sample points per ray
    # -> 4096 points, 4 grid tiles of 1024 lane-dense columns each
    # (>= 2 steps per TensorCore on v7x so the software pipeline overlaps).
    B, R, P = 2, 256, 8
    embedding_dim_pos = 4      # Dp = 3 + 2*3*4 = 27
    embedding_dim_dir = 2      # Dd = 3 + 2*3*2 = 15
    hidden_dim = 32

    Dp = 3 + 2 * 3 * embedding_dim_pos
    Dd = 3 + 2 * 3 * embedding_dim_dir

    key = jax.random.PRNGKey(0)
    k_o, k_d, k_l, k_p = jax.random.split(key, 4)
    origins = jax.random.normal(k_o, (B, R, 3), jnp.float32)
    directions = jax.random.normal(k_d, (B, R, 3), jnp.float32)
    directions = directions / jnp.linalg.norm(directions, axis=-1, keepdims=True)
    lengths = jnp.cumsum(
        jax.random.uniform(k_l, (B, R, P), jnp.float32, 0.1, 0.5), axis=-1)

    params = init_params(k_p, Dp, Dd, hidden_dim)

    alpha, rgb = nerf_forward(origins, directions, lengths, params,
                              embedding_dim_pos, embedding_dim_dir, tile_rays=128)
    jax.block_until_ready((alpha, rgb))

    alpha_ref, rgb_ref = nerf_forward_reference(
        origins, directions, lengths, params,
        embedding_dim_pos, embedding_dim_dir)

    assert alpha.shape == (B, R, P, 1) and rgb.shape == (B, R, P, 3)
    # bf16 matmul operands in the kernel vs. f32 reference -> relaxed tolerance.
    assert jnp.allclose(alpha, alpha_ref, atol=5e-2, rtol=5e-2), \
        float(jnp.max(jnp.abs(alpha - alpha_ref)))
    assert jnp.allclose(rgb, rgb_ref, atol=5e-2, rtol=5e-2), \
        float(jnp.max(jnp.abs(rgb - rgb_ref)))
    print("KERNEL_OK")
</pallas_src>

<mosaic_0001>
module attributes {stable_mosaic.version = 11 : i64} {
  func.func @nerf_mlp_kernel(%arg0: i32, %arg1: memref<3x1024xf32, #tpu.memory_space<vmem>>, %arg2: memref<3x128xf32, #tpu.memory_space<vmem>>, %arg3: memref<32x27xbf16, #tpu.memory_space<vmem>>, %arg4: memref<32x32xbf16, #tpu.memory_space<vmem>>, %arg5: memref<32x32xbf16, #tpu.memory_space<vmem>>, %arg6: memref<32x59xbf16, #tpu.memory_space<vmem>>, %arg7: memref<32x32xbf16, #tpu.memory_space<vmem>>, %arg8: memref<32x32xbf16, #tpu.memory_space<vmem>>, %arg9: memref<33x47xbf16, #tpu.memory_space<vmem>>, %arg10: memref<8x33xbf16, #tpu.memory_space<vmem>>, %arg11: memref<32x1xf32, #tpu.memory_space<vmem>>, %arg12: memref<32x1xf32, #tpu.memory_space<vmem>>, %arg13: memref<32x1xf32, #tpu.memory_space<vmem>>, %arg14: memref<32x1xf32, #tpu.memory_space<vmem>>, %arg15: memref<32x1xf32, #tpu.memory_space<vmem>>, %arg16: memref<32x1xf32, #tpu.memory_space<vmem>>, %arg17: memref<33x1xf32, #tpu.memory_space<vmem>>, %arg18: memref<8x1xf32, #tpu.memory_space<vmem>>, %arg19: memref<8x1024xf32, #tpu.memory_space<vmem>>) attributes {dimension_semantics = [#tpu.dimension_semantics<parallel>], iteration_bounds = array<i64: 4>, scalar_prefetch = 0 : i64, scratch_operands = 0 : i64, tpu.core_type = #tpu.core_type<tc>, window_params = [{transform_indices = @transform_0, window_bounds = array<i64: 3, 1024>}, {transform_indices = @transform_1, window_bounds = array<i64: 3, 128>}, {pipeline_mode = #tpu.pipeline_mode<synchronous>, transform_indices = @transform_2, window_bounds = array<i64: 32, 27>}, {pipeline_mode = #tpu.pipeline_mode<synchronous>, transform_indices = @transform_3, window_bounds = array<i64: 32, 32>}, {pipeline_mode = #tpu.pipeline_mode<synchronous>, transform_indices = @transform_4, window_bounds = array<i64: 32, 32>}, {pipeline_mode = #tpu.pipeline_mode<synchronous>, transform_indices = @transform_5, window_bounds = array<i64: 32, 59>}, {pipeline_mode = #tpu.pipeline_mode<synchronous>, transform_indices = @transform_6, window_bounds = array<i64: 32, 32>}, {pipeline_mode = #tpu.pipeline_mode<synchronous>, transform_indices = @transform_7, window_bounds = array<i64: 32, 32>}, {pipeline_mode = #tpu.pipeline_mode<synchronous>, transform_indices = @transform_8, window_bounds = array<i64: 33, 47>}, {pipeline_mode = #tpu.pipeline_mode<synchronous>, transform_indices = @transform_9, window_bounds = array<i64: 8, 33>}, {pipeline_mode = #tpu.pipeline_mode<synchronous>, transform_indices = @transform_10, window_bounds = array<i64: 32, 1>}, {pipeline_mode = #tpu.pipeline_mode<synchronous>, transform_indices = @transform_11, window_bounds = array<i64: 32, 1>}, {pipeline_mode = #tpu.pipeline_mode<synchronous>, transform_indices = @transform_12, window_bounds = array<i64: 32, 1>}, {pipeline_mode = #tpu.pipeline_mode<synchronous>, transform_indices = @transform_13, window_bounds = array<i64: 32, 1>}, {pipeline_mode = #tpu.pipeline_mode<synchronous>, transform_indices = @transform_14, window_bounds = array<i64: 32, 1>}, {pipeline_mode = #tpu.pipeline_mode<synchronous>, transform_indices = @transform_15, window_bounds = array<i64: 32, 1>}, {pipeline_mode = #tpu.pipeline_mode<synchronous>, transform_indices = @transform_16, window_bounds = array<i64: 33, 1>}, {pipeline_mode = #tpu.pipeline_mode<synchronous>, transform_indices = @transform_17, window_bounds = array<i64: 8, 1>}, {transform_indices = @transform_18, window_bounds = array<i64: 8, 1024>}]} {
    %c0 = arith.constant 0 : index
    %c0_0 = arith.constant 0 : index
    %0 = vector.load %arg1[%c0, %c0_0] : memref<3x1024xf32, #tpu.memory_space<vmem>>, vector<3x1024xf32>
    %cst = arith.constant 1.000000e+00 : f32
    %1 = vector.broadcast %cst : f32 to vector<3x1024xf32>
    %2 = arith.mulf %1, %0 : vector<3x1024xf32>
    %3 = math.sin %2 : vector<3x1024xf32>
    %cst_1 = arith.constant 1.000000e+00 : f32
    %4 = vector.broadcast %cst_1 : f32 to vector<3x1024xf32>
    %5 = arith.mulf %4, %0 : vector<3x1024xf32>
    %6 = math.cos %5 : vector<3x1024xf32>
    %cst_2 = arith.constant 2.000000e+00 : f32
    %7 = vector.broadcast %cst_2 : f32 to vector<3x1024xf32>
    %8 = arith.mulf %7, %0 : vector<3x1024xf32>
    %9 = math.sin %8 : vector<3x1024xf32>
    %cst_3 = arith.constant 2.000000e+00 : f32
    %10 = vector.broadcast %cst_3 : f32 to vector<3x1024xf32>
    %11 = arith.mulf %10, %0 : vector<3x1024xf32>
    %12 = math.cos %11 : vector<3x1024xf32>
    %cst_4 = arith.constant 4.000000e+00 : f32
    %13 = vector.broadcast %cst_4 : f32 to vector<3x1024xf32>
    %14 = arith.mulf %13, %0 : vector<3x1024xf32>
    %15 = math.sin %14 : vector<3x1024xf32>
    %cst_5 = arith.constant 4.000000e+00 : f32
    %16 = vector.broadcast %cst_5 : f32 to vector<3x1024xf32>
    %17 = arith.mulf %16, %0 : vector<3x1024xf32>
    %18 = math.cos %17 : vector<3x1024xf32>
    %cst_6 = arith.constant 8.000000e+00 : f32
    %19 = vector.broadcast %cst_6 : f32 to vector<3x1024xf32>
    %20 = arith.mulf %19, %0 : vector<3x1024xf32>
    %21 = math.sin %20 : vector<3x1024xf32>
    %cst_7 = arith.constant 8.000000e+00 : f32
    %22 = vector.broadcast %cst_7 : f32 to vector<3x1024xf32>
    %23 = arith.mulf %22, %0 : vector<3x1024xf32>
    %24 = math.cos %23 : vector<3x1024xf32>
    %25 = tpu.concatenate %0, %3, %6, %9, %12, %15, %18, %21, %24 in 0 : vector<3x1024xf32>, vector<3x1024xf32>, vector<3x1024xf32>, vector<3x1024xf32>, vector<3x1024xf32>, vector<3x1024xf32>, vector<3x1024xf32>, vector<3x1024xf32>, vector<3x1024xf32> -> vector<27x1024xf32>
    %26 = arith.truncf %25 : vector<27x1024xf32> to vector<27x1024xbf16>
    %c0_8 = arith.constant 0 : index
    %c0_9 = arith.constant 0 : index
    %27 = vector.load %arg2[%c0_8, %c0_9] : memref<3x128xf32, #tpu.memory_space<vmem>>, vector<3x128xf32>
    %cst_10 = arith.constant 1.000000e+00 : f32
    %28 = vector.broadcast %cst_10 : f32 to vector<3x128xf32>
    %29 = arith.mulf %28, %27 : vector<3x128xf32>
    %30 = math.sin %29 : vector<3x128xf32>
    %cst_11 = arith.constant 1.000000e+00 : f32
    %31 = vector.broadcast %cst_11 : f32 to vector<3x128xf32>
    %32 = arith.mulf %31, %27 : vector<3x128xf32>
    %33 = math.cos %32 : vector<3x128xf32>
    %cst_12 = arith.constant 2.000000e+00 : f32
    %34 = vector.broadcast %cst_12 : f32 to vector<3x128xf32>
    %35 = arith.mulf %34, %27 : vector<3x128xf32>
    %36 = math.sin %35 : vector<3x128xf32>
    %cst_13 = arith.constant 2.000000e+00 : f32
    %37 = vector.broadcast %cst_13 : f32 to vector<3x128xf32>
    %38 = arith.mulf %37, %27 : vector<3x128xf32>
    %39 = math.cos %38 : vector<3x128xf32>
    %40 = tpu.concatenate %27, %30, %33, %36, %39 in 0 : vector<3x128xf32>, vector<3x128xf32>, vector<3x128xf32>, vector<3x128xf32>, vector<3x128xf32> -> vector<15x128xf32>
    %41 = arith.truncf %40 : vector<15x128xf32> to vector<15x128xbf16>
    %42 = tpu.concatenate %41, %41, %41, %41, %41, %41, %41, %41 in 1 : vector<15x128xbf16>, vector<15x128xbf16>, vector<15x128xbf16>, vector<15x128xbf16>, vector<15x128xbf16>, vector<15x128xbf16>, vector<15x128xbf16>, vector<15x128xbf16> -> vector<15x1024xbf16>
    %c0_14 = arith.constant 0 : index
    %c0_15 = arith.constant 0 : index
    %43 = vector.load %arg3[%c0_14, %c0_15] : memref<32x27xbf16, #tpu.memory_space<vmem>>, vector<32x27xbf16>
    %cst_16 = arith.constant dense<0.000000e+00> : vector<32x1024xf32>
    %44 = tpu.matmul %43, %26, %cst_16 {dimension_numbers = #tpu.dot_dimension_numbers<[1], [0], [0], [1], [0, 0, 1, 1], [], []>} : vector<32x27xbf16>, vector<27x1024xbf16>, vector<32x1024xf32> -> vector<32x1024xf32>
    %c0_17 = arith.constant 0 : index
    %c0_18 = arith.constant 0 : index
    %45 = vector.load %arg11[%c0_17, %c0_18] : memref<32x1xf32, #tpu.memory_space<vmem>>, vector<32x1xf32>
    %46 = vector.broadcast %45 : vector<32x1xf32> to vector<32x1024xf32>
    %47 = arith.addf %44, %46 : vector<32x1024xf32>
    %cst_19 = arith.constant 0.000000e+00 : f32
    %48 = vector.broadcast %cst_19 : f32 to vector<32x1024xf32>
    %49 = arith.maximumf %47, %48 : vector<32x1024xf32>
    %50 = arith.truncf %49 : vector<32x1024xf32> to vector<32x1024xbf16>
    %c0_20 = arith.constant 0 : index
    %c0_21 = arith.constant 0 : index
    %51 = vector.load %arg4[%c0_20, %c0_21] : memref<32x32xbf16, #tpu.memory_space<vmem>>, vector<32x32xbf16>
    %cst_22 = arith.constant dense<0.000000e+00> : vector<32x1024xf32>
    %52 = tpu.matmul %51, %50, %cst_22 {dimension_numbers = #tpu.dot_dimension_numbers<[1], [0], [0], [1], [0, 0, 1, 1], [], []>} : vector<32x32xbf16>, vector<32x1024xbf16>, vector<32x1024xf32> -> vector<32x1024xf32>
    %c0_23 = arith.constant 0 : index
    %c0_24 = arith.constant 0 : index
    %53 = vector.load %arg12[%c0_23, %c0_24] : memref<32x1xf32, #tpu.memory_space<vmem>>, vector<32x1xf32>
    %54 = vector.broadcast %53 : vector<32x1xf32> to vector<32x1024xf32>
    %55 = arith.addf %52, %54 : vector<32x1024xf32>
    %cst_25 = arith.constant 0.000000e+00 : f32
    %56 = vector.broadcast %cst_25 : f32 to vector<32x1024xf32>
    %57 = arith.maximumf %55, %56 : vector<32x1024xf32>
    %58 = arith.truncf %57 : vector<32x1024xf32> to vector<32x1024xbf16>
    %c0_26 = arith.constant 0 : index
    %c0_27 = arith.constant 0 : index
    %59 = vector.load %arg5[%c0_26, %c0_27] : memref<32x32xbf16, #tpu.memory_space<vmem>>, vector<32x32xbf16>
    %cst_28 = arith.constant dense<0.000000e+00> : vector<32x1024xf32>
    %60 = tpu.matmul %59, %58, %cst_28 {dimension_numbers = #tpu.dot_dimension_numbers<[1], [0], [0], [1], [0, 0, 1, 1], [], []>} : vector<32x32xbf16>, vector<32x1024xbf16>, vector<32x1024xf32> -> vector<32x1024xf32>
    %c0_29 = arith.constant 0 : index
    %c0_30 = arith.constant 0 : index
    %61 = vector.load %arg13[%c0_29, %c0_30] : memref<32x1xf32, #tpu.memory_space<vmem>>, vector<32x1xf32>
    %62 = vector.broadcast %61 : vector<32x1xf32> to vector<32x1024xf32>
    %63 = arith.addf %60, %62 : vector<32x1024xf32>
    %cst_31 = arith.constant 0.000000e+00 : f32
    %64 = vector.broadcast %cst_31 : f32 to vector<32x1024xf32>
    %65 = arith.maximumf %63, %64 : vector<32x1024xf32>
    %66 = arith.truncf %65 : vector<32x1024xf32> to vector<32x1024xbf16>
    %67 = tpu.concatenate %66, %26 in 0 : vector<32x1024xbf16>, vector<27x1024xbf16> -> vector<59x1024xbf16>
    %c0_32 = arith.constant 0 : index
    %c0_33 = arith.constant 0 : index
    %68 = vector.load %arg6[%c0_32, %c0_33] : memref<32x59xbf16, #tpu.memory_space<vmem>>, vector<32x59xbf16>
    %cst_34 = arith.constant dense<0.000000e+00> : vector<32x1024xf32>
    %69 = tpu.matmul %68, %67, %cst_34 {dimension_numbers = #tpu.dot_dimension_numbers<[1], [0], [0], [1], [0, 0, 1, 1], [], []>} : vector<32x59xbf16>, vector<59x1024xbf16>, vector<32x1024xf32> -> vector<32x1024xf32>
    %c0_35 = arith.constant 0 : index
    %c0_36 = arith.constant 0 : index
    %70 = vector.load %arg14[%c0_35, %c0_36] : memref<32x1xf32, #tpu.memory_space<vmem>>, vector<32x1xf32>
    %71 = vector.broadcast %70 : vector<32x1xf32> to vector<32x1024xf32>
    %72 = arith.addf %69, %71 : vector<32x1024xf32>
    %cst_37 = arith.constant 0.000000e+00 : f32
    %73 = vector.broadcast %cst_37 : f32 to vector<32x1024xf32>
    %74 = arith.maximumf %72, %73 : vector<32x1024xf32>
    %75 = arith.truncf %74 : vector<32x1024xf32> to vector<32x1024xbf16>
    %c0_38 = arith.constant 0 : index
    %c0_39 = arith.constant 0 : index
    %76 = vector.load %arg7[%c0_38, %c0_39] : memref<32x32xbf16, #tpu.memory_space<vmem>>, vector<32x32xbf16>
    %cst_40 = arith.constant dense<0.000000e+00> : vector<32x1024xf32>
    %77 = tpu.matmul %76, %75, %cst_40 {dimension_numbers = #tpu.dot_dimension_numbers<[1], [0], [0], [1], [0, 0, 1, 1], [], []>} : vector<32x32xbf16>, vector<32x1024xbf16>, vector<32x1024xf32> -> vector<32x1024xf32>
    %c0_41 = arith.constant 0 : index
    %c0_42 = arith.constant 0 : index
    %78 = vector.load %arg15[%c0_41, %c0_42] : memref<32x1xf32, #tpu.memory_space<vmem>>, vector<32x1xf32>
    %79 = vector.broadcast %78 : vector<32x1xf32> to vector<32x1024xf32>
    %80 = arith.addf %77, %79 : vector<32x1024xf32>
    %cst_43 = arith.constant 0.000000e+00 : f32
    %81 = vector.broadcast %cst_43 : f32 to vector<32x1024xf32>
    %82 = arith.maximumf %80, %81 : vector<32x1024xf32>
    %83 = arith.truncf %82 : vector<32x1024xf32> to vector<32x1024xbf16>
    %c0_44 = arith.constant 0 : index
    %c0_45 = arith.constant 0 : index
    %84 = vector.load %arg8[%c0_44, %c0_45] : memref<32x32xbf16, #tpu.memory_space<vmem>>, vector<32x32xbf16>
    %cst_46 = arith.constant dense<0.000000e+00> : vector<32x1024xf32>
    %85 = tpu.matmul %84, %83, %cst_46 {dimension_numbers = #tpu.dot_dimension_numbers<[1], [0], [0], [1], [0, 0, 1, 1], [], []>} : vector<32x32xbf16>, vector<32x1024xbf16>, vector<32x1024xf32> -> vector<32x1024xf32>
    %c0_47 = arith.constant 0 : index
    %c0_48 = arith.constant 0 : index
    %86 = vector.load %arg16[%c0_47, %c0_48] : memref<32x1xf32, #tpu.memory_space<vmem>>, vector<32x1xf32>
    %87 = vector.broadcast %86 : vector<32x1xf32> to vector<32x1024xf32>
    %88 = arith.addf %85, %87 : vector<32x1024xf32>
    %cst_49 = arith.constant 0.000000e+00 : f32
    %89 = vector.broadcast %cst_49 : f32 to vector<32x1024xf32>
    %90 = arith.maximumf %88, %89 : vector<32x1024xf32>
    %91 = arith.truncf %90 : vector<32x1024xf32> to vector<32x1024xbf16>
    %92 = tpu.concatenate %91, %42 in 0 : vector<32x1024xbf16>, vector<15x1024xbf16> -> vector<47x1024xbf16>
    %c0_50 = arith.constant 0 : index
    %c0_51 = arith.constant 0 : index
    %93 = vector.load %arg9[%c0_50, %c0_51] : memref<33x47xbf16, #tpu.memory_space<vmem>>, vector<33x47xbf16>
    %cst_52 = arith.constant dense<0.000000e+00> : vector<33x1024xf32>
    %94 = tpu.matmul %93, %92, %cst_52 {dimension_numbers = #tpu.dot_dimension_numbers<[1], [0], [0], [1], [0, 0, 1, 1], [], []>} : vector<33x47xbf16>, vector<47x1024xbf16>, vector<33x1024xf32> -> vector<33x1024xf32>
    %c0_53 = arith.constant 0 : index
    %c0_54 = arith.constant 0 : index
    %95 = vector.load %arg17[%c0_53, %c0_54] : memref<33x1xf32, #tpu.memory_space<vmem>>, vector<33x1xf32>
    %96 = vector.broadcast %95 : vector<33x1xf32> to vector<33x1024xf32>
    %97 = arith.addf %94, %96 : vector<33x1024xf32>
    %cst_55 = arith.constant 0.000000e+00 : f32
    %98 = vector.broadcast %cst_55 : f32 to vector<33x1024xf32>
    %99 = arith.maximumf %97, %98 : vector<33x1024xf32>
    %100 = arith.truncf %99 : vector<33x1024xf32> to vector<33x1024xbf16>
    %c0_56 = arith.constant 0 : index
    %c0_57 = arith.constant 0 : index
    %101 = vector.load %arg10[%c0_56, %c0_57] : memref<8x33xbf16, #tpu.memory_space<vmem>>, vector<8x33xbf16>
    %cst_58 = arith.constant dense<0.000000e+00> : vector<8x1024xf32>
    %102 = tpu.matmul %101, %100, %cst_58 {dimension_numbers = #tpu.dot_dimension_numbers<[1], [0], [0], [1], [0, 0, 1, 1], [], []>} : vector<8x33xbf16>, vector<33x1024xbf16>, vector<8x1024xf32> -> vector<8x1024xf32>
    %c0_59 = arith.constant 0 : index
    %c0_60 = arith.constant 0 : index
    %103 = vector.load %arg18[%c0_59, %c0_60] : memref<8x1xf32, #tpu.memory_space<vmem>>, vector<8x1xf32>
    %104 = vector.broadcast %103 : vector<8x1xf32> to vector<8x1024xf32>
    %105 = arith.addf %102, %104 : vector<8x1024xf32>
    %106 = tpu.iota {dimensions = array<i32: 0>} : vector<8x1024xi32>
    %c0_i32 = arith.constant 0 : i32
    %107 = vector.broadcast %c0_i32 : i32 to vector<8x1024xi32>
    %108 = arith.cmpi eq, %106, %107 : vector<8x1024xi32>
    %109 = arith.negf %105 : vector<8x1024xf32>
    %110 = math.exp %109 : vector<8x1024xf32>
    %cst_61 = arith.constant 1.000000e+00 : f32
    %111 = vector.broadcast %cst_61 : f32 to vector<8x1024xf32>
    %112 = arith.addf %111, %110 : vector<8x1024xf32>
    %113 = arith.divf %111, %112 : vector<8x1024xf32>
    %114 = arith.select %108, %105, %113 : vector<8x1024xi1>, vector<8x1024xf32>
    %c0_62 = arith.constant 0 : index
    %c0_63 = arith.constant 0 : index
    %115 = vector.load %arg19[%c0_62, %c0_63] : memref<8x1024xf32, #tpu.memory_space<vmem>>, vector<8x1024xf32>
    tpu.vector_store %arg19[%c0_62, %c0_63], %114 {strides = array<i32>} : memref<8x1024xf32, #tpu.memory_space<vmem>>, vector<8x1024xf32>,
    return
  }
  func.func @transform_0(%arg0: i32) -> (i32, i32) {
    %c0_i32 = arith.constant 0 : i32
    %c0_i32_0 = arith.constant 0 : i32
    return %c0_i32, %arg0 : i32, i32
  }
  func.func @transform_1(%arg0: i32) -> (i32, i32) {
    %c0_i32 = arith.constant 0 : i32
    %c0_i32_0 = arith.constant 0 : i32
    return %c0_i32, %arg0 : i32, i32
  }
  func.func @transform_2(%arg0: i32) -> (i32, i32) {
    %c0_i32 = arith.constant 0 : i32
    %c0_i32_0 = arith.constant 0 : i32
    %c0_i32_1 = arith.constant 0 : i32
    return %c0_i32, %c0_i32_0 : i32, i32
  }
  func.func @transform_3(%arg0: i32) -> (i32, i32) {
    %c0_i32 = arith.constant 0 : i32
    %c0_i32_0 = arith.constant 0 : i32
    %c0_i32_1 = arith.constant 0 : i32
    return %c0_i32, %c0_i32_0 : i32, i32
  }
  func.func @transform_4(%arg0: i32) -> (i32, i32) {
    %c0_i32 = arith.constant 0 : i32
    %c0_i32_0 = arith.constant 0 : i32
    %c0_i32_1 = arith.constant 0 : i32
    return %c0_i32, %c0_i32_0 : i32, i32
  }
  func.func @transform_5(%arg0: i32) -> (i32, i32) {
    %c0_i32 = arith.constant 0 : i32
    %c0_i32_0 = arith.constant 0 : i32
    %c0_i32_1 = arith.constant 0 : i32
    return %c0_i32, %c0_i32_0 : i32, i32
  }
  func.func @transform_6(%arg0: i32) -> (i32, i32) {
    %c0_i32 = arith.constant 0 : i32
    %c0_i32_0 = arith.constant 0 : i32
    %c0_i32_1 = arith.constant 0 : i32
    return %c0_i32, %c0_i32_0 : i32, i32
  }
  func.func @transform_7(%arg0: i32) -> (i32, i32) {
    %c0_i32 = arith.constant 0 : i32
    %c0_i32_0 = arith.constant 0 : i32
    %c0_i32_1 = arith.constant 0 : i32
    return %c0_i32, %c0_i32_0 : i32, i32
  }
  func.func @transform_8(%arg0: i32) -> (i32, i32) {
    %c0_i32 = arith.constant 0 : i32
    %c0_i32_0 = arith.constant 0 : i32
    %c0_i32_1 = arith.constant 0 : i32
    return %c0_i32, %c0_i32_0 : i32, i32
  }
  func.func @transform_9(%arg0: i32) -> (i32, i32) {
    %c0_i32 = arith.constant 0 : i32
    %c0_i32_0 = arith.constant 0 : i32
    %c0_i32_1 = arith.constant 0 : i32
    return %c0_i32, %c0_i32_0 : i32, i32
  }
  func.func @transform_10(%arg0: i32) -> (i32, i32) {
    %c0_i32 = arith.constant 0 : i32
    %c0_i32_0 = arith.constant 0 : i32
    %c0_i32_1 = arith.constant 0 : i32
    return %c0_i32, %c0_i32_0 : i32, i32
  }
  func.func @transform_11(%arg0: i32) -> (i32, i32) {
    %c0_i32 = arith.constant 0 : i32
    %c0_i32_0 = arith.constant 0 : i32
    %c0_i32_1 = arith.constant 0 : i32
    return %c0_i32, %c0_i32_0 : i32, i32
  }
  func.func @transform_12(%arg0: i32) -> (i32, i32) {
    %c0_i32 = arith.constant 0 : i32
    %c0_i32_0 = arith.constant 0 : i32
    %c0_i32_1 = arith.constant 0 : i32
    return %c0_i32, %c0_i32_0 : i32, i32
  }
  func.func @transform_13(%arg0: i32) -> (i32, i32) {
    %c0_i32 = arith.constant 0 : i32
    %c0_i32_0 = arith.constant 0 : i32
    %c0_i32_1 = arith.constant 0 : i32
    return %c0_i32, %c0_i32_0 : i32, i32
  }
  func.func @transform_14(%arg0: i32) -> (i32, i32) {
    %c0_i32 = arith.constant 0 : i32
    %c0_i32_0 = arith.constant 0 : i32
    %c0_i32_1 = arith.constant 0 : i32
    return %c0_i32, %c0_i32_0 : i32, i32
  }
  func.func @transform_15(%arg0: i32) -> (i32, i32) {
    %c0_i32 = arith.constant 0 : i32
    %c0_i32_0 = arith.constant 0 : i32
    %c0_i32_1 = arith.constant 0 : i32
    return %c0_i32, %c0_i32_0 : i32, i32
  }
  func.func @transform_16(%arg0: i32) -> (i32, i32) {
    %c0_i32 = arith.constant 0 : i32
    %c0_i32_0 = arith.constant 0 : i32
    %c0_i32_1 = arith.constant 0 : i32
    return %c0_i32, %c0_i32_0 : i32, i32
  }
  func.func @transform_17(%arg0: i32) -> (i32, i32) {
    %c0_i32 = arith.constant 0 : i32
    %c0_i32_0 = arith.constant 0 : i32
    %c0_i32_1 = arith.constant 0 : i32
    return %c0_i32, %c0_i32_0 : i32, i32
  }
  func.func @transform_18(%arg0: i32) -> (i32, i32) {
    %c0_i32 = arith.constant 0 : i32
    %c0_i32_0 = arith.constant 0 : i32
    return %c0_i32, %arg0 : i32, i32
  }
}

</mosaic_0001>

<bundles_post_ra>
// kernel: tpu_custom_call.1
= control target key start
LH: loop header
LB: loop body
LE: loop exit
PB: predicated region body
PF: predicated region fallthrough
CT: control target
= control target key end

     0   :  { %s10703_s0 = inlined_call_operand.vmem [shape: f32[3,4096], index: 0, kind: input, shape index: {}]   ;;  %s10704_s1 = inlined_call_operand.vmem [shape: f32[3,512], index: 1, kind: input, shape index: {}]   ;;  %s10705_s2 = inlined_call_operand.vmem [shape: bf16[32,27], index: 2, kind: input, shape index: {}]   ;;  %s10706_s3 = inlined_call_operand.vmem [shape: bf16[32,32], index: 3, kind: input, shape index: {}]   ;;  %s10707_s4 = inlined_call_operand.vmem [shape: bf16[32,32], index: 4, kind: input, shape index: {}]   ;;  %s10708_s5 = inlined_call_operand.vmem [shape: bf16[32,59], index: 5, kind: input, shape index: {}]   ;;  %s10709_s6 = inlined_call_operand.vmem [shape: bf16[32,32], index: 6, kind: input, shape index: {}]   ;;  %s10710_s7 = inlined_call_operand.vmem [shape: bf16[32,32], index: 7, kind: input, shape index: {}]   ;;  %s10711_s8 = inlined_call_operand.vmem [shape: bf16[33,47], index: 8, kind: input, shape index: {}]   ;;  %s10712_s9 = inlined_call_operand.vmem [shape: bf16[8,33], index: 9, kind: input, shape index: {}]   ;;  %s10713_s10 = inlined_call_operand.vmem [shape: f32[32,1], index: 10, kind: input, shape index: {}]   ;;  %s10714_s11 = inlined_call_operand.vmem [shape: f32[32,1], index: 11, kind: input, shape index: {}]   ;;  %s10715_s12 = inlined_call_operand.vmem [shape: f32[32,1], index: 12, kind: input, shape index: {}]   ;;  %s10716_s13 = inlined_call_operand.vmem [shape: f32[32,1], index: 13, kind: input, shape index: {}]   ;;  %s10717_s14 = inlined_call_operand.vmem [shape: f32[32,1], index: 14, kind: input, shape index: {}]   ;;  %s10718_s15 = inlined_call_operand.vmem [shape: f32[32,1], index: 15, kind: input, shape index: {}]   ;;  %s10719_s16 = inlined_call_operand.vmem [shape: f32[33,1], index: 16, kind: input, shape index: {}]   ;;  %s10720_s17 = inlined_call_operand.vmem [shape: f32[8,1], index: 17, kind: input, shape index: {}]   ;;  %s10721_s18 = inlined_call_operand.hbm [shape: f32[8,4096], index: 18, kind: output, shape index: {}]  }
   0x1   :  { %10731 = sst [smem:[#allocation5_spill]] %s10703_s0 }
   0x2   :  { %10732 = sst [smem:[#allocation6_spill]] %s10704_s1 }
   0x3   :  { %10733 = sst [smem:[#allocation7_spill]] %s10705_s2 }
   0x4   :  { %10734 = sst [smem:[#allocation8_spill]] %s10706_s3 }
   0x5   :  { %10735 = sst [smem:[#allocation9_spill]] %s10707_s4 }
   0x6   :  { %10736 = sst [smem:[#allocation10_spill]] %s10708_s5 }
   0x7   :  { %10737 = sst [smem:[#allocation11_spill]] %s10709_s6 }
   0x8   :  { %10738 = sst [smem:[#allocation12_spill]] %s10710_s7 }
   0x9   :  { %23 = vsyncpa [#allocation3], 0 }
   0xa   :  { %25 = vsyncpa [#allocation3 + $0x1], 0  ;;  %s7857_s27 = smov 0   ;;  %s7859_s28 = smov 0  }
   0xb   :  { %s7861_s29 = smov 0   ;;  %s7863_s30 = smov 0  }
   0xc LB: > { %s7878_s0 = sadd.s32 4294967295, %s7751_s30   ;;  %s7194_s19 = sadd.s32 4294967294, %s7751_s30   ;;  %s7751_s30 = sphi %s7863_s30, %s10806_s30   ;;  %s7747_s29 = sphi %s7861_s29, %s10805_s29   ;;  %s7743_s28 = sphi %s7859_s28, %s10804_s28   ;;  %s7739_s27 = sphi %s7857_s27, %s10803_s27  }
   0xd   : > { %s7882_s1 = sadd.s32 1, %s7751_s30   ;;  %s426_s20 = sadd.s32 1, %s7747_s29 }
   0xe   : > { %s423_s21 = ssub.s32 %s7751_s30, %s7882_s1  ;;  %p436_p0 = scmp.ne.s32.totalorder %s7747_s29, %s7743_s28 }
   0xf   : > { %p424_p1 = scmp.eq.s32.totalorder %s423_s21, 0  ;;  %p437_p2 = scmp.eq.s32.totalorder %s7878_s0, 3 }
  0x10   : > { %p442_p3 = scmp.ne.s32.totalorder %s7743_s28, %s7739_s27  ;;  %p443_p4 = scmp.eq.s32.totalorder %s7194_s19, 3 }
  0x11   : > { %s7893_s22 = scalar_select %p424_p1, %s7747_s29, %s426_s20  }
  0x12   : > { %p7895_p5 = por %p437_p2, %p436_p0  ;;  %p7899_p6 = por %p443_p4, %p442_p3 }
  0x13   : > { %p7197_p7 = scmp.ge.s32.totalorder %s7751_s30, 1  ;;  %p525_p8 = scmp.lt.s32.totalorder %s7751_s30, 5 }
  0x15   : > { %p526_p9 = pnand %p7197_p7, %p525_p8 }
  0x16   : > { %s7199_s24 = sshll.u32 (!%p526_p9), %s7878_s0, 3  ;;  %s10741_s20 = sld [smem:[#allocation5_spill]] (!%p526_p9)  ;;  %v7753_v26 = vmov (!%p526_p9), 683565275   ;;  %v7754_v28 = vmov (!%p526_p9), 2475754826  }
  0x17   : > { %529 = sbr.rel (%p526_p9) target bundleno = 2490 (0x9ba), region = 92  ;;  %p584_p10 = scmp.lt.s32.totalorder (!%p526_p9), %s7199_s24, 31  ;;  %v7755_v30 = vmov (!%p526_p9), 2131351028   ;;  %v7756_v32 = vmov (!%p526_p9), 2102212464  }
  0x18   : > { %v7757_v34 = vmov (!%p526_p9), 920167782   ;;  %v7758_v41 = vmov (!%p526_p9), 1326507024   ;;  %s10761_s26 = sld [smem:[#allocation7_spill]] (!%p526_p9)  ;;  %s10793_s3 = sld [smem:[#allocation8_spill]] (!%p526_p9) }
  0x19   : > { %s10794_s4 = sld [smem:[#allocation9_spill]] (!%p526_p9)  ;;  %s10795_s5 = sld [smem:[#allocation10_spill]] (!%p526_p9) }
  0x1a   : > { %s10796_s6 = sld [smem:[#allocation11_spill]] (!%p526_p9)  ;;  %s10797_s7 = sld [smem:[#allocation12_spill]] (!%p526_p9) }
  0x1b   : > { %p589_p11 = scmp.lt.s32.totalorder (!%p526_p9), %s7878_s0, 3 }
  0x1e   : > { %s10808_s24 = smov (!%p584_p10, %s7199_s24), 31 }
  0x1f   : > { %s7200_s25 = sshll.u32 %s10808_s24, 2  ;;  %s7438_s24 = sshll.u32 %s7878_s0, 10 }
  0x20   : > { %s7909_s21 = scalar_lea.vmem %s10741_s20, %s7200_s25 }
  0x21   : > { %v7912_v0 = vld [vmem:[%s7909_s21] sm:$0x77]  ;;  %s590_s19 = scalar_select %p589_p11, %s7878_s0, 3 }
  0x22   : > { %v599_v1 = vand.u32 2147483647, %v7912_v0  ;;  %v602_v2 = vand.u32 2139095040, %v7912_v0  ;;  %v7917_v3 = vmul.f32 2.0, %v7912_v0  ;;  %v7920_v4 = vmul.f32 4.0, %v7912_v0 }
  0x23   : > { %vm601_vm13 = vcmp.lt.s32.totalorder %v7912_v0, 0  ;;  %s7201_s20 = sshll.u32 %s590_s19, 2  ;;  %s7761_s19 = smov [#allocation2]  }
  0x24   : > { %v603_v5 = vshrl.u32 %v602_v2, 23  ;;  %v606_v6 = vand.u32 8388607, %v599_v1  ;;  %v1431_v7 = vand.u32 2147483647, %v7917_v3  ;;  %v1434_v8 = vand.u32 2139095040, %v7917_v3 }
  0x25   : > { %v2266_v12 = vand.u32 2139095040, %v7920_v4 }
  0x26   : > { %v7202_v9 = vadd.s32 4294967169, %v603_v5  ;;  %v1435_v10 = vshrl.u32 %v1434_v8, 23  ;;  %v1438_v11 = vand.u32 8388607, %v1431_v7  ;;  %v607_v14 = vor.u32 8388608, %v606_v6 }
  0x27   : > { %v2267_v17 = vshrl.u32 %v2266_v12, 23 }
  0x28   : > { %v609_v13 = vadd.s32 1, %v7202_v9  ;;  %v7234_v15 = vadd.s32 4294967169, %v1435_v10  ;;  %v1439_v16 = vor.u32 8388608, %v1438_v11  ;;  %v7929_v22 = vshll.u32 %v607_v14, 8 }
  0x29   : > { %v7933_v24 = vadd.s32 4294967169, %v2267_v17 }
  0x2a   : > { %vm610_vm0 = vcmp.gt.s32.totalorder %v609_v13, 0  ;;  %v1441_v19 = vadd.s32 1, %v7234_v15  ;;  %v7931_v23 = vshll.u32 %v1439_v16, 8 }
  0x2b   : > { %v611_v18 = vsel %vm610_vm0, %v609_v13, 0 }
  0x2c   : > { %v612_v20 = vshrl.u32 %v611_v18, 5  ;;  %v613_v21 = vand.u32 31, %v611_v18  ;;  %vm1442_vm1 = vcmp.gt.s32.totalorder %v1441_v19, 0 }
  0x2d   : > { %v1443_v46 = vsel %vm1442_vm1, %v1441_v19, 0 }
  0x2e   : > { %v614_v25 = vsub.s32 32, %v613_v21  ;;  %v616_v27 = vshll.u32 %v7753_v26, %v613_v21  ;;  %v619_v29 = vshll.u32 %v7754_v28, %v613_v21  ;;  %v622_v31 = vshll.u32 %v7755_v30, %v613_v21 }
  0x2f   : > { %v625_v33 = vshll.u32 %v7756_v32, %v613_v21  ;;  %v628_v35 = vshll.u32 %v7757_v34, %v613_v21  ;;  %vm631_vm2 = vcmp.lt.s32.totalorder %v612_v20, 1  ;;  %vm632_vm3 = vcmp.lt.s32.totalorder %v612_v20, 2 }
  0x30   : > { %v615_v36 = vshrl.u32 %v7753_v26, %v614_v25  ;;  %v617_v37 = vshrl.u32 %v7754_v28, %v614_v25  ;;  %v620_v38 = vshrl.u32 %v7755_v30, %v614_v25  ;;  %v623_v39 = vshrl.u32 %v7756_v32, %v614_v25 }
  0x31   : > { %v626_v40 = vshrl.u32 %v7757_v34, %v614_v25  ;;  %v629_v42 = vshrl.u32 %v7758_v41, %v614_v25  ;;  %vm633_vm4 = vcmp.lt.s32.totalorder %v612_v20, 3  ;;  %vm634_vm5 = vcmp.lt.s32.totalorder %v612_v20, 4 }
  0x32   : > { %v618_v43 = vor.u32 %v617_v37, %v616_v27  ;;  %v621_v44 = vor.u32 %v620_v38, %v619_v29  ;;  %v624_v45 = vor.u32 %v623_v39, %v622_v31  ;;  %v1444_v49 = vshrl.u32 %v1443_v46, 5 }
  0x33   : > { %v627_v47 = vor.u32 %v626_v40, %v625_v33  ;;  %v630_v48 = vor.u32 %v629_v42, %v628_v35  ;;  %v1445_v50 = vand.u32 31, %v1443_v46  ;;  %v2273_v29 = vadd.s32 1, %v7933_v24 }
  0x34   : > { %v635_v51 = vsel %vm631_vm2, %v615_v36, %v618_v43  ;;  %v636_v52 = vsel %vm634_vm5, %v624_v45, 2102212464  ;;  %v639_v53 = vsel %vm631_vm2, %v618_v43, %v621_v44  ;;  %v643_v54 = vsel %vm631_vm2, %v621_v44, %v624_v45 }
  0x35   : > { %v637_v55 = vsel %vm633_vm4, %v621_v44, %v636_v52  ;;  %v640_v56 = vsel %vm634_vm5, %v627_v47, 920167782  ;;  %v644_v57 = vsel %vm634_vm5, %v630_v48, 1326507024  ;;  %v1446_v58 = vsub.s32 32, %v1445_v50 }
  0x36   : > { %v638_v59 = vsel %vm632_vm3, %v635_v51, %v637_v55  ;;  %v641_v60 = vsel %vm633_vm4, %v624_v45, %v640_v56  ;;  %v645_v61 = vsel %vm633_vm4, %v627_v47, %v644_v57  ;;  %v1448_v62 = vshll.u32 %v7753_v26, %v1445_v50 }
  0x37   : > { %v642_v63 = vsel %vm632_vm3, %v639_v53, %v641_v60  ;;  %v646_v2 = vsel %vm632_vm3, %v643_v54, %v645_v61  ;;  %v654_v5 = vmul.u32 %v7929_v22, %v638_v59  ;;  %v1447_v6 = vshrl.u32 %v7753_v26, %v1446_v58 }
  0x38   : > { %v7960_v8 = vmul.u32.u64.low %v7929_v22, %v646_v2  ;;  %v7961_v9 = vmul.u32.u64.high %v7929_v22, %v646_v2, %v7960_v8  ;;  %v7964_v10 = vmul.u32.u64.low %v7929_v22, %v642_v63  ;;  %v7965_v11 = vmul.u32.u64.high %v7929_v22, %v642_v63, %v7964_v10 }
  0x39   : > { %v1449_v12 = vshrl.u32 %v7754_v28, %v1446_v58  ;;  %v1451_v13 = vshll.u32 %v7754_v28, %v1445_v50  ;;  %v1452_v14 = vshrl.u32 %v7755_v30, %v1446_v58  ;;  %v1454_v15 = vshll.u32 %v7755_v30, %v1445_v50 }
  0x3a   : > { %v1455_v16 = vshrl.u32 %v7756_v32, %v1446_v58  ;;  %v1457_v17 = vshll.u32 %v7756_v32, %v1445_v50  ;;  %v1458_v18 = vshrl.u32 %v7757_v34, %v1446_v58  ;;  %v1460_v19 = vshll.u32 %v7757_v34, %v1445_v50 }
  0x3b   : > { %v1450_v20 = vor.u32 %v1449_v12, %v1448_v62  ;;  %v1453_v21 = vor.u32 %v1452_v14, %v1451_v13  ;;  %v1461_v22 = vshrl.u32 %v7758_v41, %v1446_v58  ;;  %vm1463_vm6 = vcmp.lt.s32.totalorder %v1444_v49, 1  ;;  %v8003_v62 = vld [vmem:[%s7909_s21 + $0x8] sm:$0x77] }
  0x3c   : > { %vm656_vm7 = vc.u32 %v7961_v9, %v7964_v10  ;;  %v657_v25 = vadd.s32 1, %v7965_v11  ;;  %v1456_v27 = vor.u32 %v1455_v16, %v1454_v15  ;;  %v1459_v31 = vor.u32 %v1458_v18, %v1457_v17 }
  0x3d   : > { %v1462_v33 = vor.u32 %v1461_v22, %v1460_v19  ;;  %vm1464_vm8 = vcmp.lt.s32.totalorder %v1444_v49, 2  ;;  %vm1465_vm9 = vcmp.lt.s32.totalorder %v1444_v49, 3  ;;  %vm1466_vm10 = vcmp.lt.s32.totalorder %v1444_v49, 4 }
  0x3e   : > { %v658_v35 = vsel %vm656_vm7, %v657_v25, %v7965_v11  ;;  %v1467_v36 = vsel %vm1463_vm6, %v1447_v6, %v1450_v20  ;;  %v1471_v37 = vsel %vm1463_vm6, %v1450_v20, %v1453_v21  ;;  %v1468_v39 = vsel %vm1466_vm10, %v1456_v27, 2102212464 }
  0x3f   : > { %v659_v38 = vadd.s32 %v658_v35, %v654_v5  ;;  %v1472_v40 = vsel %vm1466_vm10, %v1459_v31, 920167782  ;;  %v1475_v42 = vsel %vm1463_vm6, %v1453_v21, %v1456_v27  ;;  %v1469_v43 = vsel %vm1465_vm9, %v1453_v21, %v1468_v39 }
  0x40   : > { %v1473_v44 = vsel %vm1465_vm9, %v1456_v27, %v1472_v40  ;;  %v1476_v45 = vsel %vm1466_vm10, %v1462_v33, 1326507024  ;;  %vm2274_vm11 = vcmp.gt.s32.totalorder %v2273_v29, 0  ;;  %v2263_v48 = vand.u32 2147483647, %v7920_v4 }
  0x41   : > { %v660_v24 = vadd.s32 536870912, %v659_v38  ;;  %v1474_v46 = vsel %vm1464_vm8, %v1471_v37, %v1473_v44  ;;  %v1477_v47 = vsel %vm1465_vm9, %v1459_v31, %v1476_v45  ;;  %v1470_v50 = vsel %vm1464_vm8, %v1467_v36, %v1469_v43 }
  0x42   : > { %v1478_v51 = vsel %vm1464_vm8, %v1475_v42, %v1477_v47  ;;  %v7990_v52 = vmul.u32.u64.low %v7931_v23, %v1474_v46  ;;  %v7991_v53 = vmul.u32.u64.high %v7931_v23, %v1474_v46, %v7990_v52  ;;  %v2275_v57 = vsel %vm2274_vm11, %v2273_v29, 0 }
  0x43   : > { %v661_v54 = vshrl.u32 %v660_v24, 30  ;;  %v7995_v55 = vmul.u32.u64.low %v7931_v23, %v1478_v51  ;;  %v7996_v56 = vmul.u32.u64.high %v7931_v23, %v1478_v51, %v7995_v55  ;;  %v2277_v58 = vand.u32 31, %v2275_v57 }
  0x44   : > { %v1486_v60 = vmul.u32 %v7931_v23, %v1470_v50  ;;  %v1489_v61 = vadd.s32 1, %v7991_v53  ;;  %v2270_v49 = vand.u32 8388607, %v2263_v48  ;;  %v706_v2 = vand.u32 2139095040, %v8003_v62 }
  0x45   : > { %v662_v59 = vshll.u32 %v661_v54, 30  ;;  %vm1488_vm12 = vc.u32 %v7996_v56, %v7990_v52  ;;  %v2278_v6 = vsub.s32 32, %v2277_v58  ;;  %v2280_v15 = vshll.u32 %v7753_v26, %v2277_v58 }
  0x46   : > { %v1490_v5 = vsel %vm1488_vm12, %v1489_v61, %v7991_v53  ;;  %v2271_v12 = vor.u32 8388608, %v2270_v49  ;;  %v707_v13 = vshrl.u32 %v706_v2, 23  ;;  %v2283_v17 = vshll.u32 %v7754_v28, %v2277_v58 }
  0x47   : > { %v663_v63 = vsub.s32 %v659_v38, %v662_v59  ;;  %v1491_v11 = vadd.s32 %v1490_v5, %v1486_v60  ;;  %v2281_v16 = vshrl.u32 %v7754_v28, %v2278_v6  ;;  %v2284_v19 = vshrl.u32 %v7755_v30, %v2278_v6 }
  0x48   : > { %v2286_v20 = vshll.u32 %v7755_v30, %v2277_v58  ;;  %v2287_v21 = vshrl.u32 %v7756_v32, %v2278_v6  ;;  %v8018_v25 = vshll.u32 %v2271_v12, 8  ;;  %v703_v27 = vand.u32 2147483647, %v8003_v62 }
  0x49   : > { %v665_v8 = vsub.s32 0, %v663_v63  ;;  %v1492_v14 = vadd.s32 536870912, %v1491_v11  ;;  %v655_v29 = vadd.s32 %v7964_v10, %v7961_v9  ;;  %v2289_v33 = vshll.u32 %v7756_v32, %v2277_v58 }
  0x4a   : > { %v2290_v35 = vshrl.u32 %v7757_v34, %v2278_v6  ;;  %v685_v36 = vsub.s32 4, %v661_v54  ;;  %v2276_v38 = vshrl.u32 %v2275_v57, 5  ;;  %v7206_v39 = vadd.s32 4294967169, %v707_v13 }
  0x4b   : > { %v7203_v23 = vmin.u32 %v665_v8, %v663_v63  ;;  %v8016_v22 = vshrl.u32 %v1492_v14, 30  ;;  %v2282_v40 = vor.u32 %v2281_v16, %v2280_v15  ;;  %v2285_v42 = vor.u32 %v2284_v19, %v2283_v17 }
  0x4c   : > { %v2288_v43 = vor.u32 %v2287_v21, %v2286_v20  ;;  %v2292_v24 = vshll.u32 %v7757_v34, %v2277_v58  ;;  %v2293_v9 = vshrl.u32 %v7758_v41, %v2278_v6  ;;  %v2291_v50 = vor.u32 %v2290_v35, %v2289_v33 }
  0x4d   : > { %v667_v18 = vclz %v7203_v23  ;;  %v1494_v37 = vshll.u32 %v8016_v22, 30  ;;  %v2279_v53 = vshrl.u32 %v7753_v26, %v2278_v6  ;;  %vm2295_vm15 = vcmp.lt.s32.totalorder %v2276_v38, 1 }
  0x4e   : > { %vm2298_vm0 = vcmp.lt.s32.totalorder %v2276_v38, 4  ;;  %v686_v59 = vsel %vm601_vm13, %v685_v36, %v661_v54  ;;  %v2294_v61 = vor.u32 %v2293_v9, %v2292_v24  ;;  %vm2296_vm1 = vcmp.lt.s32.totalorder %v2276_v38, 2 }
  0x4f   : > { %v7204_v31 = vadd.s32 4294967294, %v667_v18  ;;  %v8026_v45 = vsub.s32 %v1491_v11, %v1494_v37  ;;  %v2300_v60 = vsel %vm2298_vm0, %v2288_v43, 2102212464  ;;  %vm2297_vm2 = vcmp.lt.s32.totalorder %v2276_v38, 3 }
  0x50   : > { %vm8038_vm3 = vcmp.le.f32.partialorder %v599_v1, 0.7853982  ;;  %v2303_v5 = vsel %vm2295_vm15, %v2282_v40, %v2285_v42  ;;  %v2304_v6 = vsel %vm2298_vm0, %v2291_v50, 920167782  ;;  %vm1433_vm4 = vcmp.lt.s32.totalorder %v7917_v3, 0 }
  0x51   : > { %vm7205_vm14 = vcmp.lt.s32.totalorder %v7204_v31, 0  ;;  %v1497_v51 = vsub.s32 0, %v8026_v45  ;;  %v1487_v54 = vadd.s32 %v7990_v52, %v7996_v56  ;;  %v2299_v11 = vsel %vm2295_vm15, %v2279_v53, %v2282_v40 }
  0x52   : > { %v670_v44 = vsel %vm7205_vm14, 0, %v7204_v31  ;;  %v2301_v12 = vsel %vm2297_vm2, %v2285_v42, %v2300_v60  ;;  %v2305_v13 = vsel %vm2297_vm2, %v2288_v43, %v2304_v6  ;;  %v2307_v14 = vsel %vm2295_vm15, %v2285_v42, %v2288_v43 }
  0x53   : > { %v671_v10 = vsub.s32 32, %v670_v44  ;;  %v672_v46 = vshll.u32 %v663_v63, %v670_v44  ;;  %v675_v47 = vsub.s32 4294967266, %v670_v44  ;;  %v7235_v58 = vmin.u32 %v1497_v51, %v8026_v45 }
  0x54   : > { %v1517_v16 = vsub.s32 4, %v8016_v22  ;;  %v2306_v17 = vsel %vm2296_vm1, %v2303_v5, %v2305_v13  ;;  %v2308_v18 = vsel %vm2298_vm0, %v2294_v61, 1326507024  ;;  %v2302_v21 = vsel %vm2296_vm1, %v2299_v11, %v2301_v12 }
  0x55   : > { %v673_v55 = vshrl.u32 %v655_v29, %v671_v10  ;;  %v676_v57 = vadd.s32 127, %v675_v47  ;;  %v1499_v8 = vclz %v7235_v58  ;;  %v2309_v52 = vsel %vm2297_vm2, %v2291_v50, %v2308_v18 }
  0x56   : > { %v8056_v56 = vmul.u32.u64.low %v8018_v25, %v2306_v17  ;;  %v8057_v20 = vmul.u32.u64.high %v8018_v25, %v2306_v17, %v8056_v56  ;;  %v2310_v29 = vsel %vm2296_vm1, %v2307_v14, %v2309_v52  ;;  %v713_v31 = vadd.s32 1, %v7206_v39 }
  0x57   : > { %v674_v63 = vor.u32 %v673_v55, %v672_v46  ;;  %v677_v2 = vshll.u32 %v676_v57, 23  ;;  %v7236_v15 = vadd.s32 4294967294, %v1499_v8  ;;  %v2318_v24 = vmul.u32 %v8018_v25, %v2302_v21 }
  0x58   : > { %v8063_v36 = vmul.u32.u64.low %v8018_v25, %v2310_v29  ;;  %v8064_v37 = vmul.u32.u64.high %v8018_v25, %v2310_v29, %v8063_v36  ;;  %vm714_vm6 = vcmp.gt.s32.totalorder %v713_v31, 0  ;;  %v2321_v9 = vadd.s32 1, %v8057_v20 }
  0x59   : > { %v678_v1 = vor.u32 4788187, %v677_v2  ;;  %v681_v23 = vcvt.s32.f32 %v674_v63  ;;  %vm7237_vm5 = vcmp.lt.s32.totalorder %v7236_v15, 0  ;;  %v715_v10 = vsel %vm714_vm6, %v713_v31, 0 }
  0x5a   : > { %v1502_v35 = vsel %vm7237_vm5, 0, %v7236_v15  ;;  %v688_v38 = vsel %vm8038_vm3, 0, %v686_v59  ;;  %v8073_v47 = vand.u32 8388607, %v703_v27  ;;  %v1518_v50 = vsel %vm1433_vm4, %v1517_v16, %v8016_v22 }
  0x5b   : > { %v679_v19 = vand.u32 2147483647, %v678_v1  ;;  %v1503_v40 = vsub.s32 32, %v1502_v35  ;;  %v1504_v42 = vshll.u32 %v8026_v45, %v1502_v35  ;;  %v1507_v43 = vsub.s32 4294967266, %v1502_v35 }
  0x5c   : > { %vm2320_vm7 = vc.u32 %v8064_v37, %v8056_v56  ;;  %v717_v25 = vand.u32 31, %v715_v10  ;;  %v692_v59 = vadd.s32 3, %v688_v38  ;;  %vm8088_vm8 = vcmp.le.f32.partialorder %v1431_v7, 0.7853982 }
  0x5d   : > { %v682_v33 = vmul.f32 %v681_v23, %v679_v19  ;;  %v1505_v39 = vshrl.u32 %v1487_v54, %v1503_v40  ;;  %v1508_v46 = vadd.s32 127, %v1507_v43  ;;  %v2322_v57 = vsel %vm2320_vm7, %v2321_v9, %v8057_v20 }
  0x5e   : > { %v2323_v22 = vadd.s32 %v2322_v57, %v2318_v24  ;;  %v8094_v49 = vsel %vm8088_vm8, 0, %v1518_v50  ;;  %v8096_v63 = vand.u32 3, %v688_v38  ;;  %v718_v5 = vsub.s32 32, %v717_v25 }
  0x5f   : > { %v683_v44 = vxor.u32 2147483648, %v682_v33  ;;  %v1506_v53 = vor.u32 %v1505_v39, %v1504_v42  ;;  %v1509_v55 = vshll.u32 %v1508_v46, 23  ;;  %v711_v54 = vor.u32 8388608, %v8073_v47 }
  0x60   : > { %v2324_v2 = vadd.s32 536870912, %v2323_v22  ;;  %v8099_v8 = vand.u32 3, %v692_v59  ;;  %v1524_v7 = vadd.s32 3, %v8094_v49  ;;  %v8105_v12 = vmul.f32 2.0, %v8003_v62 }
  0x61   : > { %v684_v45 = vsel %vm601_vm13, %v683_v44, %v682_v33  ;;  %v1510_v58 = vor.u32 4788187, %v1509_v55  ;;  %v1513_v61 = vcvt.s32.f32 %v1506_v53  ;;  %v8107_v23 = vshrl.u32 %v715_v10, 5 }
  0x62   : > { %v687_v51 = vsel %vm8038_vm3, %v7912_v0, %v684_v45  ;;  %v8102_v11 = vshrl.u32 %v2324_v2, 30  ;;  %v720_v13 = vshll.u32 %v7753_v26, %v717_v25  ;;  %v723_v14 = vshll.u32 %v7754_v28, %v717_v25 }
  0x63   : > { %7579 = vcosq.f32 %v687_v51  ;;  %v1511_v6 = vand.u32 2147483647, %v1510_v58  ;;  %vm1113_vm9 = vcmp.eq.s32.totalorder %v8096_v63, 2  ;;  %v721_v16 = vshrl.u32 %v7754_v28, %v718_v5 }
  0x64   : > { %7581 = vsinq.f32 %v687_v51  ;;  %v2326_v15 = vshll.u32 %v8102_v11, 30  ;;  %v729_v17 = vshll.u32 %v7756_v32, %v717_v25  ;;  %v730_v18 = vshrl.u32 %v7757_v34, %v718_v5 }
  0x65   : > { %v1514_v1 = vmul.f32 %v1513_v61, %v1511_v6  ;;  %vm1110_vm10 = vcmp.eq.s32.totalorder %v8096_v63, 0  ;;  %v724_v52 = vshrl.u32 %v7755_v30, %v718_v5  ;;  %v726_v20 = vshll.u32 %v7755_v30, %v717_v25 }
  0x66   : > { %v727_v21 = vshrl.u32 %v7756_v32, %v718_v5  ;;  %vm694_vm11 = vcmp.lt.s32.totalorder %v8099_v8, 2  ;;  %vm695_vm12 = vcmp.eq.s32.totalorder %v8099_v8, 0  ;;  %vm698_vm13 = vcmp.eq.s32.totalorder %v8099_v8, 2 }
  0x67   : > { %v1515_v19 = vxor.u32 2147483648, %v1514_v1  ;;  %v8123_v29 = vsub.s32 %v2323_v22, %v2326_v15  ;;  %v8127_v33 = vand.u32 3, %v1524_v7  ;;  %v732_v35 = vshll.u32 %v7757_v34, %v717_v25 }
  0x68   : > { %v733_v36 = vshrl.u32 %v7758_v41, %v718_v5  ;;  %vm1109_vm14 = vcmp.lt.s32.totalorder %v8096_v63, 2  ;;  %v722_v44 = vor.u32 %v721_v16, %v720_v13  ;;  %v731_v24 = vor.u32 %v730_v18, %v729_v17 }
  0x69   : > { %v1516_v31 = vsel %vm1433_vm4, %v1515_v19, %v1514_v1  ;;  %v2329_v43 = vsub.s32 0, %v8123_v29  ;;  %vm691_vm15 = vweird.f32 %v7912_v0  ;;  %v725_v10 = vor.u32 %v724_v52, %v723_v14 }
  0x6a   : > { %v1519_v42 = vsel %vm8088_vm8, %v7917_v3, %v1516_v31  ;;  %v728_v38 = vor.u32 %v727_v21, %v726_v20  ;;  %vm738_vm0 = vcmp.lt.s32.totalorder %v8107_v23, 4  ;;  %vm2265_vm1 = vcmp.lt.s32.totalorder %v7920_v4, 0 }
  0x6b   : > { %7583 = vcosq.f32 %v1519_v42  ;;  %v7267_v47 = vmin.u32 %v2329_v43, %v8123_v29  ;;  %vm1530_vm2 = vcmp.eq.s32.totalorder %v8127_v33, 2  ;;  %v719_v45 = vshrl.u32 %v7753_v26, %v718_v5 }
  0x6c   : > { %7585 = vsinq.f32 %v1519_v42  ;;  %v734_v50 = vor.u32 %v733_v36, %v732_v35  ;;  %vm735_vm3 = vcmp.lt.s32.totalorder %v8107_v23, 1  ;;  %vm1527_vm4 = vcmp.eq.s32.totalorder %v8127_v33, 0 }
  0x6d   : > { %v7580_v40 = vpop.eup %7579  ;;  %v2331_v25 = vclz %v7267_v47  ;;  %vm737_vm5 = vcmp.lt.s32.totalorder %v8107_v23, 3  ;;  %v740_v51 = vsel %vm738_vm0, %v728_v38, 2102212464  ;;  %v744_v53 = vsel %vm738_vm0, %v731_v24, 920167782 }
  0x6e   : > { %v7582_v9 = vpop.eup %7581  ;;  %v699_v46 = vxor.u32 2147483648, %v7580_v40  ;;  %v2319_v55 = vadd.s32 %v8056_v56, %v8064_v37  ;;  %v2349_v57 = vsub.s32 4, %v8102_v11  ;;  %vm736_vm6 = vcmp.lt.s32.totalorder %v8107_v23, 2 }
  0x6f   : > { %v696_v39 = vxor.u32 2147483648, %v7582_v9  ;;  %v8153_v59 = vshll.u32 %v711_v54, 8  ;;  %vm8161_vm7 = vcmp.le.f32.partialorder %v2263_v48, 0.7853982  ;;  %v7268_v61 = vadd.s32 4294967294, %v2331_v25 }
  0x70   : > { %v700_v22 = vsel %vm698_vm13, %v699_v46, %v7582_v9  ;;  %v743_v56 = vsel %vm735_vm3, %v722_v44, %v725_v10  ;;  %v1115_v37 = vsel %vm1113_vm9, %v699_v46, %v7582_v9  ;;  %v739_v2 = vsel %vm735_vm3, %v719_v45, %v722_v44 }
  0x71   : > { %v697_v60 = vsel %vm695_vm12, %v7580_v40, %v696_v39  ;;  %v741_v5 = vsel %vm737_vm5, %v725_v10, %v740_v51  ;;  %v745_v6 = vsel %vm737_vm5, %v728_v38, %v744_v53  ;;  %v1112_v48 = vsel %vm1110_vm10, %v7580_v40, %v696_v39 }
  0x72   : > { %vm7269_vm8 = vcmp.lt.s32.totalorder %v7268_v61, 0  ;;  %v747_v54 = vsel %vm735_vm3, %v725_v10, %v728_v38  ;;  %v748_v7 = vsel %vm738_vm0, %v734_v50, 1326507024  ;;  %v701_v1 = vsel %vm694_vm11, %v697_v60, %v700_v22 }
  0x73   : > { %vm1523_vm9 = vweird.f32 %v7917_v3  ;;  %v2334_v13 = vsel %vm7269_vm8, 0, %v7268_v61  ;;  %v746_v14 = vsel %vm736_vm6, %v743_v56, %v745_v6  ;;  %v749_v15 = vsel %vm737_vm5, %v731_v24, %v748_v7 }
  0x74   : > { %v2335_v16 = vsub.s32 32, %v2334_v13  ;;  %v2336_v17 = vshll.u32 %v8123_v29, %v2334_v13  ;;  %v2339_v18 = vsub.s32 4294967266, %v2334_v13  ;;  %v750_v19 = vsel %vm736_vm6, %v747_v54, %v749_v15 }
  0x75   : > { %v7584_v52 = vpop.eup %7583  ;;  %v1116_v8 = vsel %vm1109_vm14, %v1112_v48, %v1115_v37  ;;  %v2350_v20 = vsel %vm2265_vm1, %v2349_v57, %v8102_v11  ;;  %v8197_v21 = vmul.u32.u64.low %v8153_v59, %v750_v19  ;;  %v8198_v31 = vmul.u32.u64.high %v8153_v59, %v750_v19, %v8197_v21 }
  0x76   : > { %v7586_v35 = vpop.eup %7585  ;;  %v8202_v29 = vsel %vm691_vm15, nan, %v701_v1  ;;  %v1531_v36 = vxor.u32 2147483648, %v7584_v52  ;;  %v2337_v40 = vshrl.u32 %v2319_v55, %v2335_v16  ;;  %v2340_v42 = vadd.s32 127, %v2339_v18 }
  0x77   : > { %v1528_v43 = vxor.u32 2147483648, %v7586_v35  ;;  %v742_v63 = vsel %vm736_vm6, %v739_v2, %v741_v5  ;;  %v8207_v44 = vmul.u32.u64.low %v8153_v59, %v746_v14  ;;  %v8208_v24 = vmul.u32.u64.high %v8153_v59, %v746_v14, %v8207_v44 }
  0x78   : > { %vm1526_vm10 = vcmp.lt.s32.totalorder %v8127_v33, 2  ;;  %v1532_v11 = vsel %vm1530_vm2, %v1531_v36, %v7586_v35  ;;  %v2338_v9 = vor.u32 %v2337_v40, %v2336_v17  ;;  %v2341_v10 = vshll.u32 %v2340_v42, 23 }
  0x79   : > { %v8216_v38 = vsel %vm691_vm15, nan, %v1116_v8  ;;  %v1529_v23 = vsel %vm1527_vm4, %v7584_v52, %v1528_v43  ;;  %v2352_v39 = vsel %vm8161_vm7, 0, %v2350_v20  ;;  %v3939_v46 = vcombine.high %v8202_v29, %v8202_v29 }
  0x7a   : > { %v2342_v47 = vor.u32 4788187, %v2341_v10  ;;  %v2345_v45 = vcvt.s32.f32 %v2338_v9  ;;  %v758_v50 = vmul.u32 %v8153_v59, %v742_v63  ;;  %vm760_vm11 = vc.u32 %v8198_v31, %v8207_v44 }
  0x7b   : > { %v1533_v25 = vsel %vm1526_vm10, %v1529_v23, %v1532_v11  ;;  %v1940_v51 = vand.u32 3, %v8094_v49  ;;  %v761_v53 = vadd.s32 1, %v8208_v24  ;;  %v1538_v33 = vand.u32 2139095040, %v8105_v12 }
  0x7c   : > { %v2343_v55 = vand.u32 2147483647, %v2342_v47  ;;  %v3927_v57 = vcombine.high %v7912_v0, %v7912_v0  ;;  %vm4103_vm12 = vcmask 1042432   ;;  %v8233_v60 = vmul.f32 4.0, %v8003_v62 }
  0x7d   : > { %v2356_v22 = vadd.s32 3, %v2352_v39  ;;  %v3963_v59 = vcombine.high %v8216_v38, %v8216_v38  ;;  %vm10725_vm13 = vcmask 1045504   ;;  %v762_v61 = vsel %vm760_vm11, %v761_v53, %v8208_v24 }
  0x7e   : > { %v1539_v49 = vshrl.u32 %v1538_v33, 23  ;;  %v8240_v56 = vsel %vm1523_vm9, nan, %v1533_v25  ;;  %v2346_v37 = vmul.f32 %v2345_v45, %v2343_v55  ;;  %v3944_v2 = vrot.slane %v3939_v46, 5 }
  0x7f   : > { %v763_v5 = vadd.s32 %v762_v61, %v758_v50  ;;  %vm1941_vm14 = vcmp.lt.s32.totalorder %v1940_v51, 2  ;;  %vm1942_vm15 = vcmp.eq.s32.totalorder %v1940_v51, 0  ;;  %vm1945_vm0 = vcmp.eq.s32.totalorder %v1940_v51, 2 }
  0x80   : > { %v7238_v0 = vadd.s32 4294967169, %v1539_v49  ;;  %v2347_v6 = vxor.u32 2147483648, %v2346_v37  ;;  %v8242_v48 = vand.u32 3, %v2352_v39  ;;  %v1535_v7 = vand.u32 2147483647, %v8105_v12 }
  0x81   : > { %v764_v54 = vadd.s32 536870912, %v763_v5  ;;  %v8245_v1 = vand.u32 3, %v2356_v22  ;;  %v3987_v13 = vcombine.high %v8240_v56, %v8240_v56  ;;  %v2370_v15 = vand.u32 2139095040, %v8233_v60 }
  0x82   : > { %v1545_v14 = vadd.s32 1, %v7238_v0  ;;  %v2348_v16 = vsel %vm2265_vm1, %v2347_v6, %v2346_v37  ;;  %v3968_v17 = vrot.slane %v3963_v59, 2  ;;  %v4105_v18 = vsel %vm4103_vm12, %v3927_v57, %v3944_v2 }
  0x83   : > { %v8253_v19 = vshrl.u32 %v764_v54, 30  ;;  %v1944_v8 = vsel %vm1942_vm15, %v7584_v52, %v1528_v43  ;;  %v1947_v20 = vsel %vm1945_vm0, %v1531_v36, %v7586_v35  ;;  %v2351_v21 = vsel %vm8161_vm7, %v7920_v4, %v2348_v16 }
  0x84   : > { %vm1546_vm2 = vcmp.gt.s32.totalorder %v1545_v14, 0  ;;  %7587 = vcosq.f32 %v2351_v21  ;;  %v1542_v42 = vand.u32 8388607, %v1535_v7  ;;  %v3992_v24 = vrot.slane %v3987_v13, 7 }
  0x85   : > { %v766_v40 = vshll.u32 %v8253_v19, 30  ;;  %v1547_v63 = vsel %vm1546_vm2, %v1545_v14, 0  ;;  %7589 = vsinq.f32 %v2351_v21  ;;  %v2371_v9 = vshrl.u32 %v2370_v15, 23 }
  0x86   : > { %v1549_v11 = vand.u32 31, %v1547_v63  ;;  %v1948_v10 = vsel %vm1941_vm14, %v1944_v8, %v1947_v20  ;;  %vm4121_vm1 = vcmask 1040384   ;;  %vm10730_vm3 = vcmask 1043456  }
  0x87   : > { %v8262_v52 = vsub.s32 %v763_v5, %v766_v40  ;;  %vm2359_vm4 = vcmp.eq.s32.totalorder %v8245_v1, 0  ;;  %vm2362_vm5 = vcmp.eq.s32.totalorder %v8245_v1, 2  ;;  %vm2774_vm6 = vcmp.eq.s32.totalorder %v8242_v48, 0 }
  0x88   : > { %v1550_v58 = vsub.s32 32, %v1549_v11  ;;  %vm2358_vm7 = vcmp.lt.s32.totalorder %v8245_v1, 2  ;;  %vm2773_vm8 = vcmp.lt.s32.totalorder %v8242_v48, 2  ;;  %vm2777_vm10 = vcmp.eq.s32.totalorder %v8242_v48, 2 }
  0x89   : > { %v8271_v35 = vsel %vm10725_vm13, %v4105_v18, %v3968_v17  ;;  %v769_v36 = vsub.s32 0, %v8262_v52  ;;  %v1543_v43 = vor.u32 8388608, %v1542_v42  ;;  %v8276_v23 = vsel %vm1523_vm9, nan, %v1948_v10 }
  0x8a   : > { %vm2355_vm11 = vweird.f32 %v7920_v4  ;;  %v4123_v39 = vsel %vm4121_vm1, %v3968_v17, %v3992_v24  ;;  %v759_v46 = vadd.s32 %v8207_v44, %v8198_v31  ;;  %v7270_v47 = vadd.s32 4294967169, %v2371_v9 }
  0x8b   : > { %v7207_v45 = vmin.u32 %v769_v36, %v8262_v52  ;;  %v8283_v50 = vshrl.u32 %v1547_v63, 5  ;;  %v1552_v25 = vshll.u32 %v7753_v26, %v1549_v11  ;;  %v1553_v51 = vshrl.u32 %v7754_v28, %v1550_v58 }
  0x8c   : > { %v1555_v3 = vshll.u32 %v7754_v28, %v1549_v11  ;;  %v1556_v53 = vshrl.u32 %v7755_v30, %v1550_v58  ;;  %v1558_v33 = vshll.u32 %v7755_v30, %v1549_v11  ;;  %v1559_v55 = vshrl.u32 %v7756_v32, %v1550_v58 }
  0x8d   : > { %v4132_v31 = vsel %vm10730_vm3, %v4123_v39, %v8276_v23  ;;  %v771_v44 = vclz %v7207_v45  ;;  %v8293_v57 = vshll.u32 %v1543_v43, 8  ;;  %v2367_v22 = vand.u32 2147483647, %v8233_v60 }
  0x8e   : > { %v1551_v59 = vshrl.u32 %v7753_v26, %v1550_v58  ;;  %v1561_v61 = vshll.u32 %v7756_v32, %v1549_v11  ;;  %v1562_v49 = vshrl.u32 %v7757_v34, %v1550_v58  ;;  %v2377_v37 = vadd.s32 1, %v7270_v47  ;;  %v7588_v2 = vpop.eup %7587 }
  0x8f   : > { %vm10724_vm9 = vcmask 1046528   ;;  %v7208_v5 = vadd.s32 4294967294, %v771_v44  ;;  %v1554_v0 = vor.u32 %v1553_v51, %v1552_v25  ;;  %v1564_v6 = vshll.u32 %v7757_v34, %v1549_v11  ;;  %v7590_v13 = vpop.eup %7589 }
  0x90   : > { %v1565_v54 = vshrl.u32 %v7758_v41, %v1550_v58  ;;  %v2363_v14 = vxor.u32 2147483648, %v7588_v2  ;;  %v1557_v15 = vor.u32 %v1556_v53, %v1555_v3  ;;  %v1560_v16 = vor.u32 %v1559_v55, %v1558_v33 }
  0x91   : > { %vm1567_vm14 = vcmp.lt.s32.totalorder %v8283_v50, 1  ;;  %v2360_v17 = vxor.u32 2147483648, %v7590_v13  ;;  %vm7209_vm15 = vcmp.lt.s32.totalorder %v7208_v5, 0  ;;  %vm1568_vm0 = vcmp.lt.s32.totalorder %v8283_v50, 2 }
  0x92   : > { %vm1569_vm2 = vcmp.lt.s32.totalorder %v8283_v50, 3  ;;  %v2364_v18 = vsel %vm2362_vm5, %v2363_v14, %v7590_v13  ;;  %v2779_v8 = vsel %vm2777_vm10, %v2363_v14, %v7590_v13  ;;  %v774_v20 = vsel %vm7209_vm15, 0, %v7208_v5 }
  0x93   : > { %v1563_v21 = vor.u32 %v1562_v49, %v1561_v61  ;;  %v2361_v40 = vsel %vm2359_vm4, %v7588_v2, %v2360_v17  ;;  %v2776_v42 = vsel %vm2774_vm6, %v7588_v2, %v2360_v17  ;;  %v775_v63 = vsub.s32 32, %v774_v20 }
  0x94   : > { %v1566_v24 = vor.u32 %v1565_v54, %v1564_v6  ;;  %v2365_v11 = vsel %vm2358_vm7, %v2361_v40, %v2364_v18  ;;  %v2780_v9 = vsel %vm2773_vm8, %v2776_v42, %v2779_v8  ;;  %v779_v10 = vsub.s32 4294967266, %v774_v20 }
  0x95   : > { %vm1570_vm5 = vcmp.lt.s32.totalorder %v8283_v50, 4  ;;  %v8319_v58 = vsel %vm2355_vm11, nan, %v2365_v11  ;;  %v8323_v36 = vsel %vm2355_vm11, nan, %v2780_v9  ;;  %v776_v43 = vshll.u32 %v8262_v52, %v774_v20 }
  0x96   : > { %v777_v39 = vshrl.u32 %v759_v46, %v775_v63  ;;  %v4023_v1 = vcombine.high %v8319_v58, %v8319_v58  ;;  %v780_v47 = vadd.s32 127, %v779_v10  ;;  %v1572_v48 = vsel %vm1570_vm5, %v1560_v16, 2102212464 }
  0x97   : > { %v1575_v45 = vsel %vm1567_vm14, %v1554_v0, %v1557_v15  ;;  %v1576_v25 = vsel %vm1570_vm5, %v1563_v21, 920167782  ;;  %v1579_v51 = vsel %vm1567_vm14, %v1557_v15, %v1560_v16  ;;  %v1580_v3 = vsel %vm1570_vm5, %v1566_v24, 1326507024 }
  0x98   : > { %v2374_v4 = vand.u32 8388607, %v2367_v22  ;;  %v8334_v53 = vrot.slane %v4023_v1, 1  ;;  %v781_v52 = vshll.u32 %v780_v47, 23  ;;  %v1571_v46 = vsel %vm1567_vm14, %v1551_v59, %v1554_v0 }
  0x99   : > { %v1577_v33 = vsel %vm1569_vm2, %v1560_v16, %v1576_v25  ;;  %v778_v55 = vor.u32 %v777_v39, %v776_v43  ;;  %v1573_v44 = vsel %vm1569_vm2, %v1557_v15, %v1572_v48  ;;  %v1581_v49 = vsel %vm1569_vm2, %v1563_v21, %v1580_v3 }
  0x9a   : > { %v1578_v61 = vsel %vm1568_vm0, %v1575_v45, %v1577_v33  ;;  %v4141_v2 = vsel %vm10724_vm9, %v4132_v31, %v8334_v53  ;;  %v782_v5 = vor.u32 4788187, %v781_v52  ;;  %v1582_v59 = vsel %vm1568_vm0, %v1579_v51, %v1581_v49 }
  0x9b   : > { %vm2378_vm4 = vcmp.gt.s32.totalorder %v2377_v37, 0  ;;  %v8351_v0 = vpack.c.bf16 %v4141_v2, %v8271_v35  ;;  %v8354_v6 = vmul.u32.u64.low %v8293_v57, %v1582_v59  ;;  %v8355_v54 = vmul.u32.u64.high %v8293_v57, %v1582_v59, %v8354_v6 }
  0x9c   : > { %v2379_v13 = vsel %vm2378_vm4, %v2377_v37, 0  ;;  %v1574_v14 = vsel %vm1568_vm0, %v1571_v46, %v1573_v44  ;;  %v8360_v15 = vmul.u32.u64.low %v8293_v57, %v1578_v61  ;;  %v8361_v16 = vmul.u32.u64.high %v8293_v57, %v1578_v61, %v8360_v15 }
  0x9d   : > { %4686 = vmatprep.subr.bf16.mxu0 %v8351_v0  ;;  %v783_v31 = vand.u32 2147483647, %v782_v5  ;;  %v785_v17 = vcvt.s32.f32 %v778_v55  ;;  %v2381_v18 = vand.u32 31, %v2379_v13  ;;  %v3991_v35 = vrot.slane %v8240_v56, 7 }
  0x9e   : > { %v4011_v8 = vcombine.low %v8276_v23, %v8276_v23  ;;  %v2375_v20 = vor.u32 8388608, %v2374_v4  ;;  %v2380_v37 = vshrl.u32 %v2379_v13, 5  ;;  %v1590_v50 = vmul.u32 %v8293_v57, %v1574_v14  ;;  %v7683_v13 = vld [vmem:[%s7909_s21] sm:$0x77] }
  0x9f   : > { %vm1592_vm6 = vc.u32 %v8355_v54, %v8360_v15  ;;  %v2382_v21 = vsub.s32 32, %v2381_v18  ;;  %v2384_v40 = vshll.u32 %v7753_v26, %v2381_v18  ;;  %v1593_v42 = vadd.s32 1, %v8361_v16 }
  0xa0   : > { %v2387_v63 = vshll.u32 %v7754_v28, %v2381_v18  ;;  %v2390_v24 = vshll.u32 %v7755_v30, %v2381_v18  ;;  %v3943_v56 = vrot.slane %v8202_v29, 5  ;;  %v786_v11 = vmul.f32 %v785_v17, %v783_v31 }
  0xa1   : > { %v2385_v23 = vshrl.u32 %v7754_v28, %v2382_v21  ;;  %v2388_v9 = vshrl.u32 %v7755_v30, %v2382_v21  ;;  %v2391_v57 = vshrl.u32 %v7756_v32, %v2382_v21  ;;  %v1594_v10 = vsel %vm1592_vm6, %v1593_v42, %v8361_v16 }
  0xa2   : > { %v2393_v43 = vshll.u32 %v7756_v32, %v2381_v18  ;;  %v2394_v39 = vshrl.u32 %v7757_v34, %v2382_v21  ;;  %vm2399_vm7 = vcmp.lt.s32.totalorder %v2380_v37, 1  ;;  %v1595_v1 = vadd.s32 %v1594_v10, %v1590_v50 }
  0xa3   : > { %v2386_v47 = vor.u32 %v2385_v23, %v2384_v40  ;;  %v2389_v48 = vor.u32 %v2388_v9, %v2387_v63  ;;  %vm2400_vm8 = vcmp.lt.s32.totalorder %v2380_v37, 2  ;;  %v2392_v45 = vor.u32 %v2391_v57, %v2390_v24 }
  0xa4   : > { %v2395_v29 = vor.u32 %v2394_v39, %v2393_v43  ;;  %v2396_v25 = vshll.u32 %v7757_v34, %v2381_v18  ;;  %vm2401_vm10 = vcmp.lt.s32.totalorder %v2380_v37, 3  ;;  %v1596_v51 = vadd.s32 536870912, %v1595_v1 }
  0xa5   : > { %v2383_v3 = vshrl.u32 %v7753_v26, %v2382_v21  ;;  %v2397_v4 = vshrl.u32 %v7758_v41, %v2382_v21  ;;  %vm2402_vm11 = vcmp.lt.s32.totalorder %v2380_v37, 4  ;;  %v2407_v52 = vsel %vm2399_vm7, %v2386_v47, %v2389_v48 }
  0xa6   : > { %v2408_v46 = vsel %vm2402_vm11, %v2395_v29, 920167782  ;;  %v2415_v33 = vshll.u32 %v2375_v20, 8  ;;  %v3967_v55 = vrot.slane %v8216_v38, 2  ;;  %v8388_v44 = vshrl.u32 %v1596_v51, 30 }
  0xa7   : > { %v2398_v61 = vor.u32 %v2397_v4, %v2396_v25  ;;  %v2404_v49 = vsel %vm2402_vm11, %v2392_v45, 2102212464  ;;  %v2409_v2 = vsel %vm2401_vm10, %v2392_v45, %v2408_v46  ;;  %v2411_v59 = vsel %vm2399_vm7, %v2389_v48, %v2392_v45 }
  0xa8   : > { %v2410_v5 = vsel %vm2400_vm8, %v2407_v52, %v2409_v2  ;;  %v4027_v6 = vrot.slane %v8319_v58, 1  ;;  %v4104_v14 = vsel %vm4103_vm12, %v7683_v13, %v3943_v56  ;;  %v787_v16 = vxor.u32 2147483648, %v786_v11 }
  0xa9   : > { %v1598_v31 = vshll.u32 %v8388_v44, 30  ;;  %v2403_v38 = vsel %vm2399_vm7, %v2383_v3, %v2386_v47  ;;  %v2412_v17 = vsel %vm2402_vm11, %v2398_v61, 1326507024  ;;  %v2405_v18 = vsel %vm2401_vm10, %v2389_v48, %v2404_v49 }
  0xaa   : > { %v2413_v20 = vsel %vm2401_vm10, %v2395_v29, %v2412_v17  ;;  %v8402_v50 = vmul.u32.u64.low %v2415_v33, %v2410_v5  ;;  %v8403_v21 = vmul.u32.u64.high %v2415_v33, %v2410_v5, %v8402_v50  ;;  %v4113_v63 = vsel %vm10725_vm13, %v4104_v14, %v3967_v55 }
  0xab   : > { %v1599_v40 = vsub.s32 %v1595_v1, %v1598_v31  ;;  %v2414_v42 = vsel %vm2400_vm8, %v2411_v59, %v2413_v20  ;;  %v4122_v24 = vsel %vm4121_vm1, %v3967_v55, %v3991_v35  ;;  %vm705_vm14 = vcmp.lt.s32.totalorder %v8003_v62, 0 }
  0xac   : > { %v8410_v56 = vmul.u32.u64.low %v2415_v33, %v2414_v42  ;;  %v8411_v23 = vmul.u32.u64.high %v2415_v33, %v2414_v42, %v8410_v56  ;;  %v4131_v9 = vsel %vm10730_vm3, %v4122_v24, %v4011_v8  ;;  %v2406_v43 = vsel %vm2400_vm8, %v2403_v38, %v2405_v18 }
  0xad   : > { %v1601_v57 = vsub.s32 0, %v1599_v40  ;;  %v4140_v10 = vsel %vm10724_vm9, %v4131_v9, %v4027_v6  ;;  %vm8422_vm15 = vcmp.le.f32.partialorder %v703_v27, 0.7853982  ;;  %v788_v1 = vsel %vm705_vm14, %v787_v16, %v786_v11 }
  0xae   : > { %v8418_v39 = vpack.c.bf16 %v4140_v10, %v4113_v63  ;;  %v789_v8 = vsub.s32 4, %v8253_v19  ;;  %v2425_v48 = vadd.s32 1, %v8403_v21  ;;  %v2422_v45 = vmul.u32 %v2415_v33, %v2406_v43 }
  0xaf   : > { %v7239_v47 = vmin.u32 %v1601_v57, %v1599_v40  ;;  %v791_v29 = vsel %vm8422_vm15, %v8003_v62, %v788_v1  ;;  %vm2424_vm0 = vc.u32 %v8411_v23, %v8402_v50  ;;  %v4047_v11 = vcombine.high %v8323_v36, %v8323_v36 }
  0xb0   : > { %4687 = vmatpush1.bf16.msra.mxu0 %v8418_v39  ;;  %v790_v25 = vsel %vm705_vm14, %v789_v8, %v8253_v19  ;;  %v2426_v51 = vsel %vm2424_vm0, %v2425_v48, %v8403_v21  ;;  %7591 = vcosq.f32 %v791_v29  ;;  %v1591_v3 = vadd.s32 %v8360_v15, %v8355_v54 }
  0xb1   : > { %v1603_v37 = vclz %v7239_v47  ;;  %v2427_v4 = vadd.s32 %v2426_v51, %v2422_v45  ;;  %7593 = vsinq.f32 %v791_v29  ;;  %v1621_v46 = vsub.s32 4, %v8388_v44 }
  0xb2   : > { %v8445_v33 = vmul.f32 8.0, %v7683_v13  ;;  %v4052_v62 = vrot.slane %v4047_v11, 6  ;;  %v792_v19 = vsel %vm8422_vm15, 0, %v790_v25  ;;  %vm1537_vm5 = vcmp.lt.s32.totalorder %v8105_v12, 0 }
  0xb3   : > { %v7240_v27 = vadd.s32 4294967294, %v1603_v37  ;;  %v2428_v2 = vadd.s32 536870912, %v2427_v4  ;;  %vm10723_vm4 = vcmask 1041408   ;;  %v1622_v59 = vsel %vm1537_vm5, %v1621_v46, %v8388_v44 }
  0xb4   : > { %v3098_v13 = vand.u32 2139095040, %v8445_v33  ;;  %v796_v14 = vadd.s32 3, %v792_v19  ;;  %vm8459_vm6 = vcmp.le.f32.partialorder %v1535_v7, 0.7853982  ;;  %v8465_v20 = vsel %vm10723_vm4, %v8334_v53, %v4052_v62 }
  0xb5   : > { %vm7241_vm2 = vcmp.lt.s32.totalorder %v7240_v27, 0  ;;  %v8450_v15 = vshrl.u32 %v2428_v2, 30  ;;  %v3095_v63 = vand.u32 2147483647, %v8445_v33  ;;  %v8476_v9 = vand.u32 3, %v792_v19 }
  0xb6   : > { %v1606_v52 = vsel %vm7241_vm2, 0, %v7240_v27  ;;  %v3099_v18 = vshrl.u32 %v3098_v13, 23  ;;  %v8474_v7 = vand.u32 3, %v796_v14  ;;  %vm2369_vm0 = vcmp.lt.s32.totalorder %v8233_v60, 0 }
  0xb7   : > { %v1607_v55 = vsub.s32 32, %v1606_v52  ;;  %v1608_v61 = vshll.u32 %v1599_v40, %v1606_v52  ;;  %v1611_v49 = vsub.s32 4294967266, %v1606_v52  ;;  %v2430_v38 = vshll.u32 %v8450_v15, 30 }
  0xb8   : > { %v1624_v40 = vsel %vm8459_vm6, 0, %v1622_v59  ;;  %v7298_v24 = vadd.s32 4294967169, %v3099_v18  ;;  %v3102_v48 = vand.u32 8388607, %v3095_v63  ;;  %vm802_vm8 = vcmp.eq.s32.totalorder %v8474_v7, 2 }
  0xb9   : > { %v1609_v5 = vshrl.u32 %v1591_v3, %v1607_v55  ;;  %v1612_v54 = vadd.s32 127, %v1611_v49  ;;  %v8469_v42 = vsub.s32 %v2427_v4, %v2430_v38  ;;  %v1628_v43 = vadd.s32 3, %v1624_v40 }
  0xba   : > { %v8472_v56 = vpop.eup %7591  ;;  %v3105_v35 = vadd.s32 1, %v7298_v24  ;;  %vm1216_vm10 = vcmp.eq.s32.totalorder %v8476_v9, 2  ;;  %v8490_v11 = vand.u32 3, %v1624_v40  ;;  %v2423_v3 = vadd.s32 %v8402_v50, %v8411_v23 }
  0xbb   : > { %v1610_v16 = vor.u32 %v1609_v5, %v1608_v61  ;;  %v1613_v31 = vshll.u32 %v1612_v54, 23  ;;  %v2433_v53 = vsub.s32 0, %v8469_v42  ;;  %v8479_v10 = vpop.eup %7593  ;;  %v803_v8 = vxor.u32 2147483648, %v8472_v56 }
  0xbc   : > { %vm3106_vm7 = vcmp.gt.s32.totalorder %v3105_v35, 0  ;;  %v800_v29 = vxor.u32 2147483648, %v8479_v10  ;;  %v8488_v27 = vand.u32 3, %v1628_v43  ;;  %v3103_v49 = vor.u32 8388608, %v3102_v48 }
  0xbd   : > { %v1614_v21 = vor.u32 4788187, %v1613_v31  ;;  %v1617_v44 = vcvt.s32.f32 %v1610_v16  ;;  %v7271_v47 = vmin.u32 %v2433_v53, %v8469_v42  ;;  %v3107_v25 = vsel %vm3106_vm7, %v3105_v35, 0 }
  0xbe   : > { %v3109_v52 = vand.u32 31, %v3107_v25  ;;  %v8497_v46 = vsel %vm802_vm8, %v803_v8, %v8479_v10  ;;  %v8500_v55 = vsel %vm1216_vm10, %v803_v8, %v8479_v10  ;;  %v3108_v13 = vshrl.u32 %v3107_v25, 5 }
  0xbf   : > { %v1615_v57 = vand.u32 2147483647, %v1614_v21  ;;  %v2435_v45 = vclz %v7271_v47  ;;  %vm799_vm14 = vcmp.eq.s32.totalorder %v8474_v7, 0  ;;  %vm1213_vm15 = vcmp.eq.s32.totalorder %v8476_v9, 0 }
  0xc0   : > { %v3110_v2 = vsub.s32 32, %v3109_v52  ;;  %v3112_v62 = vshll.u32 %v7753_v26, %v3109_v52  ;;  %v3115_v23 = vshll.u32 %v7754_v28, %v3109_v52  ;;  %v3118_v19 = vshll.u32 %v7755_v30, %v3109_v52 }
  0xc1   : > { %v1618_v1 = vmul.f32 %v1617_v44, %v1615_v57  ;;  %v7272_v4 = vadd.s32 4294967294, %v2435_v45  ;;  %v3121_v38 = vshll.u32 %v7756_v32, %v3109_v52  ;;  %v3124_v44 = vshll.u32 %v7757_v34, %v3109_v52 }
  0xc2   : > { %v3113_v14 = vshrl.u32 %v7754_v28, %v3110_v2  ;;  %v3116_v16 = vshrl.u32 %v7755_v30, %v3110_v2  ;;  %v3119_v31 = vshrl.u32 %v7756_v32, %v3110_v2  ;;  %v3122_v21 = vshrl.u32 %v7757_v34, %v3110_v2 }
  0xc3   : > { %v1619_v37 = vxor.u32 2147483648, %v1618_v1  ;;  %vm7273_vm11 = vcmp.lt.s32.totalorder %v7272_v4, 0  ;;  %v3125_v57 = vshrl.u32 %v7758_v41, %v3110_v2  ;;  %vm798_vm2 = vcmp.lt.s32.totalorder %v8474_v7, 2 }
  0xc4   : > { %v2438_v50 = vsel %vm7273_vm11, 0, %v7272_v4  ;;  %v3114_v40 = vor.u32 %v3113_v14, %v3112_v62  ;;  %v3120_v24 = vor.u32 %v3119_v31, %v3118_v19  ;;  %vm3127_vm7 = vcmp.lt.s32.totalorder %v3108_v13, 1 }
  0xc5   : > { %v1620_v51 = vsel %vm1537_vm5, %v1619_v37, %v1618_v1  ;;  %v2439_v5 = vsub.s32 32, %v2438_v50  ;;  %v2440_v54 = vshll.u32 %v8469_v42, %v2438_v50  ;;  %v2443_v59 = vsub.s32 4294967266, %v2438_v50 }
  0xc6   : > { %v1623_v61 = vsel %vm8459_vm6, %v8105_v12, %v1620_v51  ;;  %v3117_v42 = vor.u32 %v3116_v16, %v3115_v23  ;;  %vm1212_vm5 = vcmp.lt.s32.totalorder %v8476_v9, 2  ;;  %vm8523_vm6 = vcmp.le.f32.partialorder %v2367_v22, 0.7853982  ;;  %v8529_v51 = vld [vmem:[%s7909_s21 + $0x8] sm:$0x77] }
  0xc7   : > { %7595 = vcosq.f32 %v1623_v61  ;;  %v2441_v17 = vshrl.u32 %v2423_v3, %v2439_v5  ;;  %v2444_v18 = vadd.s32 127, %v2443_v59  ;;  %v3123_v1 = vor.u32 %v3122_v21, %v3121_v38 }
  0xc8   : > { %7597 = vsinq.f32 %v1623_v61  ;;  %v3111_v47 = vshrl.u32 %v7753_v26, %v3110_v2  ;;  %v3126_v8 = vor.u32 %v3125_v57, %v3124_v44  ;;  %vm3129_vm8 = vcmp.lt.s32.totalorder %v3108_v13, 3 }
  0xc9   : > { %v2442_v43 = vor.u32 %v2441_v17, %v2440_v54  ;;  %v2445_v35 = vshll.u32 %v2444_v18, 23  ;;  %vm3130_vm10 = vcmp.lt.s32.totalorder %v3108_v13, 4  ;;  %v3143_v25 = vshll.u32 %v3103_v49, 8 }
  0xca   : > { %v3132_v45 = vsel %vm3130_vm10, %v3120_v24, 2102212464  ;;  %vm795_vm11 = vweird.f32 %v8529_v51  ;;  %vm3128_vm4 = vcmp.lt.s32.totalorder %v3108_v13, 2  ;;  %v3135_v22 = vsel %vm3127_vm7, %v3114_v40, %v3117_v42 }
  0xcb   : > { %v2446_v48 = vor.u32 4788187, %v2445_v35  ;;  %v2449_v37 = vcvt.s32.f32 %v2442_v43  ;;  %v3136_v3 = vsel %vm3130_vm10, %v3123_v1, 920167782  ;;  %v3139_v4 = vsel %vm3127_vm7, %v3117_v42, %v3120_v24 }
  0xcc   : > { %v2453_v2 = vsub.s32 4, %v8450_v15  ;;  %v3137_v62 = vsel %vm3129_vm8, %v3120_v24, %v3136_v3  ;;  %v3140_v50 = vsel %vm3130_vm10, %v3126_v8, 1326507024  ;;  %v3131_v49 = vsel %vm3127_vm7, %v3111_v47, %v3114_v40 }
  0xcd   : > { %v2447_v61 = vand.u32 2147483647, %v2446_v48  ;;  %v3133_v5 = vsel %vm3129_vm8, %v3117_v42, %v3132_v45  ;;  %v3141_v54 = vsel %vm3129_vm8, %v3123_v1, %v3140_v50  ;;  %v3138_v16 = vsel %vm3128_vm4, %v3135_v22, %v3137_v62 }
  0xce   : > { %v3142_v31 = vsel %vm3128_vm4, %v3139_v4, %v3141_v54  ;;  %vm1631_vm9 = vcmp.eq.s32.totalorder %v8488_v27, 0  ;;  %vm1634_vm13 = vcmp.eq.s32.totalorder %v8488_v27, 2  ;;  %v801_v18 = vsel %vm799_vm14, %v8472_v56, %v800_v29 }
  0xcf   : > { %v2450_v14 = vmul.f32 %v2449_v37, %v2447_v61  ;;  %v8543_v38 = vmul.u32.u64.low %v3143_v25, %v3142_v31  ;;  %v8544_v17 = vmul.u32.u64.high %v3143_v25, %v3142_v31, %v8543_v38  ;;  %v1215_v21 = vsel %vm1213_vm15, %v8472_v56, %v800_v29 }
  0xd0   : > { %v2454_v40 = vsel %vm2369_vm0, %v2453_v2, %v8450_v15  ;;  %vm2045_vm7 = vcmp.eq.s32.totalorder %v8490_v11, 0  ;;  %v3134_v42 = vsel %vm3128_vm4, %v3131_v49, %v3133_v5  ;;  %vm1630_vm14 = vcmp.lt.s32.totalorder %v8488_v27, 2 }
  0xd1   : > { %v7596_v52 = vpop.eup %7595  ;;  %v2451_v44 = vxor.u32 2147483648, %v2450_v14  ;;  %v8561_v24 = vmul.u32.u64.low %v3143_v25, %v3138_v16  ;;  %v8562_v57 = vmul.u32.u64.high %v3143_v25, %v3138_v16, %v8561_v24  ;;  %v805_v29 = vsel %vm798_vm2, %v801_v18, %v8497_v46 }
  0xd2   : > { %v7598_v23 = vpop.eup %7597  ;;  %v1635_v19 = vxor.u32 2147483648, %v7596_v52  ;;  %v1219_v15 = vsel %vm1212_vm5, %v1215_v21, %v8500_v55  ;;  %v2456_v27 = vsel %vm8523_vm6, 0, %v2454_v40  ;;  %v3150_v35 = vmul.u32 %v3143_v25, %v3134_v42 }
  0xd3   : > { %v1632_v59 = vxor.u32 2147483648, %v7598_v23  ;;  %v2452_v56 = vsel %vm2369_vm0, %v2451_v44, %v2450_v14  ;;  %vm1627_vm4 = vweird.f32 %v8105_v12  ;;  %v3153_v9 = vadd.s32 1, %v8562_v57 }
  0xd4   : > { %v1636_v43 = vsel %vm1634_vm13, %v1635_v19, %v7598_v23  ;;  %v2455_v13 = vsel %vm8523_vm6, %v8233_v60, %v2452_v56  ;;  %vm2048_vm13 = vcmp.eq.s32.totalorder %v8490_v11, 2  ;;  %v806_v46 = vsel %vm795_vm11, nan, %v805_v29 }
  0xd5   : > { %v1633_v10 = vsel %vm1631_vm9, %v7596_v52, %v1632_v59  ;;  %7599 = vcosq.f32 %v2455_v13  ;;  %vm3152_vm9 = vc.u32 %v8544_v17, %v8561_v24  ;;  %v1220_v55 = vsel %vm795_vm11, nan, %v1219_v15 }
  0xd6   : > { %v1637_v7 = vsel %vm1630_vm14, %v1633_v10, %v1636_v43  ;;  %7601 = vsinq.f32 %v2455_v13  ;;  %v2460_v53 = vadd.s32 3, %v2456_v27  ;;  %vm2044_vm15 = vcmp.lt.s32.totalorder %v8490_v11, 2 }
  0xd7   : > { %v2047_v1 = vsel %vm2045_vm7, %v7596_v52, %v1632_v59  ;;  %v2050_v47 = vsel %vm2048_vm13, %v1635_v19, %v7598_v23  ;;  %v3154_v8 = vsel %vm3152_vm9, %v3153_v9, %v8562_v57  ;;  %v1638_v48 = vsel %vm1627_vm4, nan, %v1637_v7 }
  0xd8   : > { %v3155_v37 = vadd.s32 %v3154_v8, %v3150_v35  ;;  %v3940_v45 = vcombine.high %v806_v46, %v806_v46  ;;  %v3964_v25 = vcombine.high %v1220_v55, %v1220_v55  ;;  %v2051_v22 = vsel %vm2044_vm15, %v2047_v1, %v2050_v47 }
  0xd9   : > { %v2461_v3 = vand.u32 3, %v2460_v53  ;;  %v2875_v4 = vand.u32 3, %v2456_v27  ;;  %v3988_v2 = vcombine.high %v1638_v48, %v1638_v48  ;;  %v3928_v62 = vcombine.high %v8529_v51, %v8529_v51 }
  0xda   : > { %v3156_v61 = vadd.s32 536870912, %v3155_v37  ;;  %v3945_v50 = vrot.slane %v806_v46, 5  ;;  %v3969_v11 = vrot.slane %v1220_v55, 2  ;;  %v2052_v23 = vsel %vm1627_vm4, nan, %v2051_v22 }
  0xdb   : > { %v3946_v19 = vrot.slane %v3940_v45, 5  ;;  %v3970_v49 = vrot.slane %v3964_v25, 2  ;;  %v3993_v5 = vrot.slane %v1638_v48, 7  ;;  %vm2466_vm0 = vcmp.eq.s32.totalorder %v2461_v3, 2 }
  0xdc   : > { %v8596_v52 = vshrl.u32 %v3156_v61, 30  ;;  %vm2876_vm2 = vcmp.lt.s32.totalorder %v2875_v4, 2  ;;  %vm2880_vm5 = vcmp.eq.s32.totalorder %v2875_v4, 2  ;;  %vm2463_vm6 = vcmp.eq.s32.totalorder %v2461_v3, 0 }
  0xdd   : > { %vm2877_vm8 = vcmp.eq.s32.totalorder %v2875_v4, 0  ;;  %v3994_v31 = vrot.slane %v3988_v2, 7  ;;  %vm2462_vm10 = vcmp.lt.s32.totalorder %v2461_v3, 2  ;;  %v4012_v18 = vcombine.low %v2052_v23, %v2052_v23 }
  0xde   : > { %v3158_v59 = vshll.u32 %v8596_v52, 30  ;;  %vm2459_vm11 = vweird.f32 %v8233_v60  ;;  %v4124_v40 = vsel %vm4121_vm1, %v3969_v11, %v3993_v5  ;;  %v4106_v10 = vsel %vm4103_vm12, %v8529_v51, %v3945_v50 }
  0xdf   : > { %v7600_v54 = vpop.eup %7599  ;;  %v4107_v15 = vsel %vm4103_vm12, %v3928_v62, %v3946_v19  ;;  %v4125_v13 = vsel %vm4121_vm1, %v3970_v49, %v3994_v31  ;;  %v4133_v60 = vsel %vm10730_vm3, %v4124_v40, %v4012_v18  ;;  %vm10754_vm7 = vcmask 1045504  }
  0xe0   : > { %v7602_v14 = vpop.eup %7601  ;;  %v2467_v16 = vxor.u32 2147483648, %v7600_v54  ;;  %v3159_v21 = vsub.s32 %v3155_v37, %v3158_v59  ;;  %v4134_v55 = vsel %vm10730_vm3, %v4125_v13, %v2052_v23  ;;  %v4115_v53 = vsel %vm10754_vm7, %v4106_v10, %v3969_v11  ;;  %vm10755_vm14 = vmmov %vm10754_vm7 }
  0xe1   : > { %v2464_v38 = vxor.u32 2147483648, %v7602_v14  ;;  %v4116_v8 = vsel %vm10755_vm14, %v4107_v15, %v3970_v49  ;;  %vm10756_vm13 = vcmask 1046528   ;;  %v3151_v3 = vadd.s32 %v8561_v24, %v8544_v17 }
  0xe2   : > { %v2468_v12 = vsel %vm2466_vm0, %v2467_v16, %v7602_v14  ;;  %v2882_v44 = vsel %vm2880_vm5, %v2467_v16, %v7602_v14  ;;  %v3161_v43 = vsub.s32 0, %v3159_v21  ;;  %vm10757_vm9 = vmmov %vm10756_vm13  ;;  %v3181_v17 = vsub.s32 4, %v8596_v52 }
  0xe3   : > { %v2465_v42 = vsel %vm2463_vm6, %v7600_v54, %v2464_v38  ;;  %v2879_v57 = vsel %vm2877_vm8, %v7600_v54, %v2464_v38  ;;  %vm10758_vm15 = vcmask 1041408   ;;  %vm3096_vm5 = vcmp.le.f32.partialorder %v3095_v63, 0.7853982 }
  0xe4   : > { %v2469_v56 = vsel %vm2462_vm10, %v2465_v42, %v2468_v12  ;;  %v2883_v29 = vsel %vm2876_vm2, %v2879_v57, %v2882_v44  ;;  %v7299_v7 = vmin.u32 %v3161_v43, %v3159_v21  ;;  %vm10759_vm0 = vmmov %vm10758_vm15  ;;  %vm3097_vm2 = vcmp.lt.s32.totalorder %v8445_v33, 0 }
  0xe5   : > { %v2470_v27 = vsel %vm2459_vm11, nan, %v2469_v56  ;;  %v2884_v35 = vsel %vm2459_vm11, nan, %v2883_v29  ;;  %v10727_v12 = vmov 0   ;;  %v8639_v63 = vmul.f32 8.0, %v8529_v51 }
  0xe6   : > { %v4024_v9 = vcombine.high %v2470_v27, %v2470_v27  ;;  %v4029_v46 = vrot.slane %v2470_v27, 1  ;;  %v3163_v1 = vclz %v7299_v7  ;;  %v4048_v61 = vcombine.high %v2884_v35, %v2884_v35  ;;  %4718 = vmatprep.mubr.bf16.mxu0 %v10727_v12  ;;  %4771 = vmatprep.mubr.bf16.mxu1 %v10727_v12 }
  0xe7   : > { %v4053_v19 = vrot.slane %v2884_v35, 6  ;;  %7558 = vset.pattern.permute.xlu0 %v10727_v12  ;;  %7559 = vset.pattern.permute.xlu1 %v10727_v12  ;;  %v3202_v43 = vand.u32 2139095040, %v8639_v63 }
  0xe8   : > { %v4030_v47 = vrot.slane %v4024_v9, 1  ;;  %v4142_v48 = vsel %vm10756_vm13, %v4133_v60, %v4029_v46  ;;  %v7300_v37 = vadd.s32 4294967294, %v3163_v1  ;;  %v4054_v49 = vrot.slane %v4048_v61, 6 }
  0xe9   : > { %v8614_v25 = vpack.c.bf16 %v4142_v48, %v4115_v53  ;;  %v8627_v31 = vsel %vm10759_vm0, %v4029_v46, %v4053_v19  ;;  %v3203_v29 = vshrl.u32 %v3202_v43, 23  ;;  %vm3187_vm13 = vweird.f32 %v8445_v33 }
  0xea   : > { %v4143_v45 = vsel %vm10757_vm9, %v4134_v55, %v4030_v47  ;;  %vm7301_vm4 = vcmp.lt.s32.totalorder %v7300_v37, 0  ;;  %v8624_v24 = vsel %vm10758_vm15, %v4030_v47, %v4054_v49  ;;  %vm4157_vm9 = vcmask 1044480  }
  0xeb   : > { %v8616_v22 = vpack.c.bf16 %v4143_v45, %v4116_v8  ;;  %v3166_v4 = vsel %vm7301_vm4, 0, %v7300_v37  ;;  %v7302_v9 = vadd.s32 4294967169, %v3203_v29  ;;  %v10726_v48 = vmov 65535  }
  0xec   : > { %v3167_v2 = vsub.s32 32, %v3166_v4  ;;  %v3168_v62 = vshll.u32 %v3159_v21, %v3166_v4  ;;  %v3171_v50 = vsub.s32 4294967266, %v3166_v4  ;;  %v3182_v21 = vsel %vm3097_vm2, %v3181_v17, %v8596_v52 }
  0xed   : > { %4739 = vmatprep.subr.bf16.mxu1 %v8616_v22  ;;  %v3184_v42 = vsel %vm3096_vm5, 0, %v3182_v21  ;;  %v4660_v37 = vsel %vm4157_vm9, 4294967295, %v10726_v48  ;;  %v3209_v45 = vadd.s32 1, %v7302_v9  ;;  %vm10760_vm15 = vcmask 1045504  }
  0xee   : > { %4740 = vmatpush1.bf16.msra.mxu1 %v8614_v25  ;;  %v3169_v11 = vshrl.u32 %v3151_v3, %v3167_v2  ;;  %v3172_v23 = vadd.s32 127, %v3171_v50  ;;  %v3188_v57 = vadd.s32 3, %v3184_v42  ;;  %v3604_v10 = vand.u32 3, %v3184_v42 }
  0xef   : > { %vm3210_vm4 = vcmp.gt.s32.totalorder %v3209_v45, 0  ;;  %v8648_v4 = vsel %vm10760_vm15, %v4660_v37, 0  ;;  %v3199_v61 = vand.u32 2147483647, %v8639_v63  ;;  %v4051_v19 = vrot.slane %v8323_v36, 6 }
  0xf0   : > { %v3170_v5 = vor.u32 %v3169_v11, %v3168_v62  ;;  %v3173_v54 = vshll.u32 %v3172_v23, 23  ;;  %v3189_v52 = vand.u32 3, %v3188_v57  ;;  %vm3609_vm8 = vcmp.eq.s32.totalorder %v3604_v10, 2 }
  0xf1   : > { %vm3606_vm11 = vcmp.eq.s32.totalorder %v3604_v10, 0  ;;  %vm3605_vm14 = vcmp.lt.s32.totalorder %v3604_v10, 2  ;;  %v3211_v2 = vsel %vm3210_vm4, %v3209_v45, 0  ;;  %v3206_v49 = vand.u32 8388607, %v3199_v61 }
  0xf2   : > { %v3174_v59 = vor.u32 4788187, %v3173_v54  ;;  %v3177_v14 = vcvt.s32.f32 %v3170_v5  ;;  %vm3194_vm6 = vcmp.eq.s32.totalorder %v3189_v52, 2  ;;  %vm3191_vm10 = vcmp.eq.s32.totalorder %v3189_v52, 0 }
  0xf3   : > { %vm3190_vm7 = vcmp.lt.s32.totalorder %v3189_v52, 2  ;;  %v3213_v50 = vand.u32 31, %v3211_v2  ;;  %v3207_v10 = vor.u32 8388608, %v3206_v49 }
  0xf4   : > { %v3175_v16 = vand.u32 2147483647, %v3174_v59 }
  0xf5   : > { %v3214_v23 = vsub.s32 32, %v3213_v50  ;;  %v3225_v5 = vshll.u32 %v7756_v32, %v3213_v50  ;;  %v3216_v54 = vshll.u32 %v7753_v26, %v3213_v50  ;;  %v3222_v17 = vshll.u32 %v7755_v30, %v3213_v50 }
  0xf6   : > { %v3178_v38 = vmul.f32 %v3177_v14, %v3175_v16  ;;  %v3219_v14 = vshll.u32 %v7754_v28, %v3213_v50  ;;  %v3228_v21 = vshll.u32 %v7757_v34, %v3213_v50 }
  0xf7   : > { %v3217_v59 = vshrl.u32 %v7754_v28, %v3214_v23  ;;  %v3220_v16 = vshrl.u32 %v7755_v30, %v3214_v23  ;;  %v3223_v36 = vshrl.u32 %v7756_v32, %v3214_v23  ;;  %v3229_v57 = vshrl.u32 %v7758_v41, %v3214_v23 }
  0xf8   : > { %v3179_v18 = vxor.u32 2147483648, %v3178_v38 }
  0xf9   : > { %v3221_v42 = vor.u32 %v3220_v16, %v3219_v14  ;;  %v3224_v43 = vor.u32 %v3223_v36, %v3222_v17 }
  0xfa   : > { %v3180_v44 = vsel %vm3097_vm2, %v3179_v18, %v3178_v38  ;;  %v3226_v38 = vshrl.u32 %v7757_v34, %v3214_v23 }
  0xfb   : > { %v3183_v40 = vsel %vm3096_vm5, %v8445_v33, %v3180_v44  ;;  %v4149_v44 = vsel %vm10759_vm0, %v4027_v6, %v4051_v19 }
  0xfc   : > { %7603 = vcosq.f32 %v3183_v40  ;;  %v3227_v18 = vor.u32 %v3226_v38, %v3225_v5 }
  0xfd   : > { %7605 = vsinq.f32 %v3183_v40  ;;  %v3218_v40 = vor.u32 %v3217_v59, %v3216_v54 }
 0x106   : > { %v7604_v56 = vpop.eup %7603 }
 0x107   : > { %v7606_v15 = vpop.eup %7605  ;;  %v3195_v13 = vxor.u32 2147483648, %v7604_v56 }
 0x108   : > { %v3192_v27 = vxor.u32 2147483648, %v7606_v15 }
 0x109   : > { %v3196_v35 = vsel %vm3194_vm6, %v3195_v13, %v7606_v15  ;;  %v3611_v51 = vsel %vm3609_vm8, %v3195_v13, %v7606_v15  ;;  %v3247_v13 = vshll.u32 %v3207_v10, 8 }
 0x10a   : > { %v3193_v60 = vsel %vm3191_vm10, %v7604_v56, %v3192_v27  ;;  %v3608_v7 = vsel %vm3606_vm11, %v7604_v56, %v3192_v27  ;;  %v3230_v56 = vor.u32 %v3229_v57, %v3228_v21  ;;  %v3215_v27 = vshrl.u32 %v7753_v26, %v3214_v23 }
 0x10b   : > { %v3197_v46 = vsel %vm3190_vm7, %v3193_v60, %v3196_v35  ;;  %v3612_v55 = vsel %vm3605_vm14, %v3608_v7, %v3611_v51  ;;  %vm10729_vm10 = vcmask 220160  }
 0x10c   : > { %v3198_v53 = vsel %vm3187_vm13, nan, %v3197_v46  ;;  %v3613_v1 = vsel %vm3187_vm13, nan, %v3612_v55 }
 0x10d   : > { %v4071_v47 = vcombine.high %v3198_v53, %v3198_v53  ;;  %v4095_v8 = vcombine.high %v3613_v1, %v3613_v1  ;;  %v4075_v52 = vrot.slane %v3198_v53, 3 }
 0x10f   : > { %v4076_v3 = vrot.slane %v4071_v47, 3  ;;  %v4158_v58 = vsel %vm4157_vm9, %v4149_v44, %v4075_v52 }
 0x110   : > { %v4174_v60 = vpack.c.bf16 %v3613_v1, %v4158_v58  ;;  %v8693_v1 = vld [vmem:[%s10761_s26] sm:$0xff]  }
 0x111   : > { %v4159_v33 = vsel %vm4157_vm9, %v8465_v20, %v4076_v3  ;;  %v3212_v20 = vshrl.u32 %v3211_v2, 5 }
 0x112   : > { %v4175_v62 = vpack.c.bf16 %v4095_v8, %v4159_v33  ;;  %v8683_v47 = vand.u32 %v8648_v4, %v4174_v60  ;;  %v8686_v8 = vld [vmem:[%s7909_s21 + $0x10] sm:$0x77] }
 0x113   : > { %vm3231_vm2 = vcmp.lt.s32.totalorder %v3212_v20, 1  ;;  %vm3234_vm5 = vcmp.lt.s32.totalorder %v3212_v20, 4  ;;  %vm3233_vm6 = vcmp.lt.s32.totalorder %v3212_v20, 3  ;;  %vm3232_vm8 = vcmp.lt.s32.totalorder %v3212_v20, 2  ;;  %v8711_v20 = vld [vmem:[%s10761_s26 + $0x8] sm:$0xff]  }
 0x114   : > { %v8652_v11 = vand.u32 %v8648_v4, %v4175_v62  ;;  %v3240_v29 = vsel %vm3234_vm5, %v3227_v18, 920167782  ;;  %v3239_v15 = vsel %vm3231_vm2, %v3218_v40, %v3221_v42  ;;  %v3244_v51 = vsel %vm3234_vm5, %v3230_v56, 1326507024 }
 0x115   : > { %v3241_v6 = vsel %vm3233_vm6, %v3224_v43, %v3240_v29  ;;  %v3236_v7 = vsel %vm3234_vm5, %v3224_v43, 2102212464  ;;  %v3243_v9 = vsel %vm3231_vm2, %v3221_v42, %v3224_v43  ;;  %v3245_v46 = vsel %vm3233_vm6, %v3227_v18, %v3244_v51 }
 0x116   : > { %4688 = vmatprep.subr.bf16.mxu0 %v8652_v11  ;;  %v3242_v35 = vsel %vm3232_vm8, %v3239_v15, %v3241_v6  ;;  %v3235_v37 = vsel %vm3231_vm2, %v3215_v27, %v3218_v40  ;;  %v3237_v45 = vsel %vm3233_vm6, %v3221_v42, %v3236_v7  ;;  %v810_v3 = vand.u32 2139095040, %v8686_v8 }
 0x117   : > { %v8678_v55 = vmul.u32.u64.low %v3247_v13, %v3242_v35  ;;  %v8679_v53 = vmul.u32.u64.high %v3247_v13, %v3242_v35, %v8678_v55  ;;  %v3246_v33 = vsel %vm3232_vm8, %v3243_v9, %v3245_v46  ;;  %4689 = vmatpush1.bf16.msra.mxu0 %v8683_v47  ;;  %v3238_v2 = vsel %vm3232_vm8, %v3235_v37, %v3237_v45 }
 0x118   : > { %v811_v62 = vshrl.u32 %v810_v3, 23  ;;  %v8699_v50 = vmul.u32.u64.low %v3247_v13, %v3246_v33  ;;  %v8700_v23 = vmul.u32.u64.high %v3247_v13, %v3246_v33, %v8699_v50  ;;  %v3254_v5 = vmul.u32 %v3247_v13, %v3238_v2 }
 0x119   : > { %v3257_v19 = vadd.s32 1, %v8679_v53  ;;  %v807_v16 = vand.u32 2147483647, %v8686_v8  ;;  %v8730_v15 = vmul.f32 2.0, %v8686_v8  ;;  %vm3201_vm5 = vcmp.lt.s32.totalorder %v8639_v63, 0 }
 0x11a   : > { %7348 = vmatmul.mubr.msk.bf16.vlgmr.msra.gmra.mrb[0].mxu0 %vm10729_vm10, %v8693_v1  ;;  %v7210_v49 = vadd.s32 4294967169, %v811_v62  ;;  %vm3256_vm11 = vc.u32 %v8700_v23, %v8678_v55  ;;  %vm8764_vm8 = vcmp.le.f32.partialorder %v3199_v61, 0.7853982 }
 0x11b   : > { %4728 = vmatprep.mubr.bf16.mxu0 %v10727_v12  ;;  %v3258_v59 = vsel %vm3256_vm11, %v3257_v19, %v8679_v53  ;;  %v814_v44 = vand.u32 8388607, %v807_v16  ;;  %v1642_v53 = vand.u32 2139095040, %v8730_v15 }
 0x11c   : > { %v817_v54 = vadd.s32 1, %v7210_v49  ;;  %v3259_v14 = vadd.s32 %v3258_v59, %v3254_v5 }
 0x11d   : > { %v815_v35 = vor.u32 8388608, %v814_v44  ;;  %v1643_v5 = vshrl.u32 %v1642_v53, 23 }
 0x11e   : > { %vm818_vm7 = vcmp.gt.s32.totalorder %v817_v54, 0  ;;  %v3260_v38 = vadd.s32 536870912, %v3259_v14 }
 0x11f   : > { %v819_v17 = vsel %vm818_vm7, %v817_v54, 0  ;;  %v855_v2 = vshll.u32 %v815_v35, 8 }
 0x120   : > { %v821_v36 = vand.u32 31, %v819_v17  ;;  %v8718_v21 = vshrl.u32 %v3260_v38, 30  ;;  %v820_v56 = vshrl.u32 %v819_v17, 5 }
 0x122   : > { %7349 = vmatmul.mubr.msk.bf16.gmra.mrb[4].mxu0 %vm10729_vm10, %v8711_v20  ;;  %v822_v18 = vsub.s32 32, %v821_v36  ;;  %v824_v40 = vshll.u32 %v7753_v26, %v821_v36  ;;  %v827_v57 = vshll.u32 %v7754_v28, %v821_v36  ;;  %v833_v10 = vshll.u32 %v7756_v32, %v821_v36 }
 0x123   : > { %4824 = vmatprep.mubr.bf16.mxu0 %v10727_v12  ;;  %v3262_v43 = vshll.u32 %v8718_v21, 30  ;;  %v830_v58 = vshll.u32 %v7755_v30, %v821_v36  ;;  %v836_v13 = vshll.u32 %v7757_v34, %v821_v36  ;;  %vm839_vm14 = vcmp.lt.s32.totalorder %v820_v56, 1 }
 0x124   : > { %v825_v42 = vshrl.u32 %v7754_v28, %v822_v18  ;;  %v828_v52 = vshrl.u32 %v7755_v30, %v822_v18  ;;  %v834_v29 = vshrl.u32 %v7757_v34, %v822_v18  ;;  %v831_v6 = vshrl.u32 %v7756_v32, %v822_v18 }
 0x125   : > { %v3263_v27 = vsub.s32 %v3259_v14, %v3262_v43  ;;  %v837_v9 = vshrl.u32 %v7758_v41, %v822_v18  ;;  %v823_v37 = vshrl.u32 %v7753_v26, %v822_v18  ;;  %vm842_vm13 = vcmp.lt.s32.totalorder %v820_v56, 4 }
 0x126   : > { %v826_v51 = vor.u32 %v825_v42, %v824_v40  ;;  %v829_v60 = vor.u32 %v828_v52, %v827_v57  ;;  %v835_v7 = vor.u32 %v834_v29, %v833_v10  ;;  %v832_v45 = vor.u32 %v831_v6, %v830_v58 }
 0x127   : > { %v3265_v46 = vsub.s32 0, %v3263_v27  ;;  %v838_v3 = vor.u32 %v837_v9, %v836_v13  ;;  %vm841_vm4 = vcmp.lt.s32.totalorder %v820_v56, 3  ;;  %vm840_vm15 = vcmp.lt.s32.totalorder %v820_v56, 2 }
 0x128   : > { %v844_v62 = vsel %vm842_vm13, %v832_v45, 2102212464  ;;  %v847_v50 = vsel %vm839_vm14, %v826_v51, %v829_v60  ;;  %v848_v19 = vsel %vm842_vm13, %v835_v7, 920167782  ;;  %v843_v54 = vsel %vm839_vm14, %v823_v37, %v826_v51 }
 0x129   : > { %v7303_v33 = vmin.u32 %v3265_v46, %v3263_v27  ;;  %v849_v59 = vsel %vm841_vm4, %v832_v45, %v848_v19  ;;  %v851_v14 = vsel %vm839_vm14, %v829_v60, %v832_v45  ;;  %v852_v17 = vsel %vm842_vm13, %v838_v3, 1326507024 }
 0x12a   : > { %v845_v38 = vsel %vm841_vm4, %v829_v60, %v844_v62  ;;  %v850_v18 = vsel %vm840_vm15, %v847_v50, %v849_v59  ;;  %v853_v44 = vsel %vm841_vm4, %v835_v7, %v852_v17  ;;  %v3255_v40 = vadd.s32 %v8678_v55, %v8700_v23 }
 0x12b   : > { %v3267_v49 = vclz %v7303_v33  ;;  %v854_v42 = vsel %vm840_vm15, %v851_v14, %v853_v44  ;;  %v8745_v57 = vmul.u32.u64.low %v855_v2, %v850_v18  ;;  %v8746_v52 = vmul.u32.u64.high %v855_v2, %v850_v18, %v8745_v57 }
 0x12c   : > { %v8749_v10 = vmul.u32.u64.low %v855_v2, %v854_v42  ;;  %v8750_v43 = vmul.u32.u64.high %v855_v2, %v854_v42, %v8749_v10  ;;  %v7242_v29 = vadd.s32 4294967169, %v1643_v5  ;;  %v846_v6 = vsel %vm840_vm15, %v843_v54, %v845_v38 }
 0x12d   : > { %v7304_v36 = vadd.s32 4294967294, %v3267_v49  ;;  %v3285_v60 = vsub.s32 4, %v8718_v21  ;;  %v865_v55 = vadd.s32 1, %v8746_v52  ;;  %v862_v46 = vmul.u32 %v855_v2, %v846_v6 }
 0x12e   : > { %v1649_v23 = vadd.s32 1, %v7242_v29  ;;  %vm864_vm2 = vc.u32 %v8750_v43, %v8745_v57  ;;  %v1639_v50 = vand.u32 2147483647, %v8730_v15 }
 0x12f   : > { %vm7305_vm0 = vcmp.lt.s32.totalorder %v7304_v36, 0  ;;  %v3286_v56 = vsel %vm3201_vm5, %v3285_v60, %v8718_v21 }
 0x130   : > { %v3270_v58 = vsel %vm7305_vm0, 0, %v7304_v36  ;;  %vm1650_vm6 = vcmp.gt.s32.totalorder %v1649_v23, 0  ;;  %v3288_v21 = vsel %vm8764_vm8, 0, %v3286_v56  ;;  %v1646_v36 = vand.u32 8388607, %v1639_v50 }
 0x131   : > { %v3271_v13 = vsub.s32 32, %v3270_v58  ;;  %v3272_v35 = vshll.u32 %v3263_v27, %v3270_v58  ;;  %v3275_v51 = vsub.s32 4294967266, %v3270_v58  ;;  %v866_v27 = vsel %vm864_vm2, %v865_v55, %v8746_v52 }
 0x132   : > { %v867_v33 = vadd.s32 %v866_v27, %v862_v46  ;;  %v1651_v62 = vsel %vm1650_vm6, %v1649_v23, 0  ;;  %v3292_v17 = vadd.s32 3, %v3288_v21  ;;  %v8792_v55 = vand.u32 3, %v3288_v21 }
 0x133   : > { %v3273_v7 = vshrl.u32 %v3255_v40, %v3271_v13  ;;  %v3276_v9 = vadd.s32 127, %v3275_v51  ;;  %v1653_v19 = vand.u32 31, %v1651_v62  ;;  %v1647_v46 = vor.u32 8388608, %v1646_v36 }
 0x134   : > { %v868_v5 = vadd.s32 536870912, %v867_v33  ;;  %vm3709_vm7 = vcmp.eq.s32.totalorder %v8792_v55, 0  ;;  %vm3708_vm4 = vcmp.lt.s32.totalorder %v8792_v55, 2  ;;  %vm3712_vm15 = vcmp.eq.s32.totalorder %v8792_v55, 2 }
 0x135   : > { %v3274_v53 = vor.u32 %v3273_v7, %v3272_v35  ;;  %v3277_v37 = vshll.u32 %v3276_v9, 23  ;;  %v1654_v54 = vsub.s32 32, %v1653_v19  ;;  %v1656_v61 = vshll.u32 %v7753_v26, %v1653_v19 }
 0x136   : > { %v8771_v14 = vshrl.u32 %v868_v5, 30  ;;  %v1659_v38 = vshll.u32 %v7754_v28, %v1653_v19  ;;  %v1662_v42 = vshll.u32 %v7755_v30, %v1653_v19  ;;  %v1665_v29 = vshll.u32 %v7756_v32, %v1653_v19 }
 0x137   : > { %v3278_v45 = vor.u32 4788187, %v3277_v37  ;;  %v3281_v3 = vcvt.s32.f32 %v3274_v53  ;;  %v1657_v40 = vshrl.u32 %v7754_v28, %v1654_v54  ;;  %v1660_v52 = vshrl.u32 %v7755_v30, %v1654_v54 }
 0x138   : > { %v870_v44 = vshll.u32 %v8771_v14, 30  ;;  %v1663_v10 = vshrl.u32 %v7756_v32, %v1654_v54  ;;  %v1666_v58 = vshrl.u32 %v7757_v34, %v1654_v54  ;;  %v1652_v35 = vshrl.u32 %v1651_v62, 5 }
 0x139   : > { %v3279_v49 = vand.u32 2147483647, %v3278_v45  ;;  %v1668_v51 = vshll.u32 %v7757_v34, %v1653_v19  ;;  %v1669_v23 = vshrl.u32 %v7758_v41, %v1654_v54  ;;  %v8796_v7 = vmul.f32 4.0, %v8686_v8 }
 0x13a   : > { %v8786_v13 = vsub.s32 %v867_v33, %v870_v44  ;;  %v1658_v53 = vor.u32 %v1657_v40, %v1656_v61  ;;  %v1661_v37 = vor.u32 %v1660_v52, %v1659_v38  ;;  %v1664_v56 = vor.u32 %v1663_v10, %v1662_v42 }
 0x13b   : > { %v3282_v59 = vmul.f32 %v3281_v3, %v3279_v49  ;;  %v1667_v27 = vor.u32 %v1666_v58, %v1665_v29  ;;  %v3293_v45 = vand.u32 3, %v3292_v17  ;;  %v1670_v33 = vor.u32 %v1669_v23, %v1668_v51 }
 0x13c   : > { %v873_v9 = vsub.s32 0, %v8786_v13  ;;  %vm1671_vm11 = vcmp.lt.s32.totalorder %v1652_v35, 1  ;;  %v1655_v62 = vshrl.u32 %v7753_v26, %v1654_v54  ;;  %vm1673_vm14 = vcmp.lt.s32.totalorder %v1652_v35, 3 }
 0x13d   : > { %v3283_v18 = vxor.u32 2147483648, %v3282_v59  ;;  %vm1674_vm13 = vcmp.lt.s32.totalorder %v1652_v35, 4  ;;  %vm1672_vm0 = vcmp.lt.s32.totalorder %v1652_v35, 2  ;;  %v1687_v19 = vshll.u32 %v1647_v46, 8 }
 0x13e   : > { %v7211_v3 = vmin.u32 %v873_v9, %v8786_v13  ;;  %vm3291_vm2 = vweird.f32 %v8639_v63  ;;  %v1676_v49 = vsel %vm1674_vm13, %v1664_v56, 2102212464  ;;  %v1679_v21 = vsel %vm1671_vm11, %v1658_v53, %v1661_v37 }
 0x13f   : > { %v3284_v6 = vsel %vm3201_vm5, %v3283_v18, %v3282_v59  ;;  %v1680_v5 = vsel %vm1674_vm13, %v1667_v27, 920167782  ;;  %v1683_v59 = vsel %vm1671_vm11, %v1661_v37, %v1664_v56  ;;  %v863_v54 = vadd.s32 %v8745_v57, %v8750_v43 }
 0x140   : > { %v3287_v60 = vsel %vm8764_vm8, %v8639_v63, %v3284_v6  ;;  %v875_v2 = vclz %v7211_v3  ;;  %v1681_v36 = vsel %vm1673_vm14, %v1664_v56, %v1680_v5  ;;  %v1684_v61 = vsel %vm1674_vm13, %v1670_v33, 1326507024 }
 0x141   : > { %7607 = vcosq.f32 %v3287_v60  ;;  %v1675_v38 = vsel %vm1671_vm11, %v1655_v62, %v1658_v53  ;;  %v1677_v18 = vsel %vm1673_vm14, %v1661_v37, %v1676_v49  ;;  %v1682_v44 = vsel %vm1672_vm0, %v1679_v21, %v1681_v36 }
 0x142   : > { %7609 = vsinq.f32 %v3287_v60  ;;  %v7212_v17 = vadd.s32 4294967294, %v875_v2  ;;  %v1685_v40 = vsel %vm1673_vm14, %v1667_v27, %v1684_v61  ;;  %vm3294_vm6 = vcmp.lt.s32.totalorder %v3293_v45, 2 }
 0x143   : > { %v1686_v42 = vsel %vm1672_vm0, %v1683_v59, %v1685_v40  ;;  %v8815_v52 = vmul.u32.u64.low %v1687_v19, %v1682_v44  ;;  %v8816_v10 = vmul.u32.u64.high %v1687_v19, %v1682_v44, %v8815_v52  ;;  %vm3298_vm8 = vcmp.eq.s32.totalorder %v3293_v45, 2 }
 0x144   : > { %vm7213_vm5 = vcmp.lt.s32.totalorder %v7212_v17, 0  ;;  %v8819_v43 = vmul.u32.u64.low %v1687_v19, %v1686_v42  ;;  %v8820_v29 = vmul.u32.u64.high %v1687_v19, %v1686_v42, %v8819_v43  ;;  %v1678_v60 = vsel %vm1672_vm0, %v1675_v38, %v1677_v18 }
 0x145   : > { %v878_v57 = vsel %vm7213_vm5, 0, %v7212_v17  ;;  %vm3295_vm11 = vcmp.eq.s32.totalorder %v3293_v45, 0  ;;  %v2474_v53 = vand.u32 2139095040, %v8796_v7  ;;  %v1697_v3 = vadd.s32 1, %v8816_v10 }
 0x146   : > { %v879_v6 = vsub.s32 32, %v878_v57  ;;  %v883_v51 = vsub.s32 4294967266, %v878_v57  ;;  %v880_v46 = vshll.u32 %v8786_v13, %v878_v57  ;;  %v1694_v2 = vmul.u32 %v1687_v19, %v1678_v60 }
 0x147   : > { %vm1696_vm14 = vc.u32 %v8820_v29, %v8815_v52  ;;  %v893_v43 = vsub.s32 4, %v8771_v14  ;;  %vm809_vm13 = vcmp.lt.s32.totalorder %v8686_v8, 0 }
 0x148   : > { %v881_v56 = vshrl.u32 %v863_v54, %v879_v6  ;;  %v884_v27 = vadd.s32 127, %v883_v51  ;;  %v1698_v59 = vsel %vm1696_vm14, %v1697_v3, %v8816_v10  ;;  %v2475_v54 = vshrl.u32 %v2474_v53, 23 }
 0x149   : > { %v1699_v44 = vadd.s32 %v1698_v59, %v1694_v2 }
 0x14a   : > { %v885_v13 = vshll.u32 %v884_v27, 23  ;;  %v882_v36 = vor.u32 %v881_v56, %v880_v46  ;;  %v7274_v45 = vadd.s32 4294967169, %v2475_v54  ;;  %v894_v27 = vsel %vm809_vm13, %v893_v43, %v8771_v14 }
 0x14b   : > { %v7608_v58 = vpop.eup %7607  ;;  %v1700_v57 = vadd.s32 536870912, %v1699_v44 }
 0x14c   : > { %v7610_v23 = vpop.eup %7609  ;;  %v3299_v9 = vxor.u32 2147483648, %v7608_v58  ;;  %v886_v18 = vor.u32 4788187, %v885_v13  ;;  %v889_v51 = vcvt.s32.f32 %v882_v36  ;;  %v1695_v36 = vadd.s32 %v8815_v52, %v8820_v29 }
 0x14d   : > { %v3296_v37 = vxor.u32 2147483648, %v7610_v23  ;;  %v8845_v60 = vshrl.u32 %v1700_v57, 30 }
 0x14e   : > { %v3300_v33 = vsel %vm3298_vm8, %v3299_v9, %v7610_v23  ;;  %v3714_v62 = vsel %vm3712_vm15, %v3299_v9, %v7610_v23  ;;  %v887_v6 = vand.u32 2147483647, %v886_v18  ;;  %vm1641_vm8 = vcmp.lt.s32.totalorder %v8730_v15, 0 }
 0x14f   : > { %v3297_v35 = vsel %vm3295_vm11, %v7608_v58, %v3296_v37  ;;  %v3711_v49 = vsel %vm3709_vm7, %v7608_v58, %v3296_v37  ;;  %v2481_v58 = vadd.s32 1, %v7274_v45  ;;  %v1702_v46 = vshll.u32 %v8845_v60, 30 }
 0x150   : > { %v3301_v21 = vsel %vm3294_vm6, %v3297_v35, %v3300_v33  ;;  %v3715_v5 = vsel %vm3708_vm4, %v3711_v49, %v3714_v62  ;;  %v890_v56 = vmul.f32 %v889_v51, %v887_v6  ;;  %vm8865_vm4 = vcmp.le.f32.partialorder %v807_v16, 0.7853982 }
 0x151   : > { %v3302_v17 = vsel %vm3291_vm2, nan, %v3301_v21  ;;  %v3716_v19 = vsel %vm3291_vm2, nan, %v3715_v5  ;;  %vm2482_vm7 = vcmp.gt.s32.totalorder %v2481_v58, 0  ;;  %v8859_v3 = vsub.s32 %v1699_v44, %v1702_v46 }
 0x152   : > { %v4072_v61 = vcombine.high %v3302_v17, %v3302_v17  ;;  %v4077_v38 = vrot.slane %v3302_v17, 3  ;;  %v4096_v40 = vcombine.high %v3716_v19, %v3716_v19  ;;  %v2483_v53 = vsel %vm2482_vm7, %v2481_v58, 0 }
 0x153   : > { %v1705_v2 = vsub.s32 0, %v8859_v3  ;;  %v8874_v14 = vsel %vm8865_vm4, 0, %v894_v27  ;;  %v891_v49 = vxor.u32 2147483648, %v890_v56  ;;  %v2484_v16 = vshrl.u32 %v2483_v53, 5 }
 0x154   : > { %v4078_v42 = vrot.slane %v4072_v61, 3  ;;  %v4160_v55 = vsel %vm4157_vm9, %v8627_v31, %v4077_v38  ;;  %v2471_v31 = vand.u32 2147483647, %v8796_v7  ;;  %vm8938_vm11 = vcmp.le.f32.partialorder %v1639_v50, 0.7853982 }
 0x155   : > { %v4176_v10 = vpack.c.bf16 %v3716_v19, %v4160_v55  ;;  %v7243_v13 = vmin.u32 %v1705_v2, %v8859_v3  ;;  %v8885_v19 = vld [vmem:[%s7909_s21 + $0x18] sm:$0x77]  ;;  %vm2506_vm15 = vcmp.lt.s32.totalorder %v2484_v16, 4  ;;  %vm2503_vm2 = vcmp.lt.s32.totalorder %v2484_v16, 1 }
 0x156   : > { %v4161_v63 = vsel %vm4157_vm9, %v8624_v24, %v4078_v42  ;;  %v2485_v24 = vand.u32 31, %v2483_v53  ;;  %v2478_v35 = vand.u32 8388607, %v2471_v31  ;;  %v914_v18 = vand.u32 2139095040, %v8885_v19 }
 0x157   : > { %v4177_v23 = vpack.c.bf16 %v4096_v40, %v4161_v63  ;;  %v8848_v9 = vand.u32 %v8648_v4, %v4176_v10  ;;  %v1707_v61 = vclz %v7243_v13  ;;  %v892_v42 = vsel %vm809_vm13, %v891_v49, %v890_v56 }
 0x158   : > { %v2486_v33 = vsub.s32 32, %v2485_v24  ;;  %v2488_v21 = vshll.u32 %v7753_v26, %v2485_v24  ;;  %v2491_v59 = vshll.u32 %v7754_v28, %v2485_v24  ;;  %v2494_v17 = vshll.u32 %v7755_v30, %v2485_v24 }
 0x159   : > { %v8853_v37 = vand.u32 %v8648_v4, %v4177_v23  ;;  %v2479_v38 = vor.u32 8388608, %v2478_v35  ;;  %v2497_v44 = vshll.u32 %v7756_v32, %v2485_v24  ;;  %v2500_v45 = vshll.u32 %v7757_v34, %v2485_v24 }
 0x15a   : > { %v2489_v5 = vshrl.u32 %v7754_v28, %v2486_v33  ;;  %v2492_v54 = vshrl.u32 %v7755_v30, %v2486_v33  ;;  %v2498_v40 = vshrl.u32 %v7757_v34, %v2486_v33  ;;  %v7244_v55 = vadd.s32 4294967294, %v1707_v61 }
 0x15b   : > { %4741 = vmatprep.subr.bf16.mxu1 %v8853_v37  ;;  %v2501_v10 = vshrl.u32 %v7758_v41, %v2486_v33  ;;  %vm2505_vm5 = vcmp.lt.s32.totalorder %v2484_v16, 3  ;;  %v2487_v6 = vshrl.u32 %v7753_v26, %v2486_v33  ;;  %v915_v23 = vshrl.u32 %v914_v18, 23 }
 0x15c   : > { %4742 = vmatpush1.bf16.msra.mxu1 %v8848_v9  ;;  %v2490_v57 = vor.u32 %v2489_v5, %v2488_v21  ;;  %v2493_v52 = vor.u32 %v2492_v54, %v2491_v59  ;;  %v2499_v43 = vor.u32 %v2498_v40, %v2497_v44  ;;  %vm7245_vm0 = vcmp.lt.s32.totalorder %v7244_v55, 0 }
 0x15d   : > { %v2502_v58 = vor.u32 %v2501_v10, %v2500_v45  ;;  %v1710_v63 = vsel %vm7245_vm0, 0, %v7244_v55  ;;  %v895_v27 = vsel %vm8865_vm4, %v8686_v8, %v892_v42  ;;  %vm2504_vm6 = vcmp.lt.s32.totalorder %v2484_v16, 2 }
 0x15e   : > { %v2512_v51 = vsel %vm2506_vm15, %v2499_v43, 920167782  ;;  %v1711_v46 = vsub.s32 32, %v1710_v63  ;;  %v1712_v53 = vshll.u32 %v8859_v3, %v1710_v63  ;;  %v1715_v24 = vsub.s32 4294967266, %v1710_v63 }
 0x15f   : > { %7350 = vmatmul.mubr.msk.bf16.vlgmr.msra.gmra.mrb[0].mxu1 %vm10729_vm10, %v8693_v1  ;;  %v2495_v1 = vshrl.u32 %v7756_v32, %v2486_v33  ;;  %v2511_v2 = vsel %vm2503_vm2, %v2490_v57, %v2493_v52  ;;  %v900_v35 = vadd.s32 3, %v8874_v14  ;;  %v2516_v3 = vsel %vm2506_vm15, %v2502_v58, 1326507024 }
 0x160   : > { %4781 = vmatprep.mubr.bf16.mxu1 %v10727_v12  ;;  %v1713_v49 = vshrl.u32 %v1695_v36, %v1711_v46  ;;  %v1716_v13 = vadd.s32 127, %v1715_v24  ;;  %v2507_v21 = vsel %vm2503_vm2, %v2487_v6, %v2490_v57  ;;  %v2519_v5 = vshll.u32 %v2479_v38, 8 }
 0x161   : > { %v2496_v29 = vor.u32 %v2495_v1, %v2494_v17  ;;  %7611 = vcosq.f32 %v895_v27  ;;  %v1725_v36 = vsub.s32 4, %v8845_v60  ;;  %v2517_v61 = vsel %vm2505_vm5, %v2499_v43, %v2516_v3 }
 0x162   : > { %v1714_v59 = vor.u32 %v1713_v49, %v1712_v53  ;;  %v1717_v54 = vshll.u32 %v1716_v13, 23  ;;  %7613 = vsinq.f32 %v895_v27  ;;  %v7214_v18 = vadd.s32 4294967169, %v915_v23 }
 0x163   : > { %v2508_v56 = vsel %vm2506_vm15, %v2496_v29, 2102212464  ;;  %v2513_v33 = vsel %vm2505_vm5, %v2496_v29, %v2512_v51  ;;  %v2515_v62 = vsel %vm2503_vm2, %v2493_v52, %v2496_v29  ;;  %v8931_v43 = vand.u32 3, %v900_v35 }
 0x164   : > { %v2514_v17 = vsel %vm2504_vm6, %v2511_v2, %v2513_v33  ;;  %v1718_v1 = vor.u32 4788187, %v1717_v54  ;;  %v1721_v44 = vcvt.s32.f32 %v1714_v59  ;;  %v2518_v45 = vsel %vm2504_vm6, %v2515_v62, %v2517_v61 }
 0x165   : > { %v8920_v42 = vmul.u32.u64.low %v2519_v5, %v2518_v45  ;;  %v8921_v55 = vmul.u32.u64.high %v2519_v5, %v2518_v45, %v8920_v42  ;;  %v8923_v38 = vmul.u32.u64.low %v2519_v5, %v2514_v17  ;;  %v8924_v57 = vmul.u32.u64.high %v2519_v5, %v2514_v17, %v8923_v38 }
 0x166   : > { %v1719_v10 = vand.u32 2147483647, %v1718_v1  ;;  %v921_v29 = vadd.s32 1, %v7214_v18  ;;  %v8934_v16 = vand.u32 3, %v8874_v14  ;;  %v911_v14 = vand.u32 2147483647, %v8885_v19 }
 0x167   : > { %7351 = vmatmul.mubr.msk.bf16.gmra.mrb[4].mxu1 %vm10729_vm10, %v8711_v20  ;;  %v2509_v20 = vsel %vm2505_vm5, %v2493_v52, %v2508_v56  ;;  %v1726_v52 = vsel %vm1641_vm8, %v1725_v36, %v8845_v60  ;;  %vm2528_vm14 = vc.u32 %v8921_v55, %v8923_v38  ;;  %v2529_v51 = vadd.s32 1, %v8924_v57 }
 0x168   : > { %4877 = vmatprep.mubr.bf16.mxu1 %v10727_v12  ;;  %v2510_v40 = vsel %vm2504_vm6, %v2507_v21, %v2509_v20  ;;  %v1722_v58 = vmul.f32 %v1721_v44, %v1719_v10  ;;  %vm922_vm7 = vcmp.gt.s32.totalorder %v921_v29, 0  ;;  %v1728_v23 = vsel %vm8938_vm11, 0, %v1726_v52 }
 0x169   : > { %v2526_v63 = vmul.u32 %v2519_v5, %v2510_v40  ;;  %v923_v46 = vsel %vm922_vm7, %v921_v29, 0  ;;  %v2530_v53 = vsel %vm2528_vm14, %v2529_v51, %v8924_v57  ;;  %vm903_vm13 = vcmp.eq.s32.totalorder %v8931_v43, 0 }
 0x16a   : > { %v1723_v60 = vxor.u32 2147483648, %v1722_v58  ;;  %v925_v24 = vand.u32 31, %v923_v46  ;;  %vm1316_vm4 = vcmp.eq.s32.totalorder %v8934_v16, 0  ;;  %vm1319_vm15 = vcmp.eq.s32.totalorder %v8934_v16, 2 }
 0x16b   : > { %v7612_v50 = vpop.eup %7611  ;;  %v2531_v27 = vadd.s32 %v2530_v53, %v2526_v63  ;;  %vm906_vm0 = vcmp.eq.s32.totalorder %v8931_v43, 2  ;;  %v1732_v33 = vadd.s32 3, %v1728_v23  ;;  %v3929_v35 = vcombine.high %v8686_v8, %v8686_v8 }
 0x16c   : > { %v1724_v56 = vsel %vm1641_vm8, %v1723_v60, %v1722_v58  ;;  %v7614_v2 = vpop.eup %7613  ;;  %v926_v49 = vsub.s32 32, %v925_v24  ;;  %vm902_vm2 = vcmp.lt.s32.totalorder %v8931_v43, 2  ;;  %v918_v21 = vand.u32 8388607, %v911_v14 }
 0x16d   : > { %v1727_v13 = vsel %vm8938_vm11, %v8730_v15, %v1724_v56  ;;  %v2532_v3 = vadd.s32 536870912, %v2531_v27  ;;  %v8963_v20 = vshrl.u32 %v923_v46, 5  ;;  %vm1315_vm5 = vcmp.lt.s32.totalorder %v8934_v16, 2 }
 0x16e   : > { %v931_v62 = vshll.u32 %v7754_v28, %v925_v24  ;;  %v932_v5 = vshrl.u32 %v7755_v30, %v926_v49  ;;  %v934_v59 = vshll.u32 %v7755_v30, %v925_v24  ;;  %v937_v54 = vshll.u32 %v7756_v32, %v925_v24 }
 0x16f   : > { %v8970_v17 = vshrl.u32 %v2532_v3, 30  ;;  %v935_v36 = vshrl.u32 %v7756_v32, %v926_v49  ;;  %v938_v61 = vshrl.u32 %v7757_v34, %v926_v49  ;;  %v940_v18 = vshll.u32 %v7757_v34, %v925_v24 }
 0x170   : > { %vm899_vm6 = vweird.f32 %v8686_v8  ;;  %v907_v1 = vxor.u32 2147483648, %v7612_v50  ;;  %v8976_v44 = vand.u32 3, %v1732_v33  ;;  %v8978_v40 = vand.u32 3, %v1728_v23 }
 0x171   : > { %v941_v45 = vshrl.u32 %v7758_v41, %v926_v49  ;;  %v904_v42 = vxor.u32 2147483648, %v7614_v2  ;;  %7615 = vcosq.f32 %v1727_v13  ;;  %v2534_v57 = vshll.u32 %v8970_v17, 30 }
 0x172   : > { %v928_v10 = vshll.u32 %v7753_v26, %v925_v24  ;;  %7617 = vsinq.f32 %v1727_v13  ;;  %v929_v52 = vshrl.u32 %v7754_v28, %v926_v49  ;;  %v933_v29 = vor.u32 %v932_v5, %v931_v62 }
 0x173   : > { %v942_v58 = vor.u32 %v941_v45, %v940_v18  ;;  %v8984_v63 = vsub.s32 %v2531_v27, %v2534_v57  ;;  %v936_v6 = vor.u32 %v935_v36, %v934_v59  ;;  %v939_v51 = vor.u32 %v938_v61, %v937_v54 }
 0x174   : > { %vm946_vm8 = vcmp.lt.s32.totalorder %v8963_v20, 4  ;;  %v908_v60 = vsel %vm906_vm0, %v907_v1, %v7614_v2  ;;  %v1321_v23 = vsel %vm1319_vm15, %v907_v1, %v7614_v2  ;;  %v919_v46 = vor.u32 8388608, %v918_v21 }
 0x175   : > { %vm943_vm11 = vcmp.lt.s32.totalorder %v8963_v20, 1  ;;  %v905_v53 = vsel %vm903_vm13, %v7612_v50, %v904_v42  ;;  %vm2473_vm14 = vcmp.lt.s32.totalorder %v8796_v7, 0  ;;  %v2537_v24 = vsub.s32 0, %v8984_v63 }
 0x176   : > { %vm945_vm7 = vcmp.lt.s32.totalorder %v8963_v20, 3  ;;  %v8998_v56 = vmul.f32 2.0, %v8885_v19  ;;  %v1318_v27 = vsel %vm1316_vm4, %v7612_v50, %v904_v42  ;;  %v927_v2 = vshrl.u32 %v7753_v26, %v926_v49 }
 0x177   : > { %v930_v33 = vor.u32 %v929_v52, %v928_v10  ;;  %v956_v13 = vsel %vm946_vm8, %v942_v58, 1326507024  ;;  %v7275_v3 = vmin.u32 %v2537_v24, %v8984_v63  ;;  %vm944_vm13 = vcmp.lt.s32.totalorder %v8963_v20, 2 }
 0x178   : > { %v952_v21 = vsel %vm946_vm8, %v939_v51, 920167782  ;;  %v955_v62 = vsel %vm943_vm11, %v933_v29, %v936_v6  ;;  %v909_v5 = vsel %vm902_vm2, %v905_v53, %v908_v60  ;;  %v948_v50 = vsel %vm946_vm8, %v936_v6, 2102212464 }
 0x179   : > { %v957_v49 = vsel %vm945_vm7, %v939_v51, %v956_v13  ;;  %v9017_v59 = vshll.u32 %v919_v46, 8  ;;  %v1322_v54 = vsel %vm1315_vm5, %v1318_v27, %v1321_v23  ;;  %vm1735_vm4 = vcmp.eq.s32.totalorder %v8976_v44, 0 }
 0x17a   : > { %vm9024_vm15 = vcmp.le.f32.partialorder %v2471_v31, 0.7853982  ;;  %v2539_v43 = vclz %v7275_v3  ;;  %v1746_v61 = vand.u32 2139095040, %v8998_v56  ;;  %v2557_v18 = vsub.s32 4, %v8970_v17 }
 0x17b   : > { %v951_v1 = vsel %vm943_vm11, %v930_v33, %v933_v29  ;;  %v953_v16 = vsel %vm945_vm7, %v936_v6, %v952_v21  ;;  %v958_v45 = vsel %vm944_vm13, %v955_v62, %v957_v49  ;;  %v9036_v42 = vpop.eup %7615  ;;  %v9040_v31 = vsel %vm899_vm6, nan, %v909_v5 }
 0x17c   : > { %v7276_v57 = vadd.s32 4294967294, %v2539_v43  ;;  %v947_v10 = vsel %vm943_vm11, %v927_v2, %v930_v33  ;;  %v949_v52 = vsel %vm945_vm7, %v933_v29, %v948_v50  ;;  %v9046_v58 = vpop.eup %7617  ;;  %v9050_v6 = vsel %vm899_vm6, nan, %v1322_v54 }
 0x17d   : > { %vm1734_vm0 = vcmp.lt.s32.totalorder %v8976_v44, 2  ;;  %vm1738_vm2 = vcmp.eq.s32.totalorder %v8976_v44, 2  ;;  %v9055_v51 = vmul.u32.u64.low %v9017_v59, %v958_v45  ;;  %v9056_v60 = vmul.u32.u64.high %v9017_v59, %v958_v45, %v9055_v51 }
 0x17e   : > { %v2527_v23 = vadd.s32 %v8923_v38, %v8921_v55  ;;  %vm7277_vm5 = vcmp.lt.s32.totalorder %v7276_v57, 0  ;;  %v954_v29 = vsel %vm944_vm13, %v951_v1, %v953_v16  ;;  %v1747_v46 = vshrl.u32 %v1746_v61, 23 }
 0x17f   : > { %v2542_v53 = vsel %vm7277_vm5, 0, %v7276_v57  ;;  %v2558_v24 = vsel %vm2473_vm14, %v2557_v18, %v8970_v17  ;;  %v3941_v27 = vcombine.high %v9040_v31, %v9040_v31  ;;  %v950_v2 = vsel %vm944_vm13, %v947_v10, %v949_v52 }
 0x180   : > { %v2543_v33 = vsub.s32 32, %v2542_v53  ;;  %v2544_v13 = vshll.u32 %v8984_v63, %v2542_v53  ;;  %v2547_v55 = vsub.s32 4294967266, %v2542_v53  ;;  %v7246_v38 = vadd.s32 4294967169, %v1747_v46 }
 0x181   : > { %v1736_v3 = vxor.u32 2147483648, %v9046_v58  ;;  %v1739_v21 = vxor.u32 2147483648, %v9036_v42  ;;  %v9073_v62 = vmul.u32.u64.low %v9017_v59, %v954_v29  ;;  %v9074_v5 = vmul.u32.u64.high %v9017_v59, %v954_v29, %v9073_v62 }
 0x182   : > { %vm1731_vm6 = vweird.f32 %v8730_v15  ;;  %vm2151_vm8 = vcmp.eq.s32.totalorder %v8978_v40, 2  ;;  %v2545_v20 = vshrl.u32 %v2527_v23, %v2543_v33  ;;  %v2548_v17 = vadd.s32 127, %v2547_v55 }
 0x183   : > { %v3965_v63 = vcombine.high %v9050_v6, %v9050_v6  ;;  %v1753_v50 = vadd.s32 1, %v7246_v38  ;;  %v2560_v49 = vsel %vm9024_vm15, 0, %v2558_v24  ;;  %v3948_v54 = vrot.slane %v3941_v27, 5 }
 0x184   : > { %v966_v43 = vmul.u32 %v9017_v59, %v950_v2  ;;  %v1743_v61 = vand.u32 2147483647, %v8998_v56  ;;  %v2546_v18 = vor.u32 %v2545_v20, %v2544_v13  ;;  %v2549_v1 = vshll.u32 %v2548_v17, 23 }
 0x185   : > { %vm968_vm11 = vc.u32 %v9056_v60, %v9073_v62  ;;  %vm1754_vm7 = vcmp.gt.s32.totalorder %v1753_v50, 0  ;;  %v1737_v16 = vsel %vm1735_vm4, %v9036_v42, %v1736_v3  ;;  %v1740_v45 = vsel %vm1738_vm2, %v1739_v21, %v9046_v58 }
 0x186   : > { %v969_v59 = vadd.s32 1, %v9074_v5  ;;  %v1755_v57 = vsel %vm1754_vm7, %v1753_v50, 0  ;;  %vm2148_vm13 = vcmp.eq.s32.totalorder %v8978_v40, 0  ;;  %v2550_v10 = vor.u32 4788187, %v2549_v1 }
 0x187   : > { %v2553_v52 = vcvt.s32.f32 %v2546_v18  ;;  %v9097_v51 = vrot.slane %v3965_v63, 2  ;;  %v1757_v23 = vand.u32 31, %v1755_v57  ;;  %v2564_v29 = vadd.s32 3, %v2560_v49 }
 0x188   : > { %v9099_v46 = vand.u32 3, %v2560_v49  ;;  %v9105_v53 = vsel %vm4103_vm12, %v3929_v35, %v3948_v54  ;;  %v970_v24 = vsel %vm968_vm11, %v969_v59, %v9074_v5  ;;  %v1741_v27 = vsel %vm1734_vm0, %v1737_v16, %v1740_v45 }
 0x189   : > { %v2551_v2 = vand.u32 2147483647, %v2550_v10  ;;  %v971_v33 = vadd.s32 %v970_v24, %v966_v43  ;;  %v1758_v13 = vsub.s32 32, %v1757_v23  ;;  %v1750_v55 = vand.u32 8388607, %v1743_v61 }
 0x18a   : > { %v9112_v38 = vshrl.u32 %v1755_v57, 5  ;;  %v1760_v20 = vshll.u32 %v7753_v26, %v1757_v23  ;;  %v1763_v8 = vshll.u32 %v7754_v28, %v1757_v23  ;;  %v1769_v5 = vshll.u32 %v7756_v32, %v1757_v23 }
 0x18b   : > { %v2554_v17 = vmul.f32 %v2553_v52, %v2551_v2  ;;  %v972_v35 = vadd.s32 536870912, %v971_v33  ;;  %v1761_v63 = vshrl.u32 %v7754_v28, %v1758_v13  ;;  %vm2147_vm4 = vcmp.lt.s32.totalorder %v8978_v40, 2 }
 0x18c   : > { %v1764_v44 = vshrl.u32 %v7755_v30, %v1758_v13  ;;  %v1770_v50 = vshrl.u32 %v7757_v34, %v1758_v13  ;;  %v1772_v49 = vshll.u32 %v7757_v34, %v1757_v23  ;;  %v1773_v54 = vshrl.u32 %v7758_v41, %v1758_v13 }
 0x18d   : > { %v2555_v43 = vxor.u32 2147483648, %v2554_v17  ;;  %v9123_v18 = vshrl.u32 %v972_v35, 30  ;;  %v1766_v1 = vshll.u32 %v7755_v30, %v1757_v23  ;;  %v1767_v16 = vshrl.u32 %v7756_v32, %v1758_v13 }
 0x18e   : > { %v9129_v45 = vsel %vm1731_vm6, nan, %v1741_v27  ;;  %v2153_v59 = vsel %vm2151_vm8, %v1739_v21, %v9046_v58  ;;  %v9134_v57 = vand.u32 3, %v2564_v29  ;;  %v1751_v10 = vor.u32 8388608, %v1750_v55 }
 0x18f   : > { %v2556_v52 = vsel %vm2473_vm14, %v2555_v43, %v2554_v17  ;;  %v974_v24 = vshll.u32 %v9123_v18, 30  ;;  %v1762_v2 = vor.u32 %v1761_v63, %v1760_v20  ;;  %v9140_v23 = vmul.f32 4.0, %v8885_v19 }
 0x190   : > { %v2559_v27 = vsel %vm9024_vm15, %v8796_v7, %v2556_v52  ;;  %v1765_v35 = vor.u32 %v1764_v44, %v1763_v8  ;;  %v1771_v48 = vor.u32 %v1770_v50, %v1769_v5  ;;  %v1774_v12 = vor.u32 %v1773_v54, %v1772_v49 }
 0x191   : > { %7619 = vcosq.f32 %v2559_v27  ;;  %v9145_v21 = vsub.s32 %v971_v33, %v974_v24  ;;  %v1768_v29 = vor.u32 %v1767_v16, %v1766_v1  ;;  %vm1778_vm0 = vcmp.lt.s32.totalorder %v9112_v38, 4 }
 0x192   : > { %v2150_v55 = vsel %vm2148_vm13, %v9036_v42, %v1736_v3  ;;  %7621 = vsinq.f32 %v2559_v27  ;;  %v3989_v36 = vcombine.high %v9129_v45, %v9129_v45  ;;  %vm1775_vm14 = vcmp.lt.s32.totalorder %v9112_v38, 1 }
 0x193   : > { %vm2983_vm15 = vcmp.eq.s32.totalorder %v9099_v46, 2  ;;  %v977_v33 = vsub.s32 0, %v9145_v21  ;;  %v1759_v20 = vshrl.u32 %v7753_v26, %v1758_v13  ;;  %vm1777_vm2 = vcmp.lt.s32.totalorder %v9112_v38, 3 }
 0x194   : > { %v9160_v8 = vshll.u32 %v1751_v10, 8  ;;  %vm2980_vm5 = vcmp.eq.s32.totalorder %v9099_v46, 0  ;;  %vm1776_vm8 = vcmp.lt.s32.totalorder %v9112_v38, 2  ;;  %v1784_v42 = vsel %vm1778_vm0, %v1771_v48, 920167782 }
 0x195   : > { %v1788_v58 = vsel %vm1778_vm0, %v1774_v12, 1326507024  ;;  %v2578_v3 = vand.u32 2139095040, %v9140_v23  ;;  %vm2979_vm11 = vcmp.lt.s32.totalorder %v9099_v46, 2  ;;  %v7215_v13 = vmin.u32 %v977_v33, %v9145_v21 }
 0x196   : > { %v1780_v17 = vsel %vm1778_vm0, %v1768_v29, 2102212464  ;;  %v1783_v63 = vsel %vm1775_vm14, %v1762_v2, %v1765_v35  ;;  %v1787_v5 = vsel %vm1775_vm14, %v1765_v35, %v1768_v29  ;;  %vm2563_vm7 = vweird.f32 %v8796_v7 }
 0x197   : > { %vm2566_vm13 = vcmp.lt.s32.totalorder %v9134_v57, 2  ;;  %vm2567_vm10 = vcmp.eq.s32.totalorder %v9134_v57, 0  ;;  %v1785_v12 = vsel %vm1777_vm2, %v1768_v29, %v1784_v42  ;;  %v1789_v44 = vsel %vm1777_vm2, %v1771_v48, %v1788_v58 }
 0x198   : > { %v2154_v50 = vsel %vm2147_vm4, %v2150_v55, %v2153_v59  ;;  %v3996_v49 = vrot.slane %v3989_v36, 7  ;;  %v979_v54 = vclz %v7215_v13  ;;  %v1779_v43 = vsel %vm1775_vm14, %v1759_v20, %v1762_v2 }
 0x199   : > { %v1781_v1 = vsel %vm1777_vm2, %v1765_v35, %v1780_v17  ;;  %v1786_v16 = vsel %vm1776_vm8, %v1783_v63, %v1785_v12  ;;  %v1790_v10 = vsel %vm1776_vm8, %v1787_v5, %v1789_v44  ;;  %v2579_v52 = vshrl.u32 %v2578_v3, 23 }
 0x19a   : > { %vm2570_vm0 = vcmp.eq.s32.totalorder %v9134_v57, 2  ;;  %v7216_v48 = vadd.s32 4294967294, %v979_v54  ;;  %v9196_v40 = vmul.u32.u64.low %v9160_v8, %v1790_v10  ;;  %v9197_v59 = vmul.u32.u64.high %v9160_v8, %v1790_v10, %v9196_v40 }
 0x19b   : > { %v9201_v24 = vsel %vm1731_vm6, nan, %v2154_v50  ;;  %v9204_v2 = vmul.u32.u64.low %v9160_v8, %v1786_v16  ;;  %v9205_v27 = vmul.u32.u64.high %v9160_v8, %v1786_v16, %v9204_v2  ;;  %v7278_v35 = vadd.s32 4294967169, %v2579_v52  ;;  %v7620_v29 = vpop.eup %7619 }
 0x19c   : > { %v4127_v55 = vsel %vm4121_vm1, %v9097_v51, %v3996_v49  ;;  %v967_v36 = vadd.s32 %v9073_v62, %v9056_v60  ;;  %vm7217_vm4 = vcmp.lt.s32.totalorder %v7216_v48, 0  ;;  %v1782_v33 = vsel %vm1776_vm8, %v1779_v43, %v1781_v1  ;;  %v7622_v15 = vpop.eup %7621 }
 0x19d   : > { %v2571_v20 = vxor.u32 2147483648, %v7620_v29  ;;  %v982_v42 = vsel %vm7217_vm4, 0, %v7216_v48  ;;  %v2575_v58 = vand.u32 2147483647, %v9140_v23  ;;  %v2585_v3 = vadd.s32 1, %v7278_v35 }
 0x19e   : > { %v2568_v13 = vxor.u32 2147483648, %v7622_v15  ;;  %v983_v17 = vsub.s32 32, %v982_v42  ;;  %v984_v63 = vshll.u32 %v9145_v21, %v982_v42  ;;  %v987_v5 = vsub.s32 4294967266, %v982_v42 }
 0x19f   : > { %v2572_v12 = vsel %vm2570_vm0, %v2571_v20, %v7622_v15  ;;  %v2985_v60 = vsel %vm2983_vm15, %v2571_v20, %v7622_v15  ;;  %v1798_v62 = vmul.u32 %v9160_v8, %v1782_v33  ;;  %vm1800_vm6 = vc.u32 %v9197_v59, %v9204_v2 }
 0x1a0   : > { %v2569_v38 = vsel %vm2567_vm10, %v7620_v29, %v2568_v13  ;;  %v2982_v44 = vsel %vm2980_vm5, %v7620_v29, %v2568_v13  ;;  %v985_v50 = vshrl.u32 %v967_v36, %v983_v17  ;;  %v988_v21 = vadd.s32 127, %v987_v5 }
 0x1a1   : > { %v2573_v49 = vsel %vm2566_vm13, %v2569_v38, %v2572_v12  ;;  %v2986_v54 = vsel %vm2979_vm11, %v2982_v44, %v2985_v60  ;;  %v1801_v43 = vadd.s32 1, %v9205_v27  ;;  %vm2586_vm14 = vcmp.gt.s32.totalorder %v2585_v3, 0 }
 0x1a2   : > { %v9234_v8 = vsel %vm2563_vm7, nan, %v2573_v49  ;;  %v9238_v1 = vsel %vm2563_vm7, nan, %v2986_v54  ;;  %v986_v16 = vor.u32 %v985_v50, %v984_v63  ;;  %v989_v10 = vshll.u32 %v988_v21, 23 }
 0x1a3   : > { %v4025_v57 = vcombine.high %v9234_v8, %v9234_v8  ;;  %vm10770_vm10 = vcmask 1045504   ;;  %v4136_v52 = vsel %vm10730_vm3, %v4127_v55, %v9201_v24  ;;  %v1802_v7 = vsel %vm1800_vm6, %v1801_v43, %v9205_v27 }
 0x1a4   : > { %v4118_v46 = vsel %vm10770_vm10, %v9105_v53, %v9097_v51  ;;  %v990_v48 = vor.u32 4788187, %v989_v10  ;;  %v993_v40 = vcvt.s32.f32 %v986_v16  ;;  %v2587_v35 = vsel %vm2586_vm14, %v2585_v3, 0  ;;  %vm10774_vm13 = vmmov %vm10770_vm10 }
 0x1a5   : > { %v9251_v29 = vrot.slane %v4025_v57, 1  ;;  %v1803_v36 = vadd.s32 %v1802_v7, %v1798_v62  ;;  %v2582_v33 = vand.u32 8388607, %v2575_v58  ;;  %v2589_v15 = vand.u32 31, %v2587_v35 }
 0x1a6   : > { %v3947_v51 = vrot.slane %v9040_v31, 5  ;;  %vm913_vm15 = vcmp.lt.s32.totalorder %v8885_v19, 0  ;;  %v991_v53 = vand.u32 2147483647, %v990_v48  ;;  %vm10771_vm2 = vcmask 1046528  }
 0x1a7   : > { %v4145_v55 = vsel %vm10771_vm2, %v4136_v52, %v9251_v29  ;;  %v997_v20 = vsub.s32 4, %v9123_v18  ;;  %v1804_v42 = vadd.s32 536870912, %v1803_v36  ;;  %v2590_v27 = vsub.s32 32, %v2589_v15  ;;  %vm10775_vm6 = vmmov %vm10771_vm2 }
 0x1a8   : > { %v3971_v3 = vrot.slane %v9050_v6, 2  ;;  %v3995_v13 = vrot.slane %v9129_v45, 7  ;;  %v9262_v17 = vpack.c.bf16 %v4145_v55, %v4118_v46  ;;  %vm9266_vm5 = vcmp.le.f32.partialorder %v911_v14, 0.7853982 }
 0x1a9   : > { %v994_v63 = vmul.f32 %v993_v40, %v991_v53  ;;  %v9270_v5 = vshrl.u32 %v1804_v42, 30  ;;  %v2583_v12 = vor.u32 8388608, %v2582_v33  ;;  %v2592_v60 = vshll.u32 %v7753_v26, %v2589_v15 }
 0x1aa   : > { %v2595_v62 = vshll.u32 %v7754_v28, %v2589_v15  ;;  %4792 = vmatprep.subr.bf16.mxu0 %v9262_v17  ;;  %v2593_v6 = vshrl.u32 %v7754_v28, %v2590_v27  ;;  %v2596_v45 = vshrl.u32 %v7755_v30, %v2590_v27  ;;  %v2601_v14 = vshll.u32 %v7756_v32, %v2589_v15 }
 0x1ab   : > { %v2602_v38 = vshrl.u32 %v7757_v34, %v2590_v27  ;;  %v4013_v44 = vcombine.low %v9201_v24, %v9201_v24  ;;  %v9284_v50 = vsel %vm913_vm15, %v997_v20, %v9123_v18  ;;  %v1806_v21 = vshll.u32 %v9270_v5, 30  ;;  %v7685_v24 = vld [vmem:[%s7909_s21 + $0x10] sm:$0x77] }
 0x1ac   : > { %v2588_v49 = vshrl.u32 %v2587_v35, 5  ;;  %v995_v54 = vxor.u32 2147483648, %v994_v63  ;;  %v2598_v43 = vshll.u32 %v7755_v30, %v2589_v15  ;;  %v2599_v16 = vshrl.u32 %v7756_v32, %v2590_v27 }
 0x1ad   : > { %v2604_v10 = vshll.u32 %v7757_v34, %v2589_v15  ;;  %v9290_v57 = vsub.s32 %v1803_v36, %v1806_v21  ;;  %v2605_v46 = vshrl.u32 %v7758_v41, %v2590_v27  ;;  %v4108_v52 = vsel %vm4103_vm12, %v7685_v24, %v3947_v51 }
 0x1ae   : > { %v4126_v18 = vsel %vm4121_vm1, %v3971_v3, %v3995_v13  ;;  %v2594_v48 = vor.u32 %v2593_v6, %v2592_v60  ;;  %v2597_v40 = vor.u32 %v2596_v45, %v2595_v62  ;;  %v2603_v7 = vor.u32 %v2602_v38, %v2601_v14 }
 0x1af   : > { %v9296_v35 = vshll.u32 %v2583_v12, 8  ;;  %v1799_v33 = vadd.s32 %v9204_v2, %v9197_v59  ;;  %v1809_v53 = vsub.s32 0, %v9290_v57  ;;  %v2591_v36 = vshrl.u32 %v7753_v26, %v2590_v27 }
 0x1b0   : > { %vm2607_vm8 = vcmp.lt.s32.totalorder %v2588_v49, 1  ;;  %v996_v15 = vsel %vm913_vm15, %v995_v54, %v994_v63  ;;  %v2600_v55 = vor.u32 %v2599_v16, %v2598_v43  ;;  %v2606_v51 = vor.u32 %v2605_v46, %v2604_v10 }
 0x1b1   : > { %vm2610_vm11 = vcmp.lt.s32.totalorder %v2588_v49, 4  ;;  %v4031_v20 = vrot.slane %v9234_v8, 1  ;;  %v7247_v42 = vmin.u32 %v1809_v53, %v9290_v57  ;;  %vm2609_vm7 = vcmp.lt.s32.totalorder %v2588_v49, 3 }
 0x1b2   : > { %v4117_v13 = vsel %vm10774_vm13, %v4108_v52, %v3971_v3  ;;  %vm2608_vm0 = vcmp.lt.s32.totalorder %v2588_v49, 2  ;;  %v2612_v59 = vsel %vm2610_vm11, %v2600_v55, 2102212464  ;;  %v2615_v2 = vsel %vm2607_vm8, %v2594_v48, %v2597_v40 }
 0x1b3   : > { %v2616_v27 = vsel %vm2610_vm11, %v2603_v7, 920167782  ;;  %v999_v63 = vsel %vm9266_vm5, %v8885_v19, %v996_v15  ;;  %v1811_v12 = vclz %v7247_v42  ;;  %v4135_v60 = vsel %vm10730_vm3, %v4126_v18, %v4013_v44 }
 0x1b4   : > { %v9314_v62 = vmul.f32 8.0, %v7685_v24  ;;  %v2611_v6 = vsel %vm2607_vm8, %v2591_v36, %v2594_v48  ;;  %v2617_v3 = vsel %vm2609_vm7, %v2600_v55, %v2616_v27  ;;  %v2619_v45 = vsel %vm2607_vm8, %v2597_v40, %v2600_v55 }
 0x1b5   : > { %v2620_v14 = vsel %vm2610_vm11, %v2606_v51, 1326507024  ;;  %v7248_v38 = vadd.s32 4294967294, %v1811_v12  ;;  %v2613_v21 = vsel %vm2609_vm7, %v2597_v40, %v2612_v59  ;;  %v2618_v54 = vsel %vm2608_vm0, %v2615_v2, %v2617_v3 }
 0x1b6   : > { %v2621_v43 = vsel %vm2609_vm7, %v2603_v7, %v2620_v14  ;;  %7623 = vcosq.f32 %v999_v63  ;;  %v9325_v16 = vmul.u32.u64.low %v9296_v35, %v2618_v54  ;;  %v9326_v10 = vmul.u32.u64.high %v9296_v35, %v2618_v54, %v9325_v16 }
 0x1b7   : > { %v2622_v44 = vsel %vm2608_vm0, %v2619_v45, %v2621_v43  ;;  %vm7249_vm4 = vcmp.lt.s32.totalorder %v7248_v38, 0  ;;  %v4144_v52 = vsel %vm10775_vm6, %v4135_v60, %v4031_v20  ;;  %7625 = vsinq.f32 %v999_v63 }
 0x1b8   : > { %v9330_v46 = vmul.u32.u64.low %v9296_v35, %v2622_v44  ;;  %v9331_v24 = vmul.u32.u64.high %v9296_v35, %v2622_v44, %v9330_v46  ;;  %v1814_v18 = vsel %vm7249_vm4, 0, %v7248_v38  ;;  %v2614_v48 = vsel %vm2608_vm0, %v2611_v6, %v2613_v21 }
 0x1b9   : > { %v9337_v40 = vpack.c.bf16 %v4144_v52, %v4117_v13  ;;  %v1815_v7 = vsub.s32 32, %v1814_v18  ;;  %v1816_v53 = vshll.u32 %v9290_v57, %v1814_v18  ;;  %v1819_v36 = vsub.s32 4294967266, %v1814_v18 }
 0x1ba   : > { %v1829_v15 = vsub.s32 4, %v9270_v5  ;;  %v2633_v55 = vadd.s32 1, %v9326_v10  ;;  %v3306_v51 = vand.u32 2139095040, %v9314_v62  ;;  %v1000_v42 = vsel %vm9266_vm5, 0, %v9284_v50 }
 0x1bb   : > { %4793 = vmatpush1.bf16.msra.mxu0 %v9337_v40  ;;  %v1817_v49 = vshrl.u32 %v1799_v33, %v1815_v7  ;;  %v1820_v59 = vadd.s32 127, %v1819_v36  ;;  %v2630_v13 = vmul.u32 %v9296_v35, %v2614_v48  ;;  %vm2632_vm14 = vc.u32 %v9331_v24, %v9325_v16 }
 0x1bc   : > { %vm1745_vm10 = vcmp.lt.s32.totalorder %v8998_v56, 0  ;;  %v1004_v27 = vadd.s32 3, %v1000_v42  ;;  %v2634_v12 = vsel %vm2632_vm14, %v2633_v55, %v9326_v10  ;;  %v3307_v31 = vshrl.u32 %v3306_v51, 23 }
 0x1bd   : > { %v1818_v57 = vor.u32 %v1817_v49, %v1816_v53  ;;  %v1821_v2 = vshll.u32 %v1820_v59, 23  ;;  %v1830_v63 = vsel %vm1745_vm10, %v1829_v15, %v9270_v5  ;;  %v9355_v50 = vand.u32 3, %v1000_v42 }
 0x1be   : > { %v2635_v35 = vadd.s32 %v2634_v12, %v2630_v13  ;;  %v4049_v3 = vcombine.high %v9238_v1, %v9238_v1  ;;  %vm9361_vm15 = vcmp.le.f32.partialorder %v1743_v61, 0.7853982  ;;  %v7306_v14 = vadd.s32 4294967169, %v3307_v31 }
 0x1bf   : > { %v1822_v33 = vor.u32 4788187, %v1821_v2  ;;  %v1825_v60 = vcvt.s32.f32 %v1818_v57  ;;  %v1832_v38 = vsel %vm9361_vm15, 0, %v1830_v63  ;;  %v1005_v43 = vand.u32 3, %v1004_v27 }
 0x1c0   : > { %v7624_v6 = vpop.eup %7623  ;;  %v2636_v21 = vadd.s32 536870912, %v2635_v35  ;;  %v3313_v44 = vadd.s32 1, %v7306_v14  ;;  %vm1419_vm2 = vcmp.eq.s32.totalorder %v9355_v50, 0  ;;  %vm1418_vm5 = vcmp.lt.s32.totalorder %v9355_v50, 2 }
 0x1c1   : > { %v1823_v5 = vand.u32 2147483647, %v1822_v33  ;;  %v7626_v54 = vpop.eup %7625  ;;  %v1011_v52 = vxor.u32 2147483648, %v7624_v6  ;;  %v1836_v61 = vadd.s32 3, %v1832_v38  ;;  %v4056_v18 = vrot.slane %v4049_v3, 6 }
 0x1c2   : > { %v9368_v46 = vshrl.u32 %v2636_v21, 30  ;;  %vm3314_vm8 = vcmp.gt.s32.totalorder %v3313_v44, 0  ;;  %v1008_v48 = vxor.u32 2147483648, %v7626_v54  ;;  %vm1007_vm11 = vcmp.eq.s32.totalorder %v1005_v43, 0 }
 0x1c3   : > { %v1826_v10 = vmul.f32 %v1825_v60, %v1823_v5  ;;  %v3315_v36 = vsel %vm3314_vm8, %v3313_v44, 0  ;;  %vm1010_vm7 = vcmp.eq.s32.totalorder %v1005_v43, 2  ;;  %vm10778_vm13 = vcmask 1041408  }
 0x1c4   : > { %v2638_v53 = vshll.u32 %v9368_v46, 30  ;;  %v3317_v15 = vand.u32 31, %v3315_v36  ;;  %v9374_v55 = vsel %vm10778_vm13, %v9251_v29, %v4056_v18  ;;  %vm1006_vm0 = vcmp.lt.s32.totalorder %v1005_v43, 2 }
 0x1c5   : > { %v1827_v7 = vxor.u32 2147483648, %v1826_v10  ;;  %vm1422_vm4 = vcmp.eq.s32.totalorder %v9355_v50, 2  ;;  %v9384_v59 = vand.u32 3, %v1836_v61  ;;  %v3303_v13 = vand.u32 2147483647, %v9314_v62 }
 0x1c6   : > { %v9379_v42 = vsub.s32 %v2635_v35, %v2638_v53  ;;  %v3318_v57 = vsub.s32 32, %v3317_v15  ;;  %vm1003_vm6 = vweird.f32 %v8885_v19  ;;  %v1009_v29 = vsel %vm1007_vm11, %v7624_v6, %v1008_v48  ;;  %v4621_v53 = vld [vmem:[%s10713_s10 + $0x10] sm:$0xff] }
 0x1c7   : > { %v1828_v51 = vsel %vm1745_vm10, %v1827_v7, %v1826_v10  ;;  %v1012_v2 = vsel %vm1010_vm7, %v1011_v52, %v7626_v54  ;;  %v4055_v63 = vrot.slane %v9238_v1, 6  ;;  %v9390_v12 = vand.u32 3, %v1832_v38  ;;  %v4619_v7 = vld [vmem:[%s10713_s10] sm:$0xff]  ;;  %4635 = vperm.xlu1 %7559, %v4621_v53  }
 0x1c8   : > { %v1831_v49 = vsel %vm9361_vm15, %v8998_v56, %v1828_v51  ;;  %v2641_v27 = vsub.s32 0, %v9379_v42  ;;  %v3930_v31 = vcombine.high %v8885_v19, %v8885_v19  ;;  %v1421_v33 = vsel %vm1419_vm2, %v7624_v6, %v1008_v48  ;;  %4625 = vperm.xlu0 %7558, %v4619_v7  }
 0x1c9   : > { %7627 = vcosq.f32 %v1831_v49  ;;  %v1424_v60 = vsel %vm1422_vm4, %v1011_v52, %v7626_v54  ;;  %v2631_v35 = vadd.s32 %v9325_v16, %v9331_v24  ;;  %v1013_v45 = vsel %vm1006_vm0, %v1009_v29, %v1012_v2  ;;  %v4620_v29 = vld [vmem:[%s10713_s10 + $0x8] sm:$0xff]  ;;  %v4622_v2 = vld [vmem:[%s10713_s10 + $0x18] sm:$0xff] }
 0x1ca   : > { %7629 = vsinq.f32 %v1831_v49  ;;  %v7279_v3 = vmin.u32 %v2641_v27, %v9379_v42  ;;  %v3310_v14 = vand.u32 8388607, %v3303_v13  ;;  %v3320_v5 = vshll.u32 %v7753_v26, %v3317_v15 }
 0x1cb   : > { %v3321_v38 = vshrl.u32 %v7754_v28, %v3318_v57  ;;  %vm1839_vm14 = vcmp.eq.s32.totalorder %v9384_v59, 0  ;;  %vm1842_vm10 = vcmp.eq.s32.totalorder %v9384_v59, 2  ;;  %v9408_v21 = vshrl.u32 %v3315_v36, 5  ;;  %4640 = vperm.xlu1 %7559, %v4622_v2  }
 0x1cc   : > { %v2643_v6 = vclz %v7279_v3  ;;  %v3323_v16 = vshll.u32 %v7754_v28, %v3317_v15  ;;  %v3324_v24 = vshrl.u32 %v7755_v30, %v3318_v57  ;;  %v3326_v54 = vshll.u32 %v7755_v30, %v3317_v15  ;;  %4630 = vperm.xlu0 %7558, %v4620_v29  }
 0x1cd   : > { %v3327_v43 = vshrl.u32 %v7756_v32, %v3318_v57  ;;  %v3329_v44 = vshll.u32 %v7756_v32, %v3317_v15  ;;  %v3330_v10 = vshrl.u32 %v7757_v34, %v3318_v57  ;;  %v9418_v52 = vsel %vm1418_vm5, %v1421_v33, %v1424_v60 }
 0x1ce   : > { %v7280_v61 = vadd.s32 4294967294, %v2643_v6  ;;  %v3332_v18 = vshll.u32 %v7757_v34, %v3317_v15  ;;  %v3333_v48 = vshrl.u32 %v7758_v41, %v3318_v57  ;;  %vm1838_vm15 = vcmp.lt.s32.totalorder %v9384_v59, 2 }
 0x1cf   : > { %v3311_v36 = vor.u32 8388608, %v3310_v14  ;;  %v3319_v50 = vshrl.u32 %v7753_v26, %v3318_v57  ;;  %v3322_v51 = vor.u32 %v3321_v38, %v3320_v5  ;;  %v3331_v49 = vor.u32 %v3330_v10, %v3329_v44 }
 0x1d0   : > { %vm7281_vm2 = vcmp.lt.s32.totalorder %v7280_v61, 0  ;;  %v3325_v15 = vor.u32 %v3324_v24, %v3323_v16  ;;  %vm3335_vm5 = vcmp.lt.s32.totalorder %v9408_v21, 1  ;;  %vm3338_vm8 = vcmp.lt.s32.totalorder %v9408_v21, 4 }
 0x1d1   : > { %v2646_v27 = vsel %vm7281_vm2, 0, %v7280_v61  ;;  %v3328_v57 = vor.u32 %v3327_v43, %v3326_v54  ;;  %v3334_v33 = vor.u32 %v3333_v48, %v3332_v18  ;;  %vm3337_vm11 = vcmp.lt.s32.totalorder %v9408_v21, 3  ;;  %v4951_v61 = vld [vmem:[%s10714_s11 + $0x8] sm:$0xff] }
 0x1d2   : > { %vm1835_vm7 = vweird.f32 %v8998_v56  ;;  %v2647_v3 = vsub.s32 32, %v2646_v27  ;;  %v2648_v14 = vshll.u32 %v9379_v42, %v2646_v27  ;;  %v2651_v5 = vsub.s32 4294967266, %v2646_v27  ;;  %4961 = vperm.xlu1 %7559, %v4951_v61  }
 0x1d3   : > { %v9439_v60 = vpop.eup %7627  ;;  %v3344_v38 = vsel %vm3338_vm8, %v3331_v49, 920167782  ;;  %v9449_v16 = vsel %vm1003_vm6, nan, %v1013_v45  ;;  %vm2577_vm13 = vcmp.lt.s32.totalorder %v9140_v23, 0  ;;  %v2661_v54 = vsub.s32 4, %v9368_v46  ;;  %v4950_v45 = vld [vmem:[%s10714_s11] sm:$0xff] }
 0x1d4   : > { %v9445_v6 = vpop.eup %7629  ;;  %v1843_v24 = vxor.u32 2147483648, %v9439_v60  ;;  %v9454_v43 = vshll.u32 %v3311_v36, 8  ;;  %v2649_v44 = vshrl.u32 %v2631_v35, %v2647_v3  ;;  %v2652_v10 = vadd.s32 127, %v2651_v5  ;;  %v7686_v5 = vld [vmem:[%s7909_s21 + $0x18] sm:$0x77]  ;;  %4956 = vperm.xlu0 %7558, %v4950_v45   ;;  %s10655_s21 = scalar_lea.hbm %s10721_s18, %s7438_s24  ;;  %s7693_s24 = sshll.u32 %s7761_s19, 4  ;;  %s7694_s24 = int_to_ptr.vmem [resolvable:$false] %s7693_s24 }
 0x1d5   : > { %v1840_v42 = vxor.u32 2147483648, %v9445_v6  ;;  %vm3336_vm0 = vcmp.lt.s32.totalorder %v9408_v21, 2  ;;  %v3340_v18 = vsel %vm3338_vm8, %v3328_v57, 2102212464  ;;  %v3343_v48 = vsel %vm3335_vm5, %v3322_v51, %v3325_v15  ;;  %v5255_v21 = vld [vmem:[%s10715_s12] sm:$0xff] }
 0x1d6   : > { %v3345_v35 = vsel %vm3337_vm11, %v3328_v57, %v3344_v38  ;;  %v3348_v7 = vsel %vm3338_vm8, %v3334_v33, 1326507024  ;;  %vm2250_vm4 = vcmp.lt.s32.totalorder %v9390_v12, 2  ;;  %vm9475_vm2 = vcmp.le.f32.partialorder %v2575_v58, 0.7853982 }
 0x1d7   : > { %v2650_v36 = vor.u32 %v2649_v44, %v2648_v14  ;;  %v2653_v29 = vshll.u32 %v2652_v10, 23  ;;  %v3339_v2 = vsel %vm3335_vm5, %v3319_v50, %v3322_v51  ;;  %v3347_v27 = vsel %vm3335_vm5, %v3325_v15, %v3328_v57  ;;  %v4952_v44 = vld [vmem:[%s10714_s11 + $0x10] sm:$0xff] }
 0x1d8   : > { %v1841_v33 = vsel %vm1839_vm14, %v9439_v60, %v1840_v42  ;;  %v1844_v3 = vsel %vm1842_vm10, %v1843_v24, %v9445_v6  ;;  %v3349_v58 = vsel %vm3337_vm11, %v3331_v49, %v3348_v7  ;;  %v9492_v14 = vmul.f32 8.0, %v7686_v5  ;;  %v4953_v49 = vld [vmem:[%s10714_s11 + $0x18] sm:$0xff]  ;;  %4966 = vperm.xlu0 %7558, %v4952_v44  }
 0x1d9   : > { %v2654_v50 = vor.u32 4788187, %v2653_v29  ;;  %v2657_v51 = vcvt.s32.f32 %v2650_v36  ;;  %v3341_v57 = vsel %vm3337_vm11, %v3325_v15, %v3340_v18  ;;  %v3346_v38 = vsel %vm3336_vm0, %v3343_v48, %v3345_v35  ;;  %4971 = vperm.xlu1 %7559, %v4953_v49  }
 0x1da   : > { %v9507_v10 = vsel %vm1003_vm6, nan, %v9418_v52  ;;  %vm2251_vm14 = vcmp.eq.s32.totalorder %v9390_v12, 0  ;;  %vm2254_vm10 = vcmp.eq.s32.totalorder %v9390_v12, 2  ;;  %v3350_v15 = vsel %vm3336_vm0, %v3347_v27, %v3349_v58 }
 0x1db   : > { %v1845_v45 = vsel %vm1838_vm15, %v1841_v33, %v1844_v3  ;;  %v2655_v61 = vand.u32 2147483647, %v2654_v50  ;;  %v9516_v18 = vmul.u32.u64.low %v9454_v43, %v3350_v15  ;;  %v9517_v48 = vmul.u32.u64.high %v9454_v43, %v3350_v15, %v9516_v18 }
 0x1dc   : > { %v3942_v35 = vcombine.high %v9449_v16, %v9449_v16  ;;  %v3342_v52 = vsel %vm3336_vm0, %v3339_v2, %v3341_v57  ;;  %v9524_v7 = vmul.u32.u64.low %v9454_v43, %v3346_v38  ;;  %v9525_v36 = vmul.u32.u64.high %v9454_v43, %v3346_v38, %v9524_v7  ;;  %v5256_v2 = vld [vmem:[%s10715_s12 + $0x8] sm:$0xff]  ;;  %5261 = vperm.xlu0 %7558, %v5255_v21   ;;  %v5258_v57 = vld [vmem:[%s10715_s12 + $0x18] sm:$0xff] }
 0x1dd   : > { %v2658_v59 = vmul.f32 %v2657_v51, %v2655_v61  ;;  %v2662_v29 = vsel %vm2577_vm13, %v2661_v54, %v9368_v46  ;;  %v3949_v27 = vrot.slane %v9449_v16, 5  ;;  %v3410_v33 = vand.u32 2139095040, %v9492_v14  ;;  %5266 = vperm.xlu1 %7559, %v5256_v2  }
 0x1de   : > { %v1846_v3 = vsel %vm1835_vm7, nan, %v1845_v45  ;;  %v2256_v58 = vsel %vm2254_vm10, %v1843_v24, %v9445_v6  ;;  %v3966_v46 = vcombine.high %v9507_v10, %v9507_v10  ;;  %vm10781_vm6 = vcmask 1041408  }
 0x1df   : > { %v9551_v16 = vsel %vm10781_vm6, %v4031_v20, %v4055_v63  ;;  %v2253_v54 = vsel %vm2251_vm14, %v9439_v60, %v1840_v42  ;;  %v2659_v50 = vxor.u32 2147483648, %v2658_v59  ;;  %v3358_v51 = vmul.u32 %v9454_v43, %v3342_v52  ;;  %v5257_v42 = vld [vmem:[%s10715_s12 + $0x10] sm:$0xff] }
 0x1e0   : > { %vm3360_vm15 = vc.u32 %v9517_v48, %v9524_v7  ;;  %v2664_v6 = vsel %vm9475_vm2, 0, %v2662_v29  ;;  %v3361_v1 = vadd.s32 1, %v9525_v36  ;;  %v3407_v8 = vand.u32 2147483647, %v9492_v14  ;;  %5271 = vperm.xlu0 %7558, %v5257_v42   ;;  %v5559_v29 = vld [vmem:[%s10716_s13] sm:$0xff] }
 0x1e1   : > { %v3411_v24 = vshrl.u32 %v3410_v33, 23  ;;  %v2660_v20 = vsel %vm2577_vm13, %v2659_v50, %v2658_v59  ;;  %v3950_v63 = vrot.slane %v3942_v35, 5  ;;  %v3973_v60 = vrot.slane %v9507_v10, 2  ;;  %5276 = vperm.xlu1 %7559, %v5258_v57  }
 0x1e2   : > { %v3990_v43 = vcombine.high %v1846_v3, %v1846_v3  ;;  %v2257_v38 = vsel %vm2250_vm4, %v2253_v54, %v2256_v58  ;;  %v2663_v44 = vsel %vm9475_vm2, %v9140_v23, %v2660_v20  ;;  %v3362_v49 = vsel %vm3360_vm15, %v3361_v1, %v9525_v36  ;;  %v5562_v1 = vld [vmem:[%s10716_s13 + $0x18] sm:$0xff] }
 0x1e3   : > { %v7310_v15 = vadd.s32 4294967169, %v3411_v24  ;;  %7631 = vcosq.f32 %v2663_v44  ;;  %v2668_v10 = vadd.s32 3, %v2664_v6  ;;  %v3974_v45 = vrot.slane %v3966_v46, 2 }
 0x1e4   : > { %v3363_v61 = vadd.s32 %v3362_v49, %v3358_v51  ;;  %7633 = vsinq.f32 %v2663_v44  ;;  %v4110_v18 = vsel %vm4103_vm12, %v7686_v5, %v3949_v27  ;;  %v3414_v35 = vand.u32 8388607, %v3407_v8  ;;  %v5560_v5 = vld [vmem:[%s10716_s13 + $0x8] sm:$0xff]  ;;  %5565 = vperm.xlu0 %7558, %v5559_v29  }
 0x1e5   : > { %v3417_v52 = vadd.s32 1, %v7310_v15  ;;  %v2258_v12 = vsel %vm1835_vm7, nan, %v2257_v38  ;;  %v3997_v53 = vrot.slane %v1846_v3, 7  ;;  %v3998_v59 = vrot.slane %v3990_v43, 7  ;;  %5570 = vperm.xlu1 %7559, %v5560_v5  }
 0x1e6   : > { %v3364_v36 = vadd.s32 536870912, %v3363_v61  ;;  %v9589_v27 = vand.u32 3, %v2664_v6  ;;  %v4111_v33 = vsel %vm4103_vm12, %v3930_v31, %v3950_v63  ;;  %v2669_v56 = vand.u32 3, %v2668_v10  ;;  %v5561_v6 = vld [vmem:[%s10716_s13 + $0x10] sm:$0xff]  ;;  %v5864_v10 = vld [vmem:[%s10717_s14] sm:$0xff] }
 0x1e7   : > { %vm3418_vm5 = vcmp.gt.s32.totalorder %v3417_v52, 0  ;;  %vm2667_vm8 = vweird.f32 %v9140_v23  ;;  %v4014_v3 = vcombine.low %v2258_v12, %v2258_v12  ;;  %vm10782_vm11 = vcmask 1045504  }
 0x1e8   : > { %v9595_v21 = vshrl.u32 %v3364_v36, 30  ;;  %v3419_v2 = vsel %vm3418_vm5, %v3417_v52, 0  ;;  %v9599_v58 = vsel %vm10782_vm11, %v4110_v18, %v3973_v60  ;;  %v3415_v46 = vor.u32 8388608, %v3414_v35  ;;  %vm10783_vm7 = vmmov %vm10782_vm11  ;;  %5575 = vperm.xlu0 %7558, %v5561_v6  }
 0x1e9   : > { %v3421_v54 = vand.u32 31, %v3419_v2  ;;  %v9602_v50 = vsel %vm10783_vm7, %v4111_v33, %v3974_v45  ;;  %v4129_v19 = vsel %vm4121_vm1, %v3974_v45, %v3998_v59  ;;  %v4128_v31 = vsel %vm4121_vm1, %v3973_v60, %v3997_v53  ;;  %5580 = vperm.xlu1 %7559, %v5562_v1  }
 0x1ea   : > { %v3366_v51 = vshll.u32 %v9595_v21, 30  ;;  %vm3082_vm13 = vcmp.lt.s32.totalorder %v9589_v27, 2  ;;  %vm3083_vm0 = vcmp.eq.s32.totalorder %v9589_v27, 0  ;;  %vm3086_vm4 = vcmp.eq.s32.totalorder %v9589_v27, 2 }
 0x1eb   : > { %v3422_v24 = vsub.s32 32, %v3421_v54  ;;  %vm2670_vm2 = vcmp.lt.s32.totalorder %v2669_v56, 2  ;;  %vm2671_vm14 = vcmp.eq.s32.totalorder %v2669_v56, 0  ;;  %vm2674_vm10 = vcmp.eq.s32.totalorder %v2669_v56, 2 }
 0x1ec   : > { %v9616_v20 = vsub.s32 %v3363_v61, %v3366_v51  ;;  %v9619_v63 = vsel %vm10730_vm3, %v4129_v19, %v2258_v12  ;;  %v4137_v60 = vsel %vm10730_vm3, %v4128_v31, %v4014_v3  ;;  %v9624_v43 = vadd.s32 %v9524_v7, %v9517_v48  ;;  %v5865_v48 = vld [vmem:[%s10717_s14 + $0x8] sm:$0xff]  ;;  %5870 = vperm.xlu0 %7558, %v5864_v10   ;;  %v5866_v31 = vld [vmem:[%s10717_s14 + $0x10] sm:$0xff] }
 0x1ed   : > { %v9626_v42 = vshll.u32 %v3415_v46, 8  ;;  %v7632_v57 = vpop.eup %7631  ;;  %v3424_v44 = vshll.u32 %v7753_v26, %v3421_v54  ;;  %v3427_v49 = vshll.u32 %v7754_v28, %v3421_v54  ;;  %v3430_v15 = vshll.u32 %v7755_v30, %v3421_v54  ;;  %5875 = vperm.xlu1 %7559, %v5865_v48  }
 0x1ee   : > { %v3369_v38 = vsub.s32 0, %v9616_v20  ;;  %v7634_v7 = vpop.eup %7633  ;;  %v2675_v45 = vxor.u32 2147483648, %v7632_v57  ;;  %v3425_v61 = vshrl.u32 %v7754_v28, %v3422_v24  ;;  %v3428_v18 = vshrl.u32 %v7755_v30, %v3422_v24 }
 0x1ef   : > { %v3433_v35 = vshll.u32 %v7756_v32, %v3421_v54  ;;  %v2672_v52 = vxor.u32 2147483648, %v7634_v7  ;;  %v3431_v53 = vshrl.u32 %v7756_v32, %v3422_v24  ;;  %v9644_v59 = vshll.u32 %v7757_v34, %v3421_v54 }
 0x1f0   : > { %v7307_v12 = vmin.u32 %v3369_v38, %v9616_v20  ;;  %v2676_v36 = vsel %vm2674_vm10, %v2675_v45, %v7634_v7  ;;  %v3088_v29 = vsel %vm3086_vm4, %v2675_v45, %v7634_v7  ;;  %v9649_v5 = vshrl.u32 %v3419_v2, 5  ;;  %v5867_v2 = vld [vmem:[%s10717_s14 + $0x18] sm:$0xff]  ;;  %5880 = vperm.xlu0 %7558, %v5866_v31  }
 0x1f1   : > { %v3423_v33 = vshrl.u32 %v7753_v26, %v3422_v24  ;;  %v2673_v3 = vsel %vm2671_vm14, %v7632_v57, %v2672_v52  ;;  %v3085_v46 = vsel %vm3083_vm0, %v7632_v57, %v2672_v52  ;;  %v3434_v54 = vshrl.u32 %v7757_v34, %v3422_v24  ;;  %5885 = vperm.xlu1 %7559, %v5867_v2  }
 0x1f2   : > { %v3371_v19 = vclz %v7307_v12  ;;  %v2677_v51 = vsel %vm2670_vm2, %v2673_v3, %v2676_v36  ;;  %v3089_v6 = vsel %vm3082_vm13, %v3085_v46, %v3088_v29  ;;  %v3426_v1 = vor.u32 %v3425_v61, %v3424_v44  ;;  %v6169_v61 = vld [vmem:[%s10718_s15 + $0x8] sm:$0xff] }
 0x1f3   : > { %v3429_v38 = vor.u32 %v3428_v18, %v3427_v49  ;;  %v9667_v57 = vsel %vm2667_vm8, nan, %v2677_v51  ;;  %v9671_v10 = vsel %vm2667_vm8, nan, %v3089_v6  ;;  %v3432_v7 = vor.u32 %v3431_v53, %v3430_v15  ;;  %v6168_v15 = vld [vmem:[%s10718_s15] sm:$0xff] }
 0x1f4   : > { %v7308_v48 = vadd.s32 4294967294, %v3371_v19  ;;  %v4026_v45 = vcombine.high %v9667_v57, %v9667_v57  ;;  %v4033_v56 = vrot.slane %v9667_v57, 1  ;;  %v4050_v27 = vcombine.high %v9671_v10, %v9671_v10  ;;  %6174 = vperm.xlu0 %7558, %v6168_v15  }
 0x1f5   : > { %v4057_v44 = vrot.slane %v9671_v10, 6  ;;  %v3435_v49 = vor.u32 %v3434_v54, %v3433_v35  ;;  %v3437_v23 = vshrl.u32 %v7758_v41, %v3422_v24  ;;  %vm3439_vm15 = vcmp.lt.s32.totalorder %v9649_v5, 1  ;;  %6179 = vperm.xlu1 %7559, %v6169_v61  }
 0x1f6   : > { %vm7309_vm6 = vcmp.lt.s32.totalorder %v7308_v48, 0  ;;  %v4034_v18 = vrot.slane %v4026_v45, 1  ;;  %vm10784_vm5 = vcmask 1046528   ;;  %vm3440_vm8 = vcmp.lt.s32.totalorder %v9649_v5, 2 }
 0x1f7   : > { %v4146_v52 = vsel %vm10784_vm5, %v4137_v60, %v4033_v56  ;;  %v3374_v12 = vsel %vm7309_vm6, 0, %v7308_v48  ;;  %vm10785_vm11 = vmmov %vm10784_vm5  ;;  %v3438_v3 = vor.u32 %v3437_v23, %v9644_v59  ;;  %vm3441_vm7 = vcmp.lt.s32.totalorder %v9649_v5, 3  ;;  %v6473_v23 = vld [vmem:[%s10719_s16] sm:$0xff] }
 0x1f8   : > { %v9690_v35 = vpack.c.bf16 %v4146_v52, %v9599_v58  ;;  %v3375_v24 = vsub.s32 32, %v3374_v12  ;;  %v3376_v53 = vshll.u32 %v9616_v20, %v3374_v12  ;;  %v3379_v36 = vsub.s32 4294967266, %v3374_v12 }
 0x1f9   : > { %v4147_v29 = vsel %vm10785_vm11, %v9619_v63, %v4034_v18  ;;  %vm3442_vm13 = vcmp.lt.s32.totalorder %v9649_v5, 4  ;;  %v3443_v20 = vsel %vm3439_vm15, %v3423_v33, %v3426_v1  ;;  %v6170_v63 = vld [vmem:[%s10718_s15 + $0x10] sm:$0xff]  ;;  %v3447_v19 = vsel %vm3439_vm15, %v3426_v1, %v3429_v38  ;;  %v6171_v33 = vld [vmem:[%s10718_s15 + $0x18] sm:$0xff] }
 0x1fa   : > { %v9699_v60 = vpack.c.bf16 %v4147_v29, %v9602_v50  ;;  %v3377_v58 = vshrl.u32 %v9624_v43, %v3375_v24  ;;  %v3380_v46 = vadd.s32 127, %v3379_v36  ;;  %v3444_v59 = vsel %vm3442_vm13, %v3432_v7, 2102212464  ;;  %6184 = vperm.xlu0 %7558, %v6170_v63   ;;  %6189 = vperm.xlu1 %7559, %v6171_v33   ;;  %v6477_v63 = vld [vmem:[%s10719_s16 + $0x20] sm:$0x1] }
 0x1fb   : > { %v3448_v50 = vsel %vm3442_vm13, %v3435_v49, 920167782  ;;  %v3451_v43 = vsel %vm3439_vm15, %v3429_v38, %v3432_v7  ;;  %v3445_v2 = vsel %vm3441_vm7, %v3429_v38, %v3444_v59  ;;  %v3389_v6 = vsub.s32 4, %v9595_v21 }
 0x1fc   : > { %4845 = vmatprep.subr.bf16.mxu1 %v9699_v60  ;;  %v3378_v54 = vor.u32 %v3377_v58, %v3376_v53  ;;  %v3381_v31 = vshll.u32 %v3380_v46, 23  ;;  %v3449_v51 = vsel %vm3441_vm7, %v3432_v7, %v3448_v50  ;;  %v3452_v57 = vsel %vm3442_vm13, %v3438_v3, 1326507024  ;;  %v6476_v58 = vld [vmem:[%s10719_s16 + $0x18] sm:$0xff]  ;;  %v9778_v50 = vpop.f32.mrb[0].mxu0 }
 0x1fd   : > { %4846 = vmatpush1.bf16.msra.mxu1 %v9690_v35  ;;  %v3450_v1 = vsel %vm3440_vm8, %v3447_v19, %v3449_v51  ;;  %v4058_v10 = vrot.slane %v4050_v27, 6  ;;  %v3446_v38 = vsel %vm3440_vm8, %v3443_v20, %v3445_v2  ;;  %v3453_v7 = vsel %vm3441_vm7, %v3435_v49, %v3452_v57  ;;  %v6474_v49 = vld [vmem:[%s10719_s16 + $0x8] sm:$0xff] }
 0x1fe   : > { %v3382_v48 = vor.u32 4788187, %v3381_v31  ;;  %v3385_v45 = vcvt.s32.f32 %v3378_v54  ;;  %v3454_v15 = vsel %vm3440_vm8, %v3451_v43, %v3453_v7  ;;  %vm10786_vm0 = vcmask 1041408   ;;  %6480 = vperm.xlu0 %7558, %v6473_v23   ;;  %6485 = vperm.xlu1 %7559, %v6474_v49   ;;  %v9780_v43 = vpop.f32.mrb[1].mxu0 }
 0x1ff   : > { %v9739_v61 = vmul.u32.u64.low %v9626_v42, %v3450_v1  ;;  %v9740_v27 = vmul.u32.u64.high %v9626_v42, %v3450_v1, %v9739_v61  ;;  %v9744_v52 = vsel %vm10786_vm0, %v4034_v18, %v4058_v10  ;;  %vm10787_vm4 = vmmov %vm10786_vm0  ;;  %v3462_v29 = vmul.u32 %v9626_v42, %v3446_v38  ;;  %v6475_v18 = vld [vmem:[%s10719_s16 + $0x10] sm:$0xff]  ;;  %v9784_v31 = vpop.f32.mrb[2].mxu0 }
 0x200   : > { %v3383_v12 = vand.u32 2147483647, %v3382_v48  ;;  %v9750_v24 = vmul.u32.u64.low %v9626_v42, %v3454_v15  ;;  %v9751_v53 = vmul.u32.u64.high %v9626_v42, %v3454_v15, %v9750_v24  ;;  %v9754_v5 = vsel %vm10787_vm4, %v4033_v56, %v4057_v44  ;;  %v9786_v2 = vpop.f32.mrb[3].mxu0 }
 0x201   : > { %vm3305_vm2 = vcmp.lt.s32.totalorder %v9314_v62, 0  ;;  %v3465_v3 = vadd.s32 1, %v9740_v27  ;;  %vm3304_vm14 = vcmp.le.f32.partialorder %v3303_v13, 0.7853982  ;;  %v6841_v13 = vld [vmem:[%s10720_s17] sm:$0xff]  ;;  %vm3395_vm13 = vweird.f32 %v9314_v62 }
 0x202   : > { %v3386_v36 = vmul.f32 %v3385_v45, %v3383_v12  ;;  %v3390_v44 = vsel %vm3305_vm2, %v3389_v6, %v9595_v21  ;;  %vm3464_vm10 = vc.u32 %v9751_v53, %v9739_v61  ;;  %6490 = vperm.xlu0 %7558, %v6475_v18   ;;  %6495 = vperm.xlu1 %7559, %v6476_v58   ;;  %v9789_v6 = vpop.f32.mrb[4].mxu0  ;;  %vm3409_vm4 = vcmp.lt.s32.totalorder %v9492_v14, 0 }
 0x203   : > { %v3466_v42 = vsel %vm3464_vm10, %v3465_v3, %v9740_v27  ;;  %v3392_v19 = vsel %vm3304_vm14, 0, %v3390_v44  ;;  %v9791_v1 = vpop.f32.mrb[5].mxu0 }
 0x204   : > { %v3387_v56 = vxor.u32 2147483648, %v3386_v36  ;;  %v3467_v20 = vadd.s32 %v3466_v42, %v3462_v29  ;;  %v3396_v33 = vadd.s32 3, %v3392_v19  ;;  %v3810_v10 = vand.u32 3, %v3392_v19  ;;  %v9793_v45 = vpop.f32.mrb[6].mxu0 }
 0x205   : > { %v9795_v38 = vpop.f32.mrb[7].mxu0 }
 0x206   : > { %v3388_v46 = vsel %vm3305_vm2, %v3387_v56, %v3386_v36  ;;  %v3468_v21 = vadd.s32 536870912, %v3467_v20  ;;  %6500 = vperm.xlu0 %7558, %v6477_v63   ;;  %6844 = vperm.xlu1 %7559, %v6841_v13   ;;  %v3397_v57 = vand.u32 3, %v3396_v33  ;;  %vm3815_vm15 = vcmp.eq.s32.totalorder %v3810_v10, 2 }
 0x207   : > { %v3391_v59 = vsel %vm3304_vm14, %v9314_v62, %v3388_v46  ;;  %vm3812_vm8 = vcmp.eq.s32.totalorder %v3810_v10, 0  ;;  %vm3811_vm7 = vcmp.lt.s32.totalorder %v3810_v10, 2  ;;  %vm3408_vm2 = vcmp.le.f32.partialorder %v3407_v8, 0.7853982  ;;  %v7688_v8 = vld [vmem:[%s10761_s26 + $0x8] sm:$0xff]  }
 0x208   : > { %7635 = vcosq.f32 %v3391_v59  ;;  %v9782_v54 = vshrl.u32 %v3468_v21, 30  ;;  %vm3402_vm6 = vcmp.eq.s32.totalorder %v3397_v57, 2  ;;  %vm3399_vm5 = vcmp.eq.s32.totalorder %v3397_v57, 0 }
 0x209   : > { %7637 = vsinq.f32 %v3391_v59  ;;  %vm3398_vm11 = vcmp.lt.s32.totalorder %v3397_v57, 2  ;;  %vm10788_vm14 = vcmask 220160  }
 0x20a   : > { %v3470_v51 = vshll.u32 %v9782_v54, 30  ;;  %vm10790_vm10 = vmmov %vm10788_vm14 }
 0x20c   : > { %v3471_v48 = vsub.s32 %v3467_v20, %v3470_v51  ;;  %v3463_v20 = vadd.s32 %v9739_v61, %v9751_v53 }
 0x20e   : > { %v3473_v7 = vsub.s32 0, %v3471_v48 }
 0x210   : > { %v7311_v15 = vmin.u32 %v3473_v7, %v3471_v48 }
 0x212   : > { %v7636_v23 = vpop.eup %7635  ;;  %v3475_v24 = vclz %v7311_v15 }
 0x213   : > { %v7638_v27 = vpop.eup %7637  ;;  %v3403_v49 = vxor.u32 2147483648, %v7636_v23 }
 0x214   : > { %v3400_v12 = vxor.u32 2147483648, %v7638_v27  ;;  %v7312_v58 = vadd.s32 4294967294, %v3475_v24 }
 0x215   : > { %v3404_v36 = vsel %vm3402_vm6, %v3403_v49, %v7638_v27  ;;  %v3817_v29 = vsel %vm3815_vm15, %v3403_v49, %v7638_v27 }
 0x216   : > { %v3401_v18 = vsel %vm3399_vm5, %v7636_v23, %v3400_v12  ;;  %v3814_v3 = vsel %vm3812_vm8, %v7636_v23, %v3400_v12  ;;  %vm7313_vm0 = vcmp.lt.s32.totalorder %v7312_v58, 0 }
 0x217   : > { %v3405_v56 = vsel %vm3398_vm11, %v3401_v18, %v3404_v36  ;;  %v3818_v44 = vsel %vm3811_vm7, %v3814_v3, %v3817_v29  ;;  %v3478_v19 = vsel %vm7313_vm0, 0, %v7312_v58  ;;  %v3493_v36 = vsub.s32 4, %v9782_v54  ;;  %v7687_v3 = vld [vmem:[%s10761_s26] sm:$0xff]   ;;  %vm10791_vm0 = vmmov %vm10790_vm10 }
 0x218   : > { %v3406_v42 = vsel %vm3395_vm13, nan, %v3405_v56  ;;  %v3819_v46 = vsel %vm3395_vm13, nan, %v3818_v44  ;;  %v3479_v21 = vsub.s32 32, %v3478_v19  ;;  %v3480_v33 = vshll.u32 %v3471_v48, %v3478_v19 }
 0x219   : > { %v4073_v63 = vcombine.high %v3406_v42, %v3406_v42  ;;  %v4079_v59 = vrot.slane %v3406_v42, 3  ;;  %v4097_v13 = vcombine.high %v3819_v46, %v3819_v46  ;;  %v3483_v62 = vsub.s32 4294967266, %v3478_v19 }
 0x21a   : > { %v3481_v10 = vshrl.u32 %v3463_v20, %v3479_v21  ;;  %v3494_v18 = vsel %vm3409_vm4, %v3493_v36, %v9782_v54  ;;  %v10789_v58 = vmov 0   ;;  %vm3499_vm13 = vweird.f32 %v9492_v14 }
 0x21b   : > { %v4080_v51 = vrot.slane %v4073_v63, 3  ;;  %v4162_v57 = vsel %vm4157_vm9, %v9551_v16, %v4079_v59  ;;  %v3484_v7 = vadd.s32 127, %v3483_v62  ;;  %v3496_v42 = vsel %vm3408_vm2, 0, %v3494_v18 }
 0x21c   : > { %v4178_v23 = vpack.c.bf16 %v3819_v46, %v4162_v57  ;;  %v3482_v61 = vor.u32 %v3481_v10, %v3480_v33  ;;  %v3500_v46 = vadd.s32 3, %v3496_v42  ;;  %v3913_v19 = vand.u32 3, %v3496_v42 }
 0x21d   : > { %v4163_v15 = vsel %vm4157_vm9, %v9374_v55, %v4080_v51  ;;  %v3485_v53 = vshll.u32 %v3484_v7, 23 }
 0x21e   : > { %v4179_v27 = vpack.c.bf16 %v4097_v13, %v4163_v15  ;;  %v9805_v49 = vand.u32 %v8648_v4, %v4178_v23  ;;  %v3489_v24 = vcvt.s32.f32 %v3482_v61  ;;  %v3501_v59 = vand.u32 3, %v3500_v46 }
 0x21f   : > { %v3486_v48 = vor.u32 4788187, %v3485_v53  ;;  %vm3918_vm15 = vcmp.eq.s32.totalorder %v3913_v19, 2  ;;  %vm3915_vm8 = vcmp.eq.s32.totalorder %v3913_v19, 0  ;;  %vm3914_vm7 = vcmp.lt.s32.totalorder %v3913_v19, 2 }
 0x220   : > { %v9808_v12 = vand.u32 %v8648_v4, %v4179_v27  ;;  %vm3506_vm6 = vcmp.eq.s32.totalorder %v3501_v59, 2  ;;  %vm3503_vm5 = vcmp.eq.s32.totalorder %v3501_v59, 0  ;;  %vm3502_vm11 = vcmp.lt.s32.totalorder %v3501_v59, 2 }
 0x221   : > { %v3487_v16 = vand.u32 2147483647, %v3486_v48 }
 0x222   : > { %4794 = vmatprep.subr.bf16.mxu0 %v9808_v12 }
 0x223   : > { %4795 = vmatpush1.bf16.msra.mxu0 %v9805_v49  ;;  %v3490_v29 = vmul.f32 %v3489_v24, %v3487_v16 }
 0x225   : > { %v3491_v55 = vxor.u32 2147483648, %v3490_v29 }
 0x226   : > { %7352 = vmatmul.mubr.msk.bf16.vlgmr.msra.gmra.mrb[8].mxu0 %vm10788_vm14, %v7687_v3 }
 0x227   : > { %4834 = vmatprep.mubr.bf16.mxu0 %v10789_v58  ;;  %v3492_v56 = vsel %vm3409_vm4, %v3491_v55, %v3490_v29  ;;  %vm10792_vm4 = vmmov %vm10791_vm0 }
 0x228   : > { %v3495_v44 = vsel %vm3408_vm2, %v9492_v14, %v3492_v56  ;;  %vm5593_vm2 = vcmask 482304  }
 0x229   : > { %7639 = vcosq.f32 %v3495_v44 }
 0x22a   : > { %7641 = vsinq.f32 %v3495_v44 }
 0x22e   : > { %7353 = vmatmul.mubr.msk.bf16.gmra.mrb[12].mxu0 %vm10790_vm10, %v7688_v8 }
 0x22f   : > { %5023 = vmatprep.mubr.bf16.mxu0 %v10789_v58 }
 0x232   : > { %v4773_v20 = vpop.f32.mrb[0].mxu1 }
 0x233   : > { %v4775_v54 = vpop.f32.mrb[1].mxu1  ;;  %v7640_v21 = vpop.eup %7639 }
 0x234   : > { %v9827_v63 = vpop.f32.mrb[2].mxu1  ;;  %v7642_v33 = vpop.eup %7641  ;;  %v3507_v62 = vxor.u32 2147483648, %v7640_v21 }
 0x235   : > { %v9830_v13 = vpop.f32.mrb[3].mxu1  ;;  %v3504_v57 = vxor.u32 2147483648, %v7642_v33 }
 0x236   : > { %v3508_v7 = vsel %vm3506_vm6, %v3507_v62, %v7642_v33  ;;  %v3920_v23 = vsel %vm3918_vm15, %v3507_v62, %v7642_v33 }
 0x237   : > { %v3505_v27 = vsel %vm3503_vm5, %v7640_v21, %v3504_v57  ;;  %v3917_v61 = vsel %vm3915_vm8, %v7640_v21, %v3504_v57 }
 0x238   : > { %v3509_v48 = vsel %vm3502_vm11, %v3505_v27, %v3508_v7  ;;  %v3921_v24 = vsel %vm3914_vm7, %v3917_v61, %v3920_v23 }
 0x239   : > { %v3510_v16 = vsel %vm3499_vm13, nan, %v3509_v48  ;;  %v3922_v36 = vsel %vm3499_vm13, nan, %v3921_v24 }
 0x23a   : > { %v4783_v51 = vpop.f32.mrb[4].mxu1  ;;  %v4074_v29 = vcombine.high %v3510_v16, %v3510_v16  ;;  %v4081_v55 = vrot.slane %v3510_v16, 3  ;;  %v4098_v18 = vcombine.high %v3922_v36, %v3922_v36 }
 0x23b   : > { %v4785_v10 = vpop.f32.mrb[5].mxu1 }
 0x23c   : > { %v4787_v15 = vpop.f32.mrb[6].mxu1  ;;  %v4082_v56 = vrot.slane %v4074_v29, 3  ;;  %v4164_v44 = vsel %vm4157_vm9, %v9754_v5, %v4081_v55 }
 0x23d   : > { %v4789_v53 = vpop.f32.mrb[7].mxu1  ;;  %v4180_v42 = vpack.c.bf16 %v3922_v36, %v4164_v44 }
 0x23e   : > { %v4165_v14 = vsel %vm4157_vm9, %v9744_v52, %v4082_v56  ;;  %vm4984_vm9 = vcmask 261120  }
 0x23f   : > { %v4181_v46 = vpack.c.bf16 %v4098_v18, %v4165_v14  ;;  %v9838_v59 = vand.u32 %v8648_v4, %v4180_v42 }
 0x241   : > { %v9841_v19 = vand.u32 %v8648_v4, %v4181_v46 }
 0x243   : > { %4847 = vmatprep.subr.bf16.mxu1 %v9841_v19 }
 0x244   : > { %4848 = vmatpush1.bf16.msra.mxu1 %v9838_v59 }
 0x246   : > { %v9850_v52 = vpop.permute.xlu1 %4635 }
 0x247   : > { %7354 = vmatmul.mubr.msk.bf16.vlgmr.msra.gmra.mrb[8].mxu1 %vm10791_vm0, %v7687_v3  ;;  %v9848_v5 = vpop.permute.xlu0 %4625  ;;  %v4731_v3 = vadd.f32 %v9789_v6, %v9850_v52  ;;  %v4733_v57 = vadd.f32 %v9791_v1, %v9850_v52  ;;  %v4786_v7 = vadd.f32 %v4785_v10, %v9850_v52 }
 0x248   : > { %4887 = vmatprep.mubr.bf16.mxu1 %v10789_v58  ;;  %v4721_v21 = vadd.f32 %v9778_v50, %v9848_v5  ;;  %v4774_v4 = vadd.f32 %v4773_v20, %v9848_v5  ;;  %v4723_v33 = vadd.f32 %v9780_v43, %v9848_v5  ;;  %v4776_v62 = vadd.f32 %v4775_v54, %v9848_v5 }
 0x249   : > { %v4914_v43 = vmax.f32 %v4731_v3, 0.0  ;;  %v4915_v48 = vmax.f32 %v4733_v57, 0.0  ;;  %v4917_v24 = vmax.f32 %v4786_v7, 0.0 }
 0x24a   : > { %v4898_v50 = vmax.f32 %v4721_v21, 0.0  ;;  %v4900_v23 = vmax.f32 %v4774_v4, 0.0  ;;  %v4899_v20 = vmax.f32 %v4723_v33, 0.0  ;;  %v4901_v27 = vmax.f32 %v4776_v62, 0.0  ;;  %v9867_v16 = vpop.permute.xlu1 %4640 }
 0x24b   : > { %v9865_v61 = vpop.permute.xlu0 %4630  ;;  %v4735_v36 = vadd.f32 %v9793_v45, %v9867_v16  ;;  %v4788_v29 = vadd.f32 %v4787_v15, %v9867_v16  ;;  %v4737_v55 = vadd.f32 %v9795_v38, %v9867_v16  ;;  %v4790_v18 = vadd.f32 %v4789_v53, %v9867_v16  ;;  %v9886_v38 = vld [vmem:[%s10793_s3] sm:$0xff]   ;;  %v9897_v53 = vld [vmem:[%s10793_s3 + $0x8] sm:$0xff]   ;;  %s580_s3 = sand.u32 1, %s7743_s28  }
 0x24c   : > { %v4725_v6 = vadd.f32 %v9784_v31, %v9865_v61  ;;  %v4778_v1 = vadd.f32 %v9827_v63, %v9865_v61  ;;  %v4780_v10 = vadd.f32 %v9830_v13, %v9865_v61  ;;  %s7109_s0 = scalar_lea.sflag [#allocation3], %s580_s3 }
 0x24d   : > { %v4922_v42 = vmax.f32 %v4735_v36, 0.0  ;;  %v4924_v14 = vmax.f32 %v4788_v29, 0.0  ;;  %v4925_v46 = vmax.f32 %v4790_v18, 0.0 }
 0x24e   : > { %v4906_v31 = vmax.f32 %v4725_v6, 0.0  ;;  %v4908_v56 = vmax.f32 %v4778_v1, 0.0  ;;  %v4909_v63 = vmax.f32 %v4780_v10, 0.0 }
 0x24f   : > { %7355 = vmatmul.mubr.msk.bf16.gmra.mrb[12].mxu1 %vm10792_vm4, %v7688_v8  ;;  %v4784_v8 = vadd.f32 %v4783_v51, %v9850_v52  ;;  %v4727_v51 = vadd.f32 %v9786_v2, %v9865_v61  ;;  %v4923_v2 = vmax.f32 %v4737_v55, 0.0  ;;  %v4938_v45 = vpack.c.bf16 %v4922_v42, %v4914_v43 }
 0x250   : > { %5076 = vmatprep.mubr.bf16.mxu1 %v10789_v58  ;;  %v4930_v21 = vpack.c.bf16 %v4906_v31, %v4898_v50  ;;  %v4932_v13 = vpack.c.bf16 %v4908_v56, %v4900_v23  ;;  %v4933_v33 = vpack.c.bf16 %v4909_v63, %v4901_v27  ;;  %v4941_v3 = vpack.c.bf16 %v4925_v46, %v4917_v24 }
 0x251   : > { %v4916_v54 = vmax.f32 %v4784_v8, 0.0  ;;  %v4907_v44 = vmax.f32 %v4727_v51, 0.0  ;;  %v4939_v15 = vpack.c.bf16 %v4923_v2, %v4915_v48 }
 0x252   : > { %5044 = vmatprep.subr.bf16.mxu1 %v4933_v33 }
 0x253   : > { %v4931_v4 = vpack.c.bf16 %v4907_v44, %v4899_v20  ;;  %v4940_v62 = vpack.c.bf16 %v4924_v14, %v4916_v54  ;;  %5045 = vmatpush1.bf16.msra.mxu1 %v4932_v13 }
 0x254   : > { %5046 = vmatprep.subr.bf16.mxu1 %v4941_v3 }
 0x255   : > { %4991 = vmatprep.subr.bf16.mxu0 %v4931_v4 }
 0x256   : > { %4992 = vmatpush1.bf16.msra.mxu0 %v4930_v21 }
 0x257   : > { %4993 = vmatprep.subr.bf16.mxu0 %v4939_v15  ;;  %5047 = vmatpush1.bf16.msra.mxu1 %v4940_v62 }
 0x25a   : > { %4994 = vmatpush1.bf16.msra.mxu0 %v4938_v45  ;;  %7360 = vmatmul.mubr.msk.bf16.vlgmr.msra.gmra.mrb[16].mxu1 %vm4984_vm9, %v9886_v38 }
 0x25b   : > { %5086 = vmatprep.mubr.bf16.mxu1 %v10789_v58 }
 0x25d   : > { %7358 = vmatmul.mubr.msk.bf16.vlgmr.msra.gmra.mrb[16].mxu0 %vm4984_vm9, %v9886_v38 }
 0x25e   : > { %5033 = vmatprep.mubr.bf16.mxu0 %v10789_v58 }
 0x262   : > { %7361 = vmatmul.mubr.msk.bf16.gmra.mrb[20].mxu1 %vm4984_vm9, %v9897_v53 }
 0x263   : > { %5182 = vmatprep.mubr.bf16.mxu1 %v10789_v58 }
 0x265   : > { %7359 = vmatmul.mubr.msk.bf16.gmra.mrb[20].mxu0 %vm4984_vm9, %v9897_v53 }
 0x266   : > { %5129 = vmatprep.mubr.bf16.mxu0 %v10789_v58 }
 0x2f9   : > { %v4826_v8 = vpop.f32.mrb[8].mxu0 }
 0x2fa   : > { %v4827_v57 = vadd.f32 %v4826_v8, %v9848_v5  ;;  %v4828_v7 = vpop.f32.mrb[9].mxu0 }
 0x2fb   : > { %v4829_v50 = vadd.f32 %v4828_v7, %v9848_v5  ;;  %v4830_v23 = vpop.f32.mrb[10].mxu0 }
 0x2fc   : > { %v4831_v20 = vadd.f32 %v4830_v23, %v9865_v61  ;;  %v4832_v27 = vpop.f32.mrb[11].mxu0  ;;  %v4902_v54 = vmax.f32 %v4827_v57, 0.0 }
 0x2fd   : > { %v4833_v43 = vadd.f32 %v4832_v27, %v9865_v61  ;;  %v4903_v24 = vmax.f32 %v4829_v50, 0.0 }
 0x2fe   : > { %v4910_v48 = vmax.f32 %v4831_v20, 0.0 }
 0x2ff   : > { %v4911_v6 = vmax.f32 %v4833_v43, 0.0 }
 0x300   : > { %v4934_v1 = vpack.c.bf16 %v4910_v48, %v4902_v54 }
 0x301   : > { %v4935_v51 = vpack.c.bf16 %v4911_v6, %v4903_v24  ;;  %v4836_v10 = vpop.f32.mrb[12].mxu0 }
 0x302   : > { %v4837_v36 = vadd.f32 %v4836_v10, %v9850_v52  ;;  %v4838_v29 = vpop.f32.mrb[13].mxu0 }
 0x303   : > { %v4839_v55 = vadd.f32 %v4838_v29, %v9850_v52  ;;  %v4840_v18 = vpop.f32.mrb[14].mxu0  ;;  %5097 = vmatprep.subr.bf16.mxu0 %v4935_v51 }
 0x304   : > { %v4841_v31 = vadd.f32 %v4840_v18, %v9867_v16  ;;  %v4842_v56 = vpop.f32.mrb[15].mxu0  ;;  %5098 = vmatpush1.bf16.msra.mxu0 %v4934_v1  ;;  %v4918_v63 = vmax.f32 %v4837_v36, 0.0 }
 0x305   : > { %v4843_v44 = vadd.f32 %v4842_v56, %v9867_v16  ;;  %v4919_v14 = vmax.f32 %v4839_v55, 0.0 }
 0x306   : > { %v4926_v42 = vmax.f32 %v4841_v31, 0.0 }
 0x307   : > { %v4927_v2 = vmax.f32 %v4843_v44, 0.0 }
 0x308   : > { %v4942_v46 = vpack.c.bf16 %v4926_v42, %v4918_v63 }
 0x309   : > { %v4943_v21 = vpack.c.bf16 %v4927_v2, %v4919_v14 }
 0x30b   : > { %5099 = vmatprep.subr.bf16.mxu0 %v4943_v21 }
 0x30c   : > { %5100 = vmatpush1.bf16.msra.mxu0 %v4942_v46 }
 0x30f   : > { %7362 = vmatmul.mubr.msk.bf16.vlgmr.msra.gmra.mrb[24].mxu0 %vm4984_vm9, %v9886_v38 }
 0x310   : > { %5139 = vmatprep.mubr.bf16.mxu0 %v10789_v58 }
 0x317   : > { %7363 = vmatmul.mubr.msk.bf16.gmra.mrb[28].mxu0 %vm4984_vm9, %v9897_v53 }
 0x318   : > { %5327 = vmatprep.mubr.bf16.mxu0 %v10789_v58 }
 0x31a   : > { %v4879_v13 = vpop.f32.mrb[8].mxu1 }
 0x31b   : > { %v4880_v4 = vadd.f32 %v4879_v13, %v9848_v5  ;;  %v4881_v33 = vpop.f32.mrb[9].mxu1 }
 0x31c   : > { %v4882_v45 = vadd.f32 %v4881_v33, %v9848_v5  ;;  %v4883_v62 = vpop.f32.mrb[10].mxu1 }
 0x31d   : > { %v4884_v15 = vadd.f32 %v4883_v62, %v9865_v61  ;;  %v4885_v3 = vpop.f32.mrb[11].mxu1  ;;  %v4904_v57 = vmax.f32 %v4880_v4, 0.0 }
 0x31e   : > { %v4886_v8 = vadd.f32 %v4885_v3, %v9865_v61  ;;  %v4905_v50 = vmax.f32 %v4882_v45, 0.0 }
 0x31f   : > { %v4912_v7 = vmax.f32 %v4884_v15, 0.0 }
 0x320   : > { %v4913_v23 = vmax.f32 %v4886_v8, 0.0 }
 0x321   : > { %v4936_v20 = vpack.c.bf16 %v4912_v7, %v4904_v57 }
 0x322   : > { %v4937_v27 = vpack.c.bf16 %v4913_v23, %v4905_v50  ;;  %v4889_v43 = vpop.f32.mrb[12].mxu1 }
 0x323   : > { %v4890_v54 = vadd.f32 %v4889_v43, %v9850_v52  ;;  %v4891_v48 = vpop.f32.mrb[13].mxu1 }
 0x324   : > { %v4892_v24 = vadd.f32 %v4891_v48, %v9850_v52  ;;  %v4893_v6 = vpop.f32.mrb[14].mxu1  ;;  %5150 = vmatprep.subr.bf16.mxu1 %v4937_v27  ;;  %v9933_v52 = vpop.permute.xlu0 %4956 }
 0x325   : > { %v4894_v5 = vadd.f32 %v4893_v6, %v9867_v16  ;;  %v4895_v1 = vpop.f32.mrb[15].mxu1  ;;  %5151 = vmatpush1.bf16.msra.mxu1 %v4936_v20  ;;  %v4920_v51 = vmax.f32 %v4890_v54, 0.0 }
 0x326   : > { %v4896_v61 = vadd.f32 %v4895_v1, %v9867_v16  ;;  %v4921_v36 = vmax.f32 %v4892_v24, 0.0  ;;  %v9935_v16 = vpop.permute.xlu1 %4961 }
 0x327   : > { %v4928_v10 = vmax.f32 %v4894_v5, 0.0 }
 0x328   : > { %v4929_v29 = vmax.f32 %v4896_v61, 0.0  ;;  %v9945_v27 = vpop.permute.xlu0 %4966 }
 0x329   : > { %v4944_v55 = vpack.c.bf16 %v4928_v10, %v4920_v51 }
 0x32a   : > { %v4945_v18 = vpack.c.bf16 %v4929_v29, %v4921_v36  ;;  %v9947_v43 = vpop.permute.xlu1 %4971 }
 0x32c   : > { %5152 = vmatprep.subr.bf16.mxu1 %v4945_v18 }
 0x32d   : > { %5153 = vmatpush1.bf16.msra.mxu1 %v4944_v55  ;;  %v5078_v56 = vpop.f32.mrb[16].mxu1 }
 0x32e   : > { %v5079_v63 = vadd.f32 %v5078_v56, %v9933_v52  ;;  %v5080_v14 = vpop.f32.mrb[17].mxu1 }
 0x32f   : > { %v5081_v2 = vadd.f32 %v5080_v14, %v9933_v52 }
 0x330   : > { %7364 = vmatmul.mubr.msk.bf16.vlgmr.msra.gmra.mrb[24].mxu1 %vm4984_vm9, %v9886_v38  ;;  %v5025_v31 = vpop.f32.mrb[16].mxu0  ;;  %v5205_v3 = vmax.f32 %v5079_v63, 0.0 }
 0x331   : > { %5192 = vmatprep.mubr.bf16.mxu1 %v10789_v58  ;;  %v5026_v44 = vadd.f32 %v5025_v31, %v9933_v52  ;;  %v5027_v42 = vpop.f32.mrb[17].mxu0  ;;  %v5206_v50 = vmax.f32 %v5081_v2, 0.0 }
 0x332   : > { %v5028_v38 = vadd.f32 %v5027_v42, %v9933_v52  ;;  %v5029_v46 = vpop.f32.mrb[18].mxu0 }
 0x333   : > { %v5030_v21 = vadd.f32 %v5029_v46, %v9935_v16  ;;  %v5031_v4 = vpop.f32.mrb[19].mxu0  ;;  %v5203_v15 = vmax.f32 %v5026_v44, 0.0 }
 0x334   : > { %v5032_v45 = vadd.f32 %v5031_v4, %v9935_v16  ;;  %v5204_v7 = vmax.f32 %v5028_v38, 0.0 }
 0x335   : > { %v5211_v8 = vmax.f32 %v5030_v21, 0.0 }
 0x336   : > { %v5212_v23 = vmax.f32 %v5032_v45, 0.0 }
 0x337   : > { %v5235_v54 = vpack.c.bf16 %v5211_v8, %v5203_v15 }
 0x338   : > { %7365 = vmatmul.mubr.msk.bf16.gmra.mrb[28].mxu1 %vm4984_vm9, %v9897_v53  ;;  %v5082_v53 = vpop.f32.mrb[18].mxu1  ;;  %v5236_v24 = vpack.c.bf16 %v5212_v23, %v5204_v7  ;;  %v5035_v5 = vpop.f32.mrb[20].mxu0  ;;  %v9971_v7 = vld [vmem:[%s10794_s4 + $0x8] sm:$0xff]  }
 0x339   : > { %5380 = vmatprep.mubr.bf16.mxu1 %v10789_v58  ;;  %v5083_v13 = vadd.f32 %v5082_v53, %v9935_v16  ;;  %v5084_v33 = vpop.f32.mrb[19].mxu1  ;;  %v5036_v61 = vadd.f32 %v5035_v5, %v9945_v27  ;;  %v5037_v10 = vpop.f32.mrb[21].mxu0 }
 0x33a   : > { %v5085_v62 = vadd.f32 %v5084_v33, %v9935_v16  ;;  %v5088_v1 = vpop.f32.mrb[20].mxu1  ;;  %v5038_v29 = vadd.f32 %v5037_v10, %v9945_v27  ;;  %v5039_v18 = vpop.f32.mrb[22].mxu0  ;;  %5295 = vmatprep.subr.bf16.mxu0 %v5236_v24 }
 0x33b   : > { %v5213_v57 = vmax.f32 %v5083_v13, 0.0  ;;  %v5089_v51 = vadd.f32 %v5088_v1, %v9945_v27  ;;  %v5090_v36 = vpop.f32.mrb[21].mxu1  ;;  %v5040_v56 = vadd.f32 %v5039_v18, %v9947_v43  ;;  %v5041_v63 = vpop.f32.mrb[23].mxu0  ;;  %5296 = vmatpush1.bf16.msra.mxu0 %v5235_v54  ;;  %v5219_v2 = vmax.f32 %v5036_v61, 0.0 }
 0x33c   : > { %v5214_v20 = vmax.f32 %v5085_v62, 0.0  ;;  %v5091_v55 = vadd.f32 %v5090_v36, %v9945_v27  ;;  %v5092_v31 = vpop.f32.mrb[22].mxu1  ;;  %v5042_v14 = vadd.f32 %v5041_v63, %v9947_v43  ;;  %v5220_v13 = vmax.f32 %v5038_v29, 0.0 }
 0x33d   : > { %v5237_v48 = vpack.c.bf16 %v5213_v57, %v5205_v3  ;;  %v5093_v44 = vadd.f32 %v5092_v31, %v9947_v43  ;;  %v5094_v42 = vpop.f32.mrb[23].mxu1  ;;  %v5221_v46 = vmax.f32 %v5089_v51, 0.0  ;;  %v5227_v53 = vmax.f32 %v5040_v56, 0.0  ;;  %v9960_v57 = vld [vmem:[%s10794_s4] sm:$0xff]   ;;  %s10798_s4 = sld [smem:[#allocation6_spill]] }
 0x33e   : > { %v5238_v6 = vpack.c.bf16 %v5214_v20, %v5206_v50  ;;  %v5095_v38 = vadd.f32 %v5094_v42, %v9947_v43  ;;  %v5222_v4 = vmax.f32 %v5091_v55, 0.0  ;;  %v5228_v33 = vmax.f32 %v5042_v14, 0.0 }
 0x33f   : > { %v5229_v21 = vmax.f32 %v5093_v44, 0.0  ;;  %v5243_v62 = vpack.c.bf16 %v5227_v53, %v5219_v2 }
 0x340   : > { %5348 = vmatprep.subr.bf16.mxu1 %v5238_v6  ;;  %v5230_v45 = vmax.f32 %v5095_v38, 0.0  ;;  %v5244_v3 = vpack.c.bf16 %v5228_v33, %v5220_v13 }
 0x341   : > { %5349 = vmatpush1.bf16.msra.mxu1 %v5237_v48  ;;  %v5245_v15 = vpack.c.bf16 %v5229_v21, %v5221_v46 }
 0x342   : > { %v5246_v8 = vpack.c.bf16 %v5230_v45, %v5222_v4  ;;  %5297 = vmatprep.subr.bf16.mxu0 %v5244_v3 }
 0x343   : > { %5298 = vmatpush1.bf16.msra.mxu0 %v5243_v62 }
 0x344   : > { %5350 = vmatprep.subr.bf16.mxu1 %v5246_v8 }
 0x345   : > { %5351 = vmatpush1.bf16.msra.mxu1 %v5245_v15 }
 0x346   : > { %7368 = vmatmul.mubr.msk.bf16.vlgmr.msra.gmra.mrb[32].mxu0 %vm4984_vm9, %v9960_v57 }
 0x347   : > { %5337 = vmatprep.mubr.bf16.mxu0 %v10789_v58 }
 0x348   : > { %7370 = vmatmul.mubr.msk.bf16.vlgmr.msra.gmra.mrb[32].mxu1 %vm4984_vm9, %v9960_v57 }
 0x349   : > { %5390 = vmatprep.mubr.bf16.mxu1 %v10789_v58 }
 0x34e   : > { %7369 = vmatmul.mubr.msk.bf16.gmra.mrb[36].mxu0 %vm4984_vm9, %v9971_v7 }
 0x34f   : > { %5433 = vmatprep.mubr.bf16.mxu0 %v10789_v58 }
 0x350   : > { %7371 = vmatmul.mubr.msk.bf16.gmra.mrb[36].mxu1 %vm4984_vm9, %v9971_v7 }
 0x351   : > { %5486 = vmatprep.mubr.bf16.mxu1 %v10789_v58 }
 0x3e2   : > { %v5131_v50 = vpop.f32.mrb[24].mxu0 }
 0x3e3   : > { %v5132_v23 = vadd.f32 %v5131_v50, %v9933_v52  ;;  %v5133_v20 = vpop.f32.mrb[25].mxu0 }
 0x3e4   : > { %v5134_v54 = vadd.f32 %v5133_v20, %v9933_v52  ;;  %v5135_v48 = vpop.f32.mrb[26].mxu0 }
 0x3e5   : > { %v5136_v24 = vadd.f32 %v5135_v48, %v9935_v16  ;;  %v5137_v6 = vpop.f32.mrb[27].mxu0  ;;  %v5207_v1 = vmax.f32 %v5132_v23, 0.0 }
 0x3e6   : > { %v5138_v5 = vadd.f32 %v5137_v6, %v9935_v16  ;;  %v5208_v51 = vmax.f32 %v5134_v54, 0.0 }
 0x3e7   : > { %v5215_v61 = vmax.f32 %v5136_v24, 0.0 }
 0x3e8   : > { %v5216_v10 = vmax.f32 %v5138_v5, 0.0 }
 0x3e9   : > { %v5239_v36 = vpack.c.bf16 %v5215_v61, %v5207_v1 }
 0x3ea   : > { %v5240_v29 = vpack.c.bf16 %v5216_v10, %v5208_v51  ;;  %v5141_v55 = vpop.f32.mrb[28].mxu0 }
 0x3eb   : > { %v5142_v18 = vadd.f32 %v5141_v55, %v9945_v27  ;;  %v5143_v31 = vpop.f32.mrb[29].mxu0 }
 0x3ec   : > { %v5144_v56 = vadd.f32 %v5143_v31, %v9945_v27  ;;  %v5145_v44 = vpop.f32.mrb[30].mxu0  ;;  %5401 = vmatprep.subr.bf16.mxu0 %v5240_v29 }
 0x3ed   : > { %v5146_v63 = vadd.f32 %v5145_v44, %v9947_v43  ;;  %v5147_v42 = vpop.f32.mrb[31].mxu0  ;;  %5402 = vmatpush1.bf16.msra.mxu0 %v5239_v36  ;;  %v5223_v38 = vmax.f32 %v5142_v18, 0.0 }
 0x3ee   : > { %v5148_v14 = vadd.f32 %v5147_v42, %v9947_v43  ;;  %v5224_v46 = vmax.f32 %v5144_v56, 0.0 }
 0x3ef   : > { %v5231_v2 = vmax.f32 %v5146_v63, 0.0 }
 0x3f0   : > { %v5232_v53 = vmax.f32 %v5148_v14, 0.0 }
 0x3f1   : > { %v5247_v21 = vpack.c.bf16 %v5231_v2, %v5223_v38 }
 0x3f2   : > { %v5248_v13 = vpack.c.bf16 %v5232_v53, %v5224_v46 }
 0x3f4   : > { %5403 = vmatprep.subr.bf16.mxu0 %v5248_v13 }
 0x3f5   : > { %5404 = vmatpush1.bf16.msra.mxu0 %v5247_v21 }
 0x3f8   : > { %7372 = vmatmul.mubr.msk.bf16.vlgmr.msra.gmra.mrb[40].mxu0 %vm4984_vm9, %v9960_v57 }
 0x3f9   : > { %5443 = vmatprep.mubr.bf16.mxu0 %v10789_v58 }
 0x400   : > { %7373 = vmatmul.mubr.msk.bf16.gmra.mrb[44].mxu0 %vm4984_vm9, %v9971_v7 }
 0x401   : > { %5632 = vmatprep.mubr.bf16.mxu0 %v10789_v58 }
 0x403   : > { %v5184_v4 = vpop.f32.mrb[24].mxu1 }
 0x404   : > { %v5185_v33 = vadd.f32 %v5184_v4, %v9933_v52  ;;  %v5186_v45 = vpop.f32.mrb[25].mxu1 }
 0x405   : > { %v5187_v62 = vadd.f32 %v5186_v45, %v9933_v52  ;;  %v5188_v15 = vpop.f32.mrb[26].mxu1 }
 0x406   : > { %v5189_v3 = vadd.f32 %v5188_v15, %v9935_v16  ;;  %v5190_v8 = vpop.f32.mrb[27].mxu1  ;;  %v5209_v23 = vmax.f32 %v5185_v33, 0.0 }
 0x407   : > { %v5191_v50 = vadd.f32 %v5190_v8, %v9935_v16  ;;  %v5210_v54 = vmax.f32 %v5187_v62, 0.0 }
 0x408   : > { %v5217_v20 = vmax.f32 %v5189_v3, 0.0 }
 0x409   : > { %v5218_v48 = vmax.f32 %v5191_v50, 0.0 }
 0x40a   : > { %v5241_v24 = vpack.c.bf16 %v5217_v20, %v5209_v23 }
 0x40b   : > { %v5242_v6 = vpack.c.bf16 %v5218_v48, %v5210_v54  ;;  %v5194_v5 = vpop.f32.mrb[28].mxu1 }
 0x40c   : > { %v5195_v1 = vadd.f32 %v5194_v5, %v9945_v27  ;;  %v5196_v61 = vpop.f32.mrb[29].mxu1 }
 0x40d   : > { %v5197_v51 = vadd.f32 %v5196_v61, %v9945_v27  ;;  %v5198_v10 = vpop.f32.mrb[30].mxu1  ;;  %5454 = vmatprep.subr.bf16.mxu1 %v5242_v6  ;;  %v10007_v27 = vpop.permute.xlu0 %5261 }
 0x40e   : > { %v5199_v52 = vadd.f32 %v5198_v10, %v9947_v43  ;;  %v5200_v36 = vpop.f32.mrb[31].mxu1  ;;  %5455 = vmatpush1.bf16.msra.mxu1 %v5241_v24  ;;  %v5225_v29 = vmax.f32 %v5195_v1, 0.0 }
 0x40f   : > { %v5201_v16 = vadd.f32 %v5200_v36, %v9947_v43  ;;  %v5226_v18 = vmax.f32 %v5197_v51, 0.0  ;;  %v10009_v43 = vpop.permute.xlu1 %5266 }
 0x410   : > { %v5233_v55 = vmax.f32 %v5199_v52, 0.0 }
 0x411   : > { %v5234_v31 = vmax.f32 %v5201_v16, 0.0  ;;  %v10019_v6 = vpop.permute.xlu0 %5271 }
 0x412   : > { %v5249_v56 = vpack.c.bf16 %v5233_v55, %v5225_v29 }
 0x413   : > { %v5250_v44 = vpack.c.bf16 %v5234_v31, %v5226_v18  ;;  %v10021_v5 = vpop.permute.xlu1 %5276 }
 0x415   : > { %5456 = vmatprep.subr.bf16.mxu1 %v5250_v44 }
 0x416   : > { %5457 = vmatpush1.bf16.msra.mxu1 %v5249_v56 }
 0x419   : > { %7374 = vmatmul.mubr.msk.bf16.vlgmr.msra.gmra.mrb[40].mxu1 %vm4984_vm9, %v9960_v57  ;;  %v5329_v63 = vpop.f32.mrb[32].mxu0 }
 0x41a   : > { %5496 = vmatprep.mubr.bf16.mxu1 %v10789_v58  ;;  %v5330_v14 = vadd.f32 %v5329_v63, %v10007_v27  ;;  %v5331_v2 = vpop.f32.mrb[33].mxu0 }
 0x41b   : > { %v5382_v42 = vpop.f32.mrb[32].mxu1  ;;  %v5332_v57 = vadd.f32 %v5331_v2, %v10007_v27  ;;  %v5333_v21 = vpop.f32.mrb[34].mxu0 }
 0x41c   : > { %v5383_v38 = vadd.f32 %v5382_v42, %v10007_v27  ;;  %v5384_v46 = vpop.f32.mrb[33].mxu1  ;;  %v5334_v13 = vadd.f32 %v5333_v21, %v10009_v43  ;;  %v5335_v33 = vpop.f32.mrb[35].mxu0  ;;  %v5507_v3 = vmax.f32 %v5330_v14, 0.0 }
 0x41d   : > { %v5385_v53 = vadd.f32 %v5384_v46, %v10007_v27  ;;  %v5336_v62 = vadd.f32 %v5335_v33, %v10009_v43  ;;  %v5508_v20 = vmax.f32 %v5332_v57, 0.0 }
 0x41e   : > { %v5509_v8 = vmax.f32 %v5383_v38, 0.0  ;;  %v5515_v50 = vmax.f32 %v5334_v13, 0.0 }
 0x41f   : > { %v5510_v54 = vmax.f32 %v5385_v53, 0.0  ;;  %v5516_v48 = vmax.f32 %v5336_v62, 0.0 }
 0x420   : > { %v5539_v1 = vpack.c.bf16 %v5515_v50, %v5507_v3 }
 0x421   : > { %7375 = vmatmul.mubr.msk.bf16.gmra.mrb[44].mxu1 %vm4984_vm9, %v9971_v7  ;;  %v5386_v7 = vpop.f32.mrb[34].mxu1  ;;  %v5540_v51 = vpack.c.bf16 %v5516_v48, %v5508_v20  ;;  %v5339_v52 = vpop.f32.mrb[36].mxu0 }
 0x422   : > { %5685 = vmatprep.mubr.bf16.mxu1 %v10789_v58  ;;  %v5387_v4 = vadd.f32 %v5386_v7, %v10009_v43  ;;  %v5388_v45 = vpop.f32.mrb[35].mxu1  ;;  %v5340_v16 = vadd.f32 %v5339_v52, %v10019_v6  ;;  %v5341_v55 = vpop.f32.mrb[37].mxu0 }
 0x423   : > { %v5389_v15 = vadd.f32 %v5388_v45, %v10009_v43  ;;  %v5392_v36 = vpop.f32.mrb[36].mxu1  ;;  %v5342_v31 = vadd.f32 %v5341_v55, %v10019_v6  ;;  %v5343_v44 = vpop.f32.mrb[38].mxu0  ;;  %5600 = vmatprep.subr.bf16.mxu0 %v5540_v51 }
 0x424   : > { %v5517_v23 = vmax.f32 %v5387_v4, 0.0  ;;  %v5393_v29 = vadd.f32 %v5392_v36, %v10019_v6  ;;  %v5394_v18 = vpop.f32.mrb[37].mxu1  ;;  %v5344_v42 = vadd.f32 %v5343_v44, %v10021_v5  ;;  %v5345_v38 = vpop.f32.mrb[39].mxu0  ;;  %5601 = vmatpush1.bf16.msra.mxu0 %v5539_v1  ;;  %v5523_v53 = vmax.f32 %v5340_v16, 0.0 }
 0x425   : > { %v5518_v24 = vmax.f32 %v5389_v15, 0.0  ;;  %v5395_v56 = vadd.f32 %v5394_v18, %v10019_v6  ;;  %v5396_v63 = vpop.f32.mrb[38].mxu1  ;;  %v5346_v46 = vadd.f32 %v5345_v38, %v10021_v5  ;;  %v5524_v4 = vmax.f32 %v5342_v31, 0.0 }
 0x426   : > { %v5541_v61 = vpack.c.bf16 %v5517_v23, %v5509_v8  ;;  %v5397_v14 = vadd.f32 %v5396_v63, %v10021_v5  ;;  %v5398_v2 = vpop.f32.mrb[39].mxu1  ;;  %v5525_v21 = vmax.f32 %v5393_v29, 0.0  ;;  %v5531_v7 = vmax.f32 %v5344_v42, 0.0  ;;  %v10042_v23 = vld [vmem:[%s10795_s5] sm:$0xff]  }
 0x427   : > { %v5542_v10 = vpack.c.bf16 %v5518_v24, %v5510_v54  ;;  %v5399_v57 = vadd.f32 %v5398_v2, %v10021_v5  ;;  %v5526_v33 = vmax.f32 %v5395_v56, 0.0  ;;  %v5532_v45 = vmax.f32 %v5346_v46, 0.0 }
 0x428   : > { %v5533_v13 = vmax.f32 %v5397_v14, 0.0  ;;  %v5547_v15 = vpack.c.bf16 %v5531_v7, %v5523_v53 }
 0x429   : > { %5653 = vmatprep.subr.bf16.mxu1 %v5542_v10  ;;  %v5534_v62 = vmax.f32 %v5399_v57, 0.0  ;;  %v5548_v8 = vpack.c.bf16 %v5532_v45, %v5524_v4 }
 0x42a   : > { %5654 = vmatpush1.bf16.msra.mxu1 %v5541_v61  ;;  %v5549_v3 = vpack.c.bf16 %v5533_v13, %v5525_v21 }
 0x42b   : > { %v5550_v50 = vpack.c.bf16 %v5534_v62, %v5526_v33  ;;  %5602 = vmatprep.subr.bf16.mxu0 %v5548_v8 }
 0x42c   : > { %5603 = vmatpush1.bf16.msra.mxu0 %v5547_v15 }
 0x42d   : > { %5655 = vmatprep.subr.bf16.mxu1 %v5550_v50  ;;  %5604 = vmatprep.subr.bf16.mxu0 %v8351_v0  ;;  %v10053_v0 = vld [vmem:[%s10795_s5 + $0x8] sm:$0xff]   ;;  %s592_s5 = scalar_lea.vmem %s10798_s4, %s7201_s20  ;;  %s7198_s4 = sshll.u32 %s580_s3, 6 }
 0x42e   : > { %5656 = vmatpush1.bf16.msra.mxu1 %v5549_v3  ;;  %s7695_s20 = scalar_lea.vmem %s7694_s24, 2048 }
 0x42f   : > { %5657 = vmatprep.subr.bf16.mxu1 %v8616_v22 }
 0x430   : > { %5605 = vmatpush1.bf16.msra.mxu0 %v8418_v39 }
 0x431   : > { %5606 = vmatprep.subr.bf16.mxu0 %v8652_v11 }
 0x432   : > { %5658 = vmatpush1.bf16.msra.mxu1 %v8614_v25 }
 0x433   : > { %5659 = vmatprep.subr.bf16.mxu1 %v8853_v37 }
 0x434   : > { %5607 = vmatpush1.bf16.msra.mxu0 %v8683_v47 }
 0x436   : > { %5660 = vmatpush1.bf16.msra.mxu1 %v8848_v9 }
 0x437   : > { %7378 = vmatmul.mubr.msk.bf16.vlgmr.msra.gmra.mrb[48].mxu0 %vm5593_vm2, %v10042_v23 }
 0x438   : > { %5642 = vmatprep.mubr.bf16.mxu0 %v10789_v58 }
 0x439   : > { %7380 = vmatmul.mubr.msk.bf16.vlgmr.msra.gmra.mrb[48].mxu1 %vm5593_vm2, %v10042_v23 }
 0x43a   : > { %5695 = vmatprep.mubr.bf16.mxu1 %v10789_v58 }
 0x43f   : > { %7379 = vmatmul.mubr.msk.bf16.gmra.mrb[52].mxu0 %vm5593_vm2, %v10053_v0 }
 0x440   : > { %5738 = vmatprep.mubr.bf16.mxu0 %v10789_v58 }
 0x441   : > { %7381 = vmatmul.mubr.msk.bf16.gmra.mrb[52].mxu1 %vm5593_vm2, %v10053_v0 }
 0x442   : > { %5791 = vmatprep.mubr.bf16.mxu1 %v10789_v58 }
 0x4cb   : > { %v5435_v39 = vpop.f32.mrb[40].mxu0 }
 0x4cc   : > { %v5436_v25 = vadd.f32 %v5435_v39, %v10007_v27  ;;  %v5437_v22 = vpop.f32.mrb[41].mxu0 }
 0x4cd   : > { %v5438_v11 = vadd.f32 %v5437_v22, %v10007_v27  ;;  %v5439_v47 = vpop.f32.mrb[42].mxu0 }
 0x4ce   : > { %v5440_v9 = vadd.f32 %v5439_v47, %v10009_v43  ;;  %v5441_v37 = vpop.f32.mrb[43].mxu0  ;;  %v5511_v54 = vmax.f32 %v5436_v25, 0.0 }
 0x4cf   : > { %v5442_v20 = vadd.f32 %v5441_v37, %v10009_v43  ;;  %v5512_v24 = vmax.f32 %v5438_v11, 0.0 }
 0x4d0   : > { %v5519_v48 = vmax.f32 %v5440_v9, 0.0 }
 0x4d1   : > { %v5520_v1 = vmax.f32 %v5442_v20, 0.0 }
 0x4d2   : > { %v5543_v61 = vpack.c.bf16 %v5519_v48, %v5511_v54 }
 0x4d3   : > { %v5544_v51 = vpack.c.bf16 %v5520_v1, %v5512_v24  ;;  %v5445_v10 = vpop.f32.mrb[44].mxu0 }
 0x4d4   : > { %v5446_v52 = vadd.f32 %v5445_v10, %v10019_v6  ;;  %v5447_v36 = vpop.f32.mrb[45].mxu0 }
 0x4d5   : > { %v5448_v16 = vadd.f32 %v5447_v36, %v10019_v6  ;;  %v5449_v29 = vpop.f32.mrb[46].mxu0  ;;  %5706 = vmatprep.subr.bf16.mxu0 %v5544_v51 }
 0x4d6   : > { %v5450_v55 = vadd.f32 %v5449_v29, %v10021_v5  ;;  %v5451_v18 = vpop.f32.mrb[47].mxu0  ;;  %5707 = vmatpush1.bf16.msra.mxu0 %v5543_v61  ;;  %v5527_v56 = vmax.f32 %v5446_v52, 0.0 }
 0x4d7   : > { %v5452_v31 = vadd.f32 %v5451_v18, %v10021_v5  ;;  %v5528_v63 = vmax.f32 %v5448_v16, 0.0 }
 0x4d8   : > { %v5535_v44 = vmax.f32 %v5450_v55, 0.0 }
 0x4d9   : > { %v5536_v42 = vmax.f32 %v5452_v31, 0.0 }
 0x4da   : > { %v5551_v14 = vpack.c.bf16 %v5535_v44, %v5527_v56 }
 0x4db   : > { %v5552_v38 = vpack.c.bf16 %v5536_v42, %v5528_v63 }
 0x4dd   : > { %5708 = vmatprep.subr.bf16.mxu0 %v5552_v38 }
 0x4de   : > { %5709 = vmatpush1.bf16.msra.mxu0 %v5551_v14 }
 0x4df   : > { %5710 = vmatprep.subr.bf16.mxu0 %v9262_v17 }
 0x4e2   : > { %5711 = vmatpush1.bf16.msra.mxu0 %v9337_v40 }
 0x4e3   : > { %5712 = vmatprep.subr.bf16.mxu0 %v9808_v12 }
 0x4e6   : > { %5713 = vmatpush1.bf16.msra.mxu0 %v9805_v49 }
 0x4e9   : > { %7382 = vmatmul.mubr.msk.bf16.vlgmr.msra.gmra.mrb[56].mxu0 %vm5593_vm2, %v10042_v23 }
 0x4ea   : > { %5748 = vmatprep.mubr.bf16.mxu0 %v10789_v58 }
 0x4ec   : > { %v5488_v2 = vpop.f32.mrb[40].mxu1 }
 0x4ed   : > { %v5489_v46 = vadd.f32 %v5488_v2, %v10007_v27  ;;  %v5490_v57 = vpop.f32.mrb[41].mxu1 }
 0x4ee   : > { %v5491_v53 = vadd.f32 %v5490_v57, %v10007_v27  ;;  %v5492_v21 = vpop.f32.mrb[42].mxu1 }
 0x4ef   : > { %v5493_v17 = vadd.f32 %v5492_v21, %v10009_v43  ;;  %v5494_v7 = vpop.f32.mrb[43].mxu1  ;;  %v5513_v49 = vmax.f32 %v5489_v46, 0.0 }
 0x4f0   : > { %v5495_v40 = vadd.f32 %v5494_v7, %v10009_v43  ;;  %v5514_v13 = vmax.f32 %v5491_v53, 0.0 }
 0x4f1   : > { %7383 = vmatmul.mubr.msk.bf16.gmra.mrb[60].mxu0 %vm5593_vm2, %v10053_v0  ;;  %v5521_v12 = vmax.f32 %v5493_v17, 0.0 }
 0x4f2   : > { %5936 = vmatprep.mubr.bf16.mxu0 %v10789_v58  ;;  %v5522_v4 = vmax.f32 %v5495_v40, 0.0 }
 0x4f3   : > { %v5545_v33 = vpack.c.bf16 %v5521_v12, %v5513_v49 }
 0x4f4   : > { %v5546_v45 = vpack.c.bf16 %v5522_v4, %v5514_v13  ;;  %v5498_v62 = vpop.f32.mrb[44].mxu1 }
 0x4f5   : > { %v5499_v27 = vadd.f32 %v5498_v62, %v10019_v6  ;;  %v5500_v15 = vpop.f32.mrb[45].mxu1 }
 0x4f6   : > { %v5501_v3 = vadd.f32 %v5500_v15, %v10019_v6  ;;  %v5502_v8 = vpop.f32.mrb[46].mxu1  ;;  %5759 = vmatprep.subr.bf16.mxu1 %v5546_v45  ;;  %v10097_v6 = vpop.permute.xlu0 %5565 }
 0x4f7   : > { %v5503_v43 = vadd.f32 %v5502_v8, %v10021_v5  ;;  %v5504_v50 = vpop.f32.mrb[47].mxu1  ;;  %5760 = vmatpush1.bf16.msra.mxu1 %v5545_v33  ;;  %v5529_v25 = vmax.f32 %v5499_v27, 0.0 }
 0x4f8   : > { %v5505_v39 = vadd.f32 %v5504_v50, %v10021_v5  ;;  %v5530_v11 = vmax.f32 %v5501_v3, 0.0  ;;  %v10099_v5 = vpop.permute.xlu1 %5570 }
 0x4f9   : > { %v5537_v22 = vmax.f32 %v5503_v43, 0.0 }
 0x4fa   : > { %v5538_v47 = vmax.f32 %v5505_v39, 0.0  ;;  %v10109_v42 = vpop.permute.xlu0 %5575 }
 0x4fb   : > { %v5553_v9 = vpack.c.bf16 %v5537_v22, %v5529_v25 }
 0x4fc   : > { %v5554_v37 = vpack.c.bf16 %v5538_v47, %v5530_v11  ;;  %v10111_v14 = vpop.permute.xlu1 %5580 }
 0x4fe   : > { %5761 = vmatprep.subr.bf16.mxu1 %v5554_v37 }
 0x4ff   : > { %5762 = vmatpush1.bf16.msra.mxu1 %v5553_v9 }
 0x500   : > { %5763 = vmatprep.subr.bf16.mxu1 %v9699_v60 }
 0x503   : > { %5764 = vmatpush1.bf16.msra.mxu1 %v9690_v35 }
 0x504   : > { %5765 = vmatprep.subr.bf16.mxu1 %v9841_v19 }
 0x507   : > { %5766 = vmatpush1.bf16.msra.mxu1 %v9838_v59 }
 0x50a   : > { %7384 = vmatmul.mubr.msk.bf16.vlgmr.msra.gmra.mrb[56].mxu1 %vm5593_vm2, %v10042_v23  ;;  %v5634_v60 = vpop.f32.mrb[48].mxu0 }
 0x50b   : > { %5801 = vmatprep.mubr.bf16.mxu1 %v10789_v58  ;;  %v5635_v19 = vadd.f32 %v5634_v60, %v10097_v6  ;;  %v5636_v20 = vpop.f32.mrb[49].mxu0 }
 0x50c   : > { %v5687_v35 = vpop.f32.mrb[48].mxu1  ;;  %v5637_v23 = vadd.f32 %v5636_v20, %v10097_v6  ;;  %v5638_v24 = vpop.f32.mrb[50].mxu0  ;;  %v10135_v20 = vld [vmem:[%s10796_s6 + $0x8] sm:$0xff]  }
 0x50d   : > { %v5688_v59 = vadd.f32 %v5687_v35, %v10097_v6  ;;  %v5689_v54 = vpop.f32.mrb[49].mxu1  ;;  %v5639_v1 = vadd.f32 %v5638_v24, %v10099_v5  ;;  %v5640_v51 = vpop.f32.mrb[51].mxu0  ;;  %v5812_v16 = vmax.f32 %v5635_v19, 0.0 }
 0x50e   : > { %v5690_v48 = vadd.f32 %v5689_v54, %v10097_v6  ;;  %v5641_v52 = vadd.f32 %v5640_v51, %v10099_v5  ;;  %v5813_v31 = vmax.f32 %v5637_v23, 0.0 }
 0x50f   : > { %v5814_v29 = vmax.f32 %v5688_v59, 0.0  ;;  %v5820_v55 = vmax.f32 %v5639_v1, 0.0  ;;  %v10124_v59 = vld [vmem:[%s10796_s6] sm:$0xff]  }
 0x510   : > { %v5815_v56 = vmax.f32 %v5690_v48, 0.0  ;;  %v5821_v44 = vmax.f32 %v5641_v52, 0.0 }
 0x511   : > { %v5844_v38 = vpack.c.bf16 %v5820_v55, %v5812_v16 }
 0x512   : > { %7385 = vmatmul.mubr.msk.bf16.gmra.mrb[60].mxu1 %vm5593_vm2, %v10053_v0  ;;  %v5691_v0 = vpop.f32.mrb[50].mxu1  ;;  %v5845_v46 = vpack.c.bf16 %v5821_v44, %v5813_v31  ;;  %v5644_v53 = vpop.f32.mrb[52].mxu0 }
 0x513   : > { %5989 = vmatprep.mubr.bf16.mxu1 %v10789_v58  ;;  %v5692_v61 = vadd.f32 %v5691_v0, %v10099_v5  ;;  %v5693_v10 = vpop.f32.mrb[51].mxu1  ;;  %v5645_v17 = vadd.f32 %v5644_v53, %v10109_v42  ;;  %v5646_v40 = vpop.f32.mrb[53].mxu0 }
 0x514   : > { %v5694_v36 = vadd.f32 %v5693_v10, %v10099_v5  ;;  %v5697_v21 = vpop.f32.mrb[52].mxu1  ;;  %v5647_v12 = vadd.f32 %v5646_v40, %v10109_v42  ;;  %v5648_v4 = vpop.f32.mrb[54].mxu0  ;;  %5904 = vmatprep.subr.bf16.mxu0 %v5845_v46 }
 0x515   : > { %v5822_v18 = vmax.f32 %v5692_v61, 0.0  ;;  %v5698_v7 = vadd.f32 %v5697_v21, %v10109_v42  ;;  %v5699_v49 = vpop.f32.mrb[53].mxu1  ;;  %v5649_v45 = vadd.f32 %v5648_v4, %v10111_v14  ;;  %v5650_v27 = vpop.f32.mrb[55].mxu0  ;;  %5905 = vmatpush1.bf16.msra.mxu0 %v5844_v38  ;;  %v5828_v43 = vmax.f32 %v5645_v17, 0.0 }
 0x516   : > { %v5823_v63 = vmax.f32 %v5694_v36, 0.0  ;;  %v5700_v13 = vadd.f32 %v5699_v49, %v10109_v42  ;;  %v5701_v33 = vpop.f32.mrb[54].mxu1  ;;  %v5651_v3 = vadd.f32 %v5650_v27, %v10111_v14  ;;  %v5829_v22 = vmax.f32 %v5647_v12, 0.0 }
 0x517   : > { %v5846_v2 = vpack.c.bf16 %v5822_v18, %v5814_v29  ;;  %v5702_v62 = vadd.f32 %v5701_v33, %v10111_v14  ;;  %v5703_v15 = vpop.f32.mrb[55].mxu1  ;;  %v5830_v50 = vmax.f32 %v5698_v7, 0.0  ;;  %v5836_v39 = vmax.f32 %v5649_v45, 0.0 }
 0x518   : > { %v5847_v57 = vpack.c.bf16 %v5823_v63, %v5815_v56  ;;  %v5704_v8 = vadd.f32 %v5703_v15, %v10111_v14  ;;  %v5831_v11 = vmax.f32 %v5700_v13, 0.0  ;;  %v5837_v47 = vmax.f32 %v5651_v3, 0.0 }
 0x519   : > { %v5838_v25 = vmax.f32 %v5702_v62, 0.0  ;;  %v5852_v37 = vpack.c.bf16 %v5836_v39, %v5828_v43 }
 0x51a   : > { %5957 = vmatprep.subr.bf16.mxu1 %v5847_v57  ;;  %v5839_v9 = vmax.f32 %v5704_v8, 0.0  ;;  %v5853_v35 = vpack.c.bf16 %v5837_v47, %v5829_v22 }
 0x51b   : > { %5958 = vmatpush1.bf16.msra.mxu1 %v5846_v2  ;;  %v5854_v60 = vpack.c.bf16 %v5838_v25, %v5830_v50 }
 0x51c   : > { %v5855_v19 = vpack.c.bf16 %v5839_v9, %v5831_v11  ;;  %5906 = vmatprep.subr.bf16.mxu0 %v5853_v35 }
 0x51d   : > { %5907 = vmatpush1.bf16.msra.mxu0 %v5852_v37 }
 0x51e   : > { %5959 = vmatprep.subr.bf16.mxu1 %v5855_v19 }
 0x51f   : > { %5960 = vmatpush1.bf16.msra.mxu1 %v5854_v60 }
 0x520   : > { %7388 = vmatmul.mubr.msk.bf16.vlgmr.msra.gmra.mrb[64].mxu0 %vm4984_vm9, %v10124_v59 }
 0x521   : > { %5946 = vmatprep.mubr.bf16.mxu0 %v10789_v58 }
 0x522   : > { %7390 = vmatmul.mubr.msk.bf16.vlgmr.msra.gmra.mrb[64].mxu1 %vm4984_vm9, %v10124_v59 }
 0x523   : > { %5999 = vmatprep.mubr.bf16.mxu1 %v10789_v58 }
 0x528   : > { %7389 = vmatmul.mubr.msk.bf16.gmra.mrb[68].mxu0 %vm4984_vm9, %v10135_v20 }
 0x529   : > { %6042 = vmatprep.mubr.bf16.mxu0 %v10789_v58 }
 0x52a   : > { %7391 = vmatmul.mubr.msk.bf16.gmra.mrb[68].mxu1 %vm4984_vm9, %v10135_v20 }
 0x52b   : > { %6095 = vmatprep.mubr.bf16.mxu1 %v10789_v58 }
 0x5bc   : > { %v5740_v54 = vpop.f32.mrb[56].mxu0 }
 0x5bd   : > { %v5741_v23 = vadd.f32 %v5740_v54, %v10097_v6  ;;  %v5742_v48 = vpop.f32.mrb[57].mxu0 }
 0x5be   : > { %v5743_v24 = vadd.f32 %v5742_v48, %v10097_v6  ;;  %v5744_v0 = vpop.f32.mrb[58].mxu0 }
 0x5bf   : > { %v5745_v1 = vadd.f32 %v5744_v0, %v10099_v5  ;;  %v5746_v61 = vpop.f32.mrb[59].mxu0  ;;  %v5816_v10 = vmax.f32 %v5741_v23, 0.0 }
 0x5c0   : > { %v5747_v51 = vadd.f32 %v5746_v61, %v10099_v5  ;;  %v5817_v36 = vmax.f32 %v5743_v24, 0.0 }
 0x5c1   : > { %v5824_v52 = vmax.f32 %v5745_v1, 0.0 }
 0x5c2   : > { %v5825_v16 = vmax.f32 %v5747_v51, 0.0 }
 0x5c3   : > { %v5848_v29 = vpack.c.bf16 %v5824_v52, %v5816_v10 }
 0x5c4   : > { %v5849_v55 = vpack.c.bf16 %v5825_v16, %v5817_v36  ;;  %v5750_v18 = vpop.f32.mrb[60].mxu0 }
 0x5c5   : > { %v5751_v31 = vadd.f32 %v5750_v18, %v10109_v42  ;;  %v5752_v56 = vpop.f32.mrb[61].mxu0 }
 0x5c6   : > { %v5753_v44 = vadd.f32 %v5752_v56, %v10109_v42  ;;  %v5754_v63 = vpop.f32.mrb[62].mxu0  ;;  %6010 = vmatprep.subr.bf16.mxu0 %v5849_v55 }
 0x5c7   : > { %v5755_v38 = vadd.f32 %v5754_v63, %v10111_v14  ;;  %v5756_v2 = vpop.f32.mrb[63].mxu0  ;;  %6011 = vmatpush1.bf16.msra.mxu0 %v5848_v29  ;;  %v5832_v57 = vmax.f32 %v5751_v31, 0.0 }
 0x5c8   : > { %v5757_v46 = vadd.f32 %v5756_v2, %v10111_v14  ;;  %v5833_v21 = vmax.f32 %v5753_v44, 0.0 }
 0x5c9   : > { %v5840_v53 = vmax.f32 %v5755_v38, 0.0 }
 0x5ca   : > { %v5841_v17 = vmax.f32 %v5757_v46, 0.0 }
 0x5cb   : > { %v5856_v7 = vpack.c.bf16 %v5840_v53, %v5832_v57 }
 0x5cc   : > { %v5857_v40 = vpack.c.bf16 %v5841_v17, %v5833_v21 }
 0x5ce   : > { %6012 = vmatprep.subr.bf16.mxu0 %v5857_v40 }
 0x5cf   : > { %6013 = vmatpush1.bf16.msra.mxu0 %v5856_v7 }
 0x5d2   : > { %7392 = vmatmul.mubr.msk.bf16.vlgmr.msra.gmra.mrb[72].mxu0 %vm4984_vm9, %v10124_v59 }
 0x5d3   : > { %6052 = vmatprep.mubr.bf16.mxu0 %v10789_v58 }
 0x5da   : > { %7393 = vmatmul.mubr.msk.bf16.gmra.mrb[76].mxu0 %vm4984_vm9, %v10135_v20 }
 0x5db   : > { %6240 = vmatprep.mubr.bf16.mxu0 %v10789_v58 }
 0x5dd   : > { %v5793_v49 = vpop.f32.mrb[56].mxu1 }
 0x5de   : > { %v5794_v12 = vadd.f32 %v5793_v49, %v10097_v6  ;;  %v5795_v13 = vpop.f32.mrb[57].mxu1 }
 0x5df   : > { %v5796_v4 = vadd.f32 %v5795_v13, %v10097_v6  ;;  %v5797_v33 = vpop.f32.mrb[58].mxu1 }
 0x5e0   : > { %v5798_v45 = vadd.f32 %v5797_v33, %v10099_v5  ;;  %v5799_v62 = vpop.f32.mrb[59].mxu1  ;;  %v5818_v15 = vmax.f32 %v5794_v12, 0.0 }
 0x5e1   : > { %v5800_v27 = vadd.f32 %v5799_v62, %v10099_v5  ;;  %v5819_v8 = vmax.f32 %v5796_v4, 0.0 }
 0x5e2   : > { %v5826_v3 = vmax.f32 %v5798_v45, 0.0 }
 0x5e3   : > { %v5827_v43 = vmax.f32 %v5800_v27, 0.0 }
 0x5e4   : > { %v5850_v50 = vpack.c.bf16 %v5826_v3, %v5818_v15 }
 0x5e5   : > { %v5851_v39 = vpack.c.bf16 %v5827_v43, %v5819_v8  ;;  %v5803_v25 = vpop.f32.mrb[60].mxu1 }
 0x5e6   : > { %v5804_v22 = vadd.f32 %v5803_v25, %v10109_v42  ;;  %v5805_v11 = vpop.f32.mrb[61].mxu1 }
 0x5e7   : > { %v5806_v47 = vadd.f32 %v5805_v11, %v10109_v42  ;;  %v5807_v9 = vpop.f32.mrb[62].mxu1  ;;  %6063 = vmatprep.subr.bf16.mxu1 %v5851_v39  ;;  %v10171_v42 = vpop.permute.xlu0 %5870 }
 0x5e8   : > { %v5808_v6 = vadd.f32 %v5807_v9, %v10111_v14  ;;  %v5809_v37 = vpop.f32.mrb[63].mxu1  ;;  %6064 = vmatpush1.bf16.msra.mxu1 %v5850_v50  ;;  %v5834_v60 = vmax.f32 %v5804_v22, 0.0 }
 0x5e9   : > { %v5810_v5 = vadd.f32 %v5809_v37, %v10111_v14  ;;  %v5835_v19 = vmax.f32 %v5806_v47, 0.0  ;;  %v10173_v14 = vpop.permute.xlu1 %5875 }
 0x5ea   : > { %v5842_v35 = vmax.f32 %v5808_v6, 0.0 }
 0x5eb   : > { %v5843_v54 = vmax.f32 %v5810_v5, 0.0  ;;  %v10183_v17 = vpop.permute.xlu0 %5880 }
 0x5ec   : > { %v5858_v23 = vpack.c.bf16 %v5842_v35, %v5834_v60 }
 0x5ed   : > { %v5859_v48 = vpack.c.bf16 %v5843_v54, %v5835_v19  ;;  %v10185_v7 = vpop.permute.xlu1 %5885 }
 0x5ef   : > { %6065 = vmatprep.subr.bf16.mxu1 %v5859_v48 }
 0x5f0   : > { %6066 = vmatpush1.bf16.msra.mxu1 %v5858_v23 }
 0x5f3   : > { %7394 = vmatmul.mubr.msk.bf16.vlgmr.msra.gmra.mrb[72].mxu1 %vm4984_vm9, %v10124_v59  ;;  %v5938_v24 = vpop.f32.mrb[64].mxu0 }
 0x5f4   : > { %6105 = vmatprep.mubr.bf16.mxu1 %v10789_v58  ;;  %v5939_v1 = vadd.f32 %v5938_v24, %v10171_v42  ;;  %v5940_v51 = vpop.f32.mrb[65].mxu0 }
 0x5f5   : > { %v5991_v0 = vpop.f32.mrb[64].mxu1  ;;  %v5941_v59 = vadd.f32 %v5940_v51, %v10171_v42  ;;  %v5942_v36 = vpop.f32.mrb[66].mxu0  ;;  %v10209_v51 = vld [vmem:[%s10797_s7 + $0x8] sm:$0xff]  }
 0x5f6   : > { %v5992_v61 = vadd.f32 %v5991_v0, %v10171_v42  ;;  %v5993_v10 = vpop.f32.mrb[65].mxu1  ;;  %v5943_v16 = vadd.f32 %v5942_v36, %v10173_v14  ;;  %v5944_v55 = vpop.f32.mrb[67].mxu0  ;;  %v6116_v44 = vmax.f32 %v5939_v1, 0.0 }
 0x5f7   : > { %v5994_v52 = vadd.f32 %v5993_v10, %v10171_v42  ;;  %v5945_v31 = vadd.f32 %v5944_v55, %v10173_v14  ;;  %v6117_v46 = vmax.f32 %v5941_v59, 0.0  ;;  %v10222_v10 = vld [vmem:[%s592_s5] sm:$0x7]  ;;  %s10626_s5 = scalar_lea.vmem [#allocation2], %s7198_s4 }
 0x5f8   : > { %v6118_v63 = vmax.f32 %v5992_v61, 0.0  ;;  %v6124_v38 = vmax.f32 %v5943_v16, 0.0  ;;  %v10198_v61 = vld [vmem:[%s10797_s7] sm:$0xff]   ;;  %v10225_v59 = vmul.f32 2.0, %v10222_v10  ;;  %s7123_s25 = sshll.u32 %s10626_s5, 4  ;;  %s10657_s25 = int_to_ptr.vmem [resolvable:$true] %s7123_s25 }
 0x5f9   : > { %v6119_v57 = vmax.f32 %v5994_v52, 0.0  ;;  %v6125_v53 = vmax.f32 %v5945_v31, 0.0  ;;  %v4186_v52 = vand.u32 2139095040, %v10222_v10  ;;  %s7689_s4 = scalar_lea.vmem %s10657_s25, 1024  ;;  %p7696_p1 = scmp.lt.s32.totalorder %s10657_s25, %s7694_s24 }
 0x5fa   : > { %v6148_v40 = vpack.c.bf16 %v6124_v38, %v6116_v44  ;;  %v4394_v36 = vand.u32 2139095040, %v10225_v59  ;;  %p7690_p12 = scmp.ne.s32.totalorder %s10657_s25, %s7689_s4  ;;  %p7697_p2 = scmp.lt.s32.totalorder %s7695_s20, %s7689_s4 }
 0x5fb   : > { %7395 = vmatmul.mubr.msk.bf16.gmra.mrb[76].mxu1 %vm4984_vm9, %v10135_v20  ;;  %v5995_v20 = vpop.f32.mrb[66].mxu1  ;;  %v6149_v12 = vpack.c.bf16 %v6125_v53, %v6117_v46  ;;  %v5948_v4 = vpop.f32.mrb[68].mxu0 }
 0x5fc   : > { %6293 = vmatprep.mubr.bf16.mxu1 %v10789_v58  ;;  %v5996_v29 = vadd.f32 %v5995_v20, %v10173_v14  ;;  %v5997_v18 = vpop.f32.mrb[67].mxu1  ;;  %v5949_v45 = vadd.f32 %v5948_v4, %v10183_v17  ;;  %v5950_v27 = vpop.f32.mrb[69].mxu0  ;;  %v4187_v20 = vshrl.u32 %v4186_v52, 23  ;;  %v4395_v16 = vshrl.u32 %v4394_v36, 23  ;;  %p7691_p13 = pnand %p7690_p12, %p7895_p5  ;;  %p7698_p3 = por %p7697_p2, %p7696_p1 }
 0x5fd   : > { %v5998_v56 = vadd.f32 %v5997_v18, %v10173_v14  ;;  %v6001_v33 = vpop.f32.mrb[68].mxu1  ;;  %v5951_v3 = vadd.f32 %v5950_v27, %v10183_v17  ;;  %v5952_v43 = vpop.f32.mrb[70].mxu0  ;;  %6208 = vmatprep.subr.bf16.mxu0 %v6149_v12 }
 0x5fe   : > { %v6126_v2 = vmax.f32 %v5996_v29, 0.0  ;;  %v6002_v62 = vadd.f32 %v6001_v33, %v10183_v17  ;;  %v6003_v15 = vpop.f32.mrb[69].mxu1  ;;  %v5953_v39 = vadd.f32 %v5952_v43, %v10185_v7  ;;  %v5954_v22 = vpop.f32.mrb[71].mxu0  ;;  %6209 = vmatpush1.bf16.msra.mxu0 %v6148_v40  ;;  %v6132_v6 = vmax.f32 %v5949_v45, 0.0  ;;  %p7692_p0 = pneg %p7691_p13 }
 0x5ff   : > { %v6127_v21 = vmax.f32 %v5998_v56, 0.0  ;;  %v6004_v8 = vadd.f32 %v6003_v15, %v10183_v17  ;;  %v6005_v50 = vpop.f32.mrb[70].mxu1  ;;  %v5955_v47 = vadd.f32 %v5954_v22, %v10185_v7  ;;  %v6133_v35 = vmax.f32 %v5951_v3, 0.0 }
 0x600   : > { %v6150_v49 = vpack.c.bf16 %v6126_v2, %v6118_v63  ;;  %v6006_v25 = vadd.f32 %v6005_v50, %v10185_v7  ;;  %v6007_v11 = vpop.f32.mrb[71].mxu1  ;;  %v6134_v37 = vmax.f32 %v6002_v62, 0.0  ;;  %v6140_v5 = vmax.f32 %v5953_v39, 0.0  ;;  %p7699_p4 = pnand %p7698_p3, %p7692_p0 }
 0x601   : > { %v6151_v13 = vpack.c.bf16 %v6127_v21, %v6119_v57  ;;  %v6008_v9 = vadd.f32 %v6007_v11, %v10185_v7  ;;  %v6135_v19 = vmax.f32 %v6004_v8, 0.0  ;;  %v6141_v54 = vmax.f32 %v5955_v47, 0.0 }
 0x602   : > { %v6142_v60 = vmax.f32 %v6006_v25, 0.0  ;;  %v6156_v48 = vpack.c.bf16 %v6140_v5, %v6132_v6  ;;  %v7330_v29 = vadd.s32 4294967169, %v4187_v20  ;;  %v7338_v55 = vadd.s32 4294967169, %v4395_v16 }
 0x603   : > { %6261 = vmatprep.subr.bf16.mxu1 %v6151_v13  ;;  %v6143_v23 = vmax.f32 %v6008_v9, 0.0  ;;  %v6157_v0 = vpack.c.bf16 %v6141_v54, %v6133_v35  ;;  %v4183_v2 = vand.u32 2147483647, %v10222_v10  ;;  %v4391_v43 = vand.u32 2147483647, %v10225_v59 }
 0x604   : > { %6262 = vmatpush1.bf16.msra.mxu1 %v6150_v49  ;;  %v6158_v24 = vpack.c.bf16 %v6142_v60, %v6134_v37  ;;  %v4193_v18 = vadd.s32 1, %v7330_v29  ;;  %v4401_v31 = vadd.s32 1, %v7338_v55 }
 0x605   : > { %v6159_v1 = vpack.c.bf16 %v6143_v23, %v6135_v19  ;;  %6210 = vmatprep.subr.bf16.mxu0 %v6157_v0  ;;  %v4190_v21 = vand.u32 8388607, %v4183_v2  ;;  %v4398_v54 = vand.u32 8388607, %v4391_v43 }
 0x606   : > { %6211 = vmatpush1.bf16.msra.mxu0 %v6156_v48  ;;  %vm4194_vm14 = vcmp.gt.s32.totalorder %v4193_v18, 0  ;;  %vm4402_vm10 = vcmp.gt.s32.totalorder %v4401_v31, 0 }
 0x607   : > { %6263 = vmatprep.subr.bf16.mxu1 %v6159_v1  ;;  %v4195_v56 = vsel %vm4194_vm14, %v4193_v18, 0  ;;  %v4403_v44 = vsel %vm4402_vm10, %v4401_v31, 0  ;;  %v4191_v48 = vor.u32 8388608, %v4190_v21  ;;  %v4399_v20 = vor.u32 8388608, %v4398_v54 }
 0x608   : > { %6264 = vmatpush1.bf16.msra.mxu1 %v6158_v24  ;;  %v4197_v63 = vand.u32 31, %v4195_v56  ;;  %v4405_v38 = vand.u32 31, %v4403_v44  ;;  %v10230_v46 = vshrl.u32 %v4195_v56, 5  ;;  %v10258_v50 = vshrl.u32 %v4403_v44, 5 }
 0x609   : > { %7398 = vmatmul.mubr.msk.bf16.vlgmr.msra.gmra.mrb[80].mxu0 %vm4984_vm9, %v10198_v61  ;;  %v10296_v18 = vshll.u32 %v4191_v48, 8 }
 0x60a   : > { %6250 = vmatprep.mubr.bf16.mxu0 %v10789_v58  ;;  %v10232_v57 = vsub.s32 32, %v4197_v63  ;;  %v10234_v53 = vsub.s32 32, %v4405_v38  ;;  %vm4218_vm6 = vcmp.lt.s32.totalorder %v10230_v46, 4  ;;  %v4209_v40 = vshll.u32 %v7756_v32, %v4197_v63 }
 0x60b   : > { %7400 = vmatmul.mubr.msk.bf16.vlgmr.msra.gmra.mrb[80].mxu1 %vm4984_vm9, %v10198_v61  ;;  %v4212_v12 = vshll.u32 %v7757_v34, %v4197_v63  ;;  %v4200_v4 = vshll.u32 %v7753_v26, %v4197_v63  ;;  %v4203_v45 = vshll.u32 %v7754_v28, %v4197_v63  ;;  %v4206_v62 = vshll.u32 %v7755_v30, %v4197_v63 }
 0x60c   : > { %6303 = vmatprep.mubr.bf16.mxu1 %v10789_v58  ;;  %v4210_v49 = vshrl.u32 %v7757_v34, %v10232_v57  ;;  %v4213_v13 = vshrl.u32 %v7758_v41, %v10232_v57  ;;  %v4201_v33 = vshrl.u32 %v7754_v28, %v10232_v57  ;;  %v4204_v27 = vshrl.u32 %v7755_v30, %v10232_v57 }
 0x60d   : > { %v4207_v15 = vshrl.u32 %v7756_v32, %v10232_v57  ;;  %v4417_v3 = vshll.u32 %v7756_v32, %v4405_v38  ;;  %v4418_v8 = vshrl.u32 %v7757_v34, %v10234_v53  ;;  %v4420_v39 = vshll.u32 %v7757_v34, %v4405_v38 }
 0x60e   : > { %v4421_v25 = vshrl.u32 %v7758_v41, %v10234_v53  ;;  %v4211_v22 = vor.u32 %v4210_v49, %v4209_v40  ;;  %v4214_v11 = vor.u32 %v4213_v13, %v4212_v12  ;;  %v4408_v47 = vshll.u32 %v7753_v26, %v4405_v38 }
 0x60f   : > { %v4411_v9 = vshll.u32 %v7754_v28, %v4405_v38  ;;  %v4409_v6 = vshrl.u32 %v7754_v28, %v10234_v53  ;;  %v4412_v37 = vshrl.u32 %v7755_v30, %v10234_v53  ;;  %v4414_v5 = vshll.u32 %v7755_v30, %v4405_v38 }
 0x610   : > { %v4415_v34 = vshrl.u32 %v7756_v32, %v10234_v53  ;;  %v4202_v60 = vor.u32 %v4201_v33, %v4200_v4  ;;  %v4205_v35 = vor.u32 %v4204_v27, %v4203_v45  ;;  %v4419_v41 = vor.u32 %v4418_v8, %v4417_v3 }
 0x611   : > { %7399 = vmatmul.mubr.msk.bf16.gmra.mrb[84].mxu0 %vm4984_vm9, %v10209_v51  ;;  %v4208_v19 = vor.u32 %v4207_v15, %v4206_v62  ;;  %v4422_v23 = vor.u32 %v4421_v25, %v4420_v39  ;;  %vm4426_vm15 = vcmp.lt.s32.totalorder %v10258_v50, 4  ;;  %vm4215_vm5 = vcmp.lt.s32.totalorder %v10230_v46, 1 }
 0x612   : > { %6346 = vmatprep.mubr.bf16.mxu0 %v10789_v58  ;;  %vm4217_vm8 = vcmp.lt.s32.totalorder %v10230_v46, 3  ;;  %v4224_v28 = vsel %vm4218_vm6, %v4211_v22, 920167782  ;;  %v4228_v30 = vsel %vm4218_vm6, %v4214_v11, 1326507024  ;;  %v4410_v32 = vor.u32 %v4409_v6, %v4408_v47 }
 0x613   : > { %7401 = vmatmul.mubr.msk.bf16.gmra.mrb[84].mxu1 %vm4984_vm9, %v10209_v51  ;;  %v4413_v24 = vor.u32 %v4412_v37, %v4411_v9  ;;  %v4416_v0 = vor.u32 %v4415_v34, %v4414_v5  ;;  %vm4216_vm11 = vcmp.lt.s32.totalorder %v10230_v46, 2  ;;  %vm4423_vm7 = vcmp.lt.s32.totalorder %v10258_v50, 1 }
 0x614   : > { %6399 = vmatprep.mubr.bf16.mxu1 %v10789_v58  ;;  %vm4425_vm13 = vcmp.lt.s32.totalorder %v10258_v50, 3  ;;  %v4432_v1 = vsel %vm4426_vm15, %v4419_v41, 920167782  ;;  %v4223_v52 = vsel %vm4215_vm5, %v4202_v60, %v4205_v35  ;;  %v4225_v36 = vsel %vm4217_vm8, %v4208_v19, %v4224_v28 }
 0x615   : > { %v4436_v16 = vsel %vm4426_vm15, %v4422_v23, 1326507024  ;;  %v4227_v29 = vsel %vm4215_vm5, %v4205_v35, %v4208_v19  ;;  %v4229_v55 = vsel %vm4217_vm8, %v4211_v22, %v4228_v30  ;;  %vm4424_vm0 = vcmp.lt.s32.totalorder %v10258_v50, 2 }
 0x616   : > { %v4431_v31 = vsel %vm4423_vm7, %v4410_v32, %v4413_v24  ;;  %v4433_v56 = vsel %vm4425_vm13, %v4416_v0, %v4432_v1  ;;  %v4226_v44 = vsel %vm4216_vm11, %v4223_v52, %v4225_v36  ;;  %v4435_v63 = vsel %vm4423_vm7, %v4413_v24, %v4416_v0 }
 0x617   : > { %v4437_v38 = vsel %vm4425_vm13, %v4419_v41, %v4436_v16  ;;  %v4230_v40 = vsel %vm4216_vm11, %v4227_v29, %v4229_v55  ;;  %v4439_v49 = vshll.u32 %v4399_v20, 8  ;;  %v4199_v4 = vshrl.u32 %v7753_v26, %v10232_v57 }
 0x618   : > { %v4220_v33 = vsel %vm4218_vm6, %v4208_v19, 2102212464  ;;  %v4434_v45 = vsel %vm4424_vm0, %v4431_v31, %v4433_v56  ;;  %v10320_v15 = vmul.u32.u64.low %v10296_v18, %v4226_v44  ;;  %v10321_v3 = vmul.u32.u64.high %v10296_v18, %v4226_v44, %v10320_v15 }
 0x619   : > { %v4438_v8 = vsel %vm4424_vm0, %v4435_v63, %v4437_v38  ;;  %v10328_v25 = vmul.u32.u64.low %v10296_v18, %v4230_v40  ;;  %v10329_v22 = vmul.u32.u64.high %v10296_v18, %v4230_v40, %v10328_v25  ;;  %v4407_v11 = vshrl.u32 %v7753_v26, %v10234_v53 }
 0x61a   : > { %v10334_v9 = vmul.u32.u64.low %v4439_v49, %v4434_v45  ;;  %v10335_v6 = vmul.u32.u64.high %v4439_v49, %v4434_v45, %v10334_v9  ;;  %v10338_v34 = vmul.u32.u64.low %v4439_v49, %v4438_v8  ;;  %v10339_v41 = vmul.u32.u64.high %v4439_v49, %v4438_v8, %v10338_v34 }
 0x61b   : > { %v4428_v23 = vsel %vm4426_vm15, %v4416_v0, 2102212464  ;;  %v4219_v26 = vsel %vm4215_vm5, %v4199_v4, %v4202_v60  ;;  %v4221_v53 = vsel %vm4217_vm8, %v4205_v35, %v4220_v33  ;;  %v4427_v36 = vsel %vm4423_vm7, %v4407_v11, %v4410_v32 }
 0x61c   : > { %v4429_v20 = vsel %vm4425_vm13, %v4413_v24, %v4428_v23  ;;  %v4222_v60 = vsel %vm4216_vm11, %v4219_v26, %v4221_v53  ;;  %v4241_v35 = vadd.s32 1, %v10321_v3  ;;  %vm4240_vm4 = vc.u32 %v10329_v22, %v10320_v15 }
 0x61d   : > { %v4430_v24 = vsel %vm4424_vm0, %v4427_v36, %v4429_v20  ;;  %v4449_v31 = vadd.s32 1, %v10335_v6  ;;  %v4238_v46 = vmul.u32 %v10296_v18, %v4222_v60  ;;  %vm4448_vm2 = vc.u32 %v10339_v41, %v10334_v9 }
 0x61e   : > { %vm4393_vm6 = vcmp.lt.s32.totalorder %v10225_v59, 0  ;;  %vm4184_vm15 = vcmp.le.f32.partialorder %v4183_v2, 0.7853982  ;;  %vm4392_vm5 = vcmp.le.f32.partialorder %v4391_v43, 0.7853982 }
 0x61f   : > { %v4450_v4 = vsel %vm4448_vm2, %v4449_v31, %v10335_v6 }
 0x6a5   : > { %v6044_v21 = vpop.f32.mrb[72].mxu0 }
 0x6a6   : > { %v6045_v12 = vadd.f32 %v6044_v21, %v10171_v42  ;;  %v6046_v13 = vpop.f32.mrb[73].mxu0  ;;  %v4242_v21 = vsel %vm4240_vm4, %v4241_v35, %v10321_v3 }
 0x6a7   : > { %v6047_v62 = vadd.f32 %v6046_v13, %v10171_v42  ;;  %v6048_v27 = vpop.f32.mrb[74].mxu0  ;;  %v4243_v50 = vadd.s32 %v4242_v21, %v4238_v46 }
 0x6a8   : > { %v6049_v39 = vadd.f32 %v6048_v27, %v10173_v14  ;;  %v6050_v57 = vpop.f32.mrb[75].mxu0  ;;  %v6120_v37 = vmax.f32 %v6045_v12, 0.0  ;;  %v4446_v12 = vmul.u32 %v4439_v49, %v4430_v24 }
 0x6a9   : > { %v6051_v47 = vadd.f32 %v6050_v57, %v10173_v14  ;;  %v6121_v19 = vmax.f32 %v6047_v62, 0.0  ;;  %v4244_v45 = vadd.s32 536870912, %v4243_v50 }
 0x6aa   : > { %v6128_v5 = vmax.f32 %v6049_v39, 0.0  ;;  %v4451_v33 = vadd.s32 %v4450_v4, %v4446_v12  ;;  %v4239_v12 = vadd.s32 %v10320_v15, %v10329_v22 }
 0x6ab   : > { %v6129_v54 = vmax.f32 %v6051_v47, 0.0  ;;  %v10371_v62 = vshrl.u32 %v4244_v45, 30 }
 0x6ac   : > { %v6152_v48 = vpack.c.bf16 %v6128_v5, %v6120_v37  ;;  %v4452_v18 = vadd.s32 536870912, %v4451_v33 }
 0x6ad   : > { %v6153_v28 = vpack.c.bf16 %v6129_v54, %v6121_v19  ;;  %v6054_v30 = vpop.f32.mrb[76].mxu0  ;;  %v4246_v49 = vshll.u32 %v10371_v62, 30 }
 0x6ae   : > { %v6055_v1 = vadd.f32 %v6054_v30, %v10183_v17  ;;  %v6056_v52 = vpop.f32.mrb[77].mxu0  ;;  %v10373_v27 = vshrl.u32 %v4452_v18, 30 }
 0x6af   : > { %v6057_v0 = vadd.f32 %v6056_v52, %v10183_v17  ;;  %v6058_v16 = vpop.f32.mrb[78].mxu0  ;;  %6314 = vmatprep.subr.bf16.mxu0 %v6153_v28  ;;  %v10380_v8 = vsub.s32 %v4243_v50, %v4246_v49  ;;  %v4447_v50 = vadd.s32 %v10334_v9, %v10339_v41 }
 0x6b0   : > { %v6059_v29 = vadd.f32 %v6058_v16, %v10185_v7  ;;  %v6060_v55 = vpop.f32.mrb[79].mxu0  ;;  %6315 = vmatpush1.bf16.msra.mxu0 %v6152_v48  ;;  %v6136_v56 = vmax.f32 %v6055_v1, 0.0  ;;  %v4454_v3 = vshll.u32 %v10373_v27, 30 }
 0x6b1   : > { %v6061_v32 = vadd.f32 %v6060_v55, %v10185_v7  ;;  %v6137_v63 = vmax.f32 %v6057_v0, 0.0  ;;  %v4249_v34 = vsub.s32 0, %v10380_v8 }
 0x6b2   : > { %v6144_v44 = vmax.f32 %v6059_v29, 0.0  ;;  %v10383_v11 = vsub.s32 %v4451_v33, %v4454_v3 }
 0x6b3   : > { %v6145_v38 = vmax.f32 %v6061_v32, 0.0  ;;  %v7331_v30 = vmin.u32 %v4249_v34, %v10380_v8 }
 0x6b4   : > { %v6160_v40 = vpack.c.bf16 %v6144_v44, %v6136_v56  ;;  %v4457_v48 = vsub.s32 0, %v10383_v11 }
 0x6b5   : > { %v6161_v13 = vpack.c.bf16 %v6145_v38, %v6137_v63  ;;  %v4251_v35 = vclz %v7331_v30 }
 0x6b6   : > { %v7339_v20 = vmin.u32 %v4457_v48, %v10383_v11  ;;  %v4477_v48 = vsub.s32 4, %v10373_v27 }
 0x6b7   : > { %6316 = vmatprep.subr.bf16.mxu0 %v6161_v13  ;;  %v7332_v46 = vadd.s32 4294967294, %v4251_v35 }
 0x6b8   : > { %6317 = vmatpush1.bf16.msra.mxu0 %v6160_v40  ;;  %v4459_v24 = vclz %v7339_v20  ;;  %v4478_v2 = vsel %vm4393_vm6, %v4477_v48, %v10373_v27 }
 0x6b9   : > { %vm7333_vm14 = vcmp.lt.s32.totalorder %v7332_v46, 0  ;;  %v4480_v30 = vsel %vm4392_vm5, 0, %v4478_v2 }
 0x6ba   : > { %v7340_v38 = vadd.s32 4294967294, %v4459_v24  ;;  %v4588_v27 = vand.u32 3, %v4480_v30 }
 0x6bb   : > { %7402 = vmatmul.mubr.msk.bf16.vlgmr.msra.gmra.mrb[88].mxu0 %vm4984_vm9, %v10198_v61 }
 0x6bc   : > { %6356 = vmatprep.mubr.bf16.mxu0 %v10789_v58  ;;  %vm7341_vm10 = vcmp.lt.s32.totalorder %v7340_v38, 0  ;;  %vm4589_vm3 = vcmp.lt.s32.totalorder %v4588_v27, 2 }
 0x6c3   : > { %7403 = vmatmul.mubr.msk.bf16.gmra.mrb[92].mxu0 %vm4984_vm9, %v10209_v51 }
 0x6c4   : > { %6564 = vmatprep.mubr.bf16.mxu0 %v10789_v58 }
 0x6c6   : > { %v6097_v39 = vpop.f32.mrb[72].mxu1 }
 0x6c7   : > { %v6098_v57 = vadd.f32 %v6097_v39, %v10171_v42  ;;  %v6099_v25 = vpop.f32.mrb[73].mxu1 }
 0x6c8   : > { %v6100_v47 = vadd.f32 %v6099_v25, %v10171_v42  ;;  %v6101_v6 = vpop.f32.mrb[74].mxu1 }
 0x6c9   : > { %v6102_v37 = vadd.f32 %v6101_v6, %v10173_v14  ;;  %v6103_v5 = vpop.f32.mrb[75].mxu1  ;;  %v6122_v54 = vmax.f32 %v6098_v57, 0.0 }
 0x6ca   : > { %v6104_v19 = vadd.f32 %v6103_v5, %v10173_v14  ;;  %v6123_v26 = vmax.f32 %v6100_v47, 0.0 }
 0x6cb   : > { %v6130_v23 = vmax.f32 %v6102_v37, 0.0 }
 0x6cc   : > { %v6131_v53 = vmax.f32 %v6104_v19, 0.0 }
 0x6cd   : > { %v6154_v28 = vpack.c.bf16 %v6130_v23, %v6122_v54  ;;  %v4269_v23 = vsub.s32 4, %v10371_v62 }
 0x6ce   : > { %v6155_v1 = vpack.c.bf16 %v6131_v53, %v6123_v26  ;;  %v6107_v52 = vpop.f32.mrb[76].mxu1 }
 0x6cf   : > { %v6108_v42 = vadd.f32 %v6107_v52, %v10183_v17  ;;  %v6109_v36 = vpop.f32.mrb[77].mxu1 }
 0x6d0   : > { %v6110_v0 = vadd.f32 %v6109_v36, %v10183_v17  ;;  %v6111_v16 = vpop.f32.mrb[78].mxu1  ;;  %6367 = vmatprep.subr.bf16.mxu1 %v6155_v1  ;;  %v4254_v17 = vsel %vm7333_vm14, 0, %v7332_v46  ;;  %v4484_v1 = vadd.s32 3, %v4480_v30 }
 0x6d1   : > { %v6112_v14 = vadd.f32 %v6111_v16, %v10185_v7  ;;  %v6113_v60 = vpop.f32.mrb[79].mxu1  ;;  %6368 = vmatpush1.bf16.msra.mxu1 %v6154_v28  ;;  %v6138_v55 = vmax.f32 %v6108_v42, 0.0  ;;  %v4259_v21 = vsub.s32 4294967266, %v4254_v17  ;;  %v4255_v13 = vsub.s32 32, %v4254_v17 }
 0x6d2   : > { %v6114_v29 = vadd.f32 %v6113_v60, %v10185_v7  ;;  %v6139_v31 = vmax.f32 %v6110_v0, 0.0  ;;  %v4462_v7 = vsel %vm7341_vm10, 0, %v7340_v38  ;;  %v4256_v45 = vshll.u32 %v10380_v8, %v4254_v17 }
 0x6d3   : > { %v6146_v32 = vmax.f32 %v6112_v14, 0.0  ;;  %v4467_v40 = vsub.s32 4294967266, %v4462_v7  ;;  %v4260_v4 = vadd.s32 127, %v4259_v21  ;;  %v4257_v18 = vshrl.u32 %v4239_v12, %v4255_v13 }
 0x6d4   : > { %v6147_v56 = vmax.f32 %v6114_v29, 0.0  ;;  %v4464_v3 = vshll.u32 %v10383_v11, %v4462_v7  ;;  %v4485_v14 = vand.u32 3, %v4484_v1 }
 0x6d5   : > { %v6162_v44 = vpack.c.bf16 %v6146_v32, %v6138_v55  ;;  %v4468_v33 = vadd.s32 127, %v4467_v40  ;;  %v4261_v49 = vshll.u32 %v4260_v4, 23  ;;  %v4258_v22 = vor.u32 %v4257_v18, %v4256_v45 }
 0x6d6   : > { %v6163_v63 = vpack.c.bf16 %v6147_v56, %v6139_v31  ;;  %vm4487_vm0 = vcmp.eq.s32.totalorder %v4485_v14, 0  ;;  %vm4490_vm4 = vcmp.eq.s32.totalorder %v4485_v14, 2  ;;  %vm4486_vm10 = vcmp.lt.s32.totalorder %v4485_v14, 2 }
 0x6d7   : > { %v4469_v15 = vshll.u32 %v4468_v33, 23  ;;  %v4262_v57 = vor.u32 4788187, %v4261_v49  ;;  %v4265_v6 = vcvt.s32.f32 %v4258_v22 }
 0x6d8   : > { %6369 = vmatprep.subr.bf16.mxu1 %v6163_v63 }
 0x6d9   : > { %6370 = vmatpush1.bf16.msra.mxu1 %v6162_v44  ;;  %v4470_v47 = vor.u32 4788187, %v4469_v15 }
 0x6db   : > { %v4471_v37 = vand.u32 2147483647, %v4470_v47 }
 0x6dc   : > { %7404 = vmatmul.mubr.msk.bf16.vlgmr.msra.gmra.mrb[88].mxu1 %vm4984_vm9, %v10198_v61  ;;  %v4463_v61 = vsub.s32 32, %v4462_v7  ;;  %v6242_v18 = vpop.f32.mrb[80].mxu0 }
 0x6dd   : > { %6409 = vmatprep.mubr.bf16.mxu1 %v10789_v58  ;;  %v6244_v22 = vpop.f32.mrb[81].mxu0 }
 0x6de   : > { %v4465_v39 = vshrl.u32 %v4447_v50, %v4463_v61  ;;  %v10424_v50 = vpop.permute.xlu0 %6174  ;;  %v10426_v61 = vpop.permute.xlu1 %6179 }
 0x6df   : > { %v6295_v49 = vpop.f32.mrb[80].mxu1 }
 0x6e0   : > { %v4466_v25 = vor.u32 %v4465_v39, %v4464_v3  ;;  %v6243_v39 = vadd.f32 %v6242_v18, %v10424_v50  ;;  %v6296_v15 = vadd.f32 %v6295_v49, %v10424_v50 }
 0x6e2   : > { %v4473_v5 = vcvt.s32.f32 %v4466_v25  ;;  %v6245_v25 = vadd.f32 %v6244_v22, %v10424_v50  ;;  %v10441_v30 = vpop.permute.xlu0 %6184 }
 0x6e4   : > { %7405 = vmatmul.mubr.msk.bf16.gmra.mrb[92].mxu1 %vm4984_vm9, %v10209_v51  ;;  %v4263_v51 = vand.u32 2147483647, %v4262_v57  ;;  %v4474_v9 = vmul.f32 %v4473_v5, %v4471_v37  ;;  %vm4185_vm9 = vcmp.lt.s32.totalorder %v10222_v10, 0  ;;  %v6297_v57 = vpop.f32.mrb[81].mxu1 }
 0x6e5   : > { %6625 = vmatprep.mubr.bf16.mxu1 %v10789_v58  ;;  %v4270_v53 = vsel %vm4185_vm9, %v4269_v23, %v10371_v62  ;;  %v6298_v47 = vadd.f32 %v6297_v57, %v10424_v50  ;;  %v6422_v23 = vmax.f32 %v6296_v15, 0.0 }
 0x6e6   : > { %v4266_v34 = vmul.f32 %v4265_v6, %v4263_v51  ;;  %v4475_v8 = vxor.u32 2147483648, %v4474_v9  ;;  %v4272_v28 = vsel %vm4184_vm15, 0, %v4270_v53  ;;  %v6246_v51 = vpop.f32.mrb[82].mxu0  ;;  %v6299_v6 = vpop.f32.mrb[82].mxu1  ;;  %v6421_v53 = vmax.f32 %v6245_v25, 0.0 }
 0x6e7   : > { %v4276_v43 = vadd.s32 3, %v4272_v28  ;;  %v4380_v36 = vand.u32 3, %v4272_v28  ;;  %v6247_v5 = vadd.f32 %v6246_v51, %v10426_v61  ;;  %v6423_v2 = vmax.f32 %v6298_v47, 0.0  ;;  %v10467_v47 = vld [vmem:[%s10711_s8] sm:$0xff]   ;;  %v10478_v51 = vld [vmem:[%s10711_s8 + $0x8] sm:$0xff]  }
 0x6e8   : > { %v4267_v41 = vxor.u32 2147483648, %v4266_v34  ;;  %v4476_v19 = vsel %vm4393_vm6, %v4475_v8, %v4474_v9  ;;  %vm4593_vm6 = vcmp.eq.s32.totalorder %v4588_v27, 2  ;;  %v6301_v9 = vpop.f32.mrb[83].mxu1 }
 0x6e9   : > { %v4479_v26 = vsel %vm4392_vm5, %v10225_v59, %v4476_v19  ;;  %v4277_v0 = vand.u32 3, %v4276_v43  ;;  %vm4382_vm8 = vcmp.eq.s32.totalorder %v4380_v36, 0  ;;  %vm4385_vm13 = vcmp.eq.s32.totalorder %v4380_v36, 2  ;;  %v10443_v43 = vpop.permute.xlu1 %6189  ;;  %v6305_v14 = vpop.f32.mrb[84].mxu1 }
 0x6ea   : > { %v4268_v11 = vsel %vm4185_vm9, %v4267_v41, %v4266_v34  ;;  %vm4381_vm2 = vcmp.lt.s32.totalorder %v4380_v36, 2  ;;  %vm4590_vm9 = vcmp.eq.s32.totalorder %v4588_v27, 0  ;;  %vm4483_vm5 = vweird.f32 %v10225_v59  ;;  %v6248_v34 = vpop.f32.mrb[83].mxu0 }
 0x6eb   : > { %v4271_v54 = vsel %vm4184_vm15, %v10222_v10, %v4268_v11  ;;  %vm4279_vm11 = vcmp.eq.s32.totalorder %v4277_v0, 0  ;;  %vm4282_vm7 = vcmp.eq.s32.totalorder %v4277_v0, 2  ;;  %vm4278_vm14 = vcmp.lt.s32.totalorder %v4277_v0, 2 }
 0x6ec   : > { %7643 = vcosq.f32 %v4271_v54  ;;  %vm4275_vm15 = vweird.f32 %v10222_v10  ;;  %v6300_v59 = vadd.f32 %v6299_v6, %v10426_v61  ;;  %v6249_v11 = vadd.f32 %v6248_v34, %v10426_v61  ;;  %v10489_v6 = vld [vmem:[%s10711_s8 + $0x10] ss:$0 sps:$4 sm:$0x11]  }
 0x6ed   : > { %7645 = vsinq.f32 %v4271_v54  ;;  %v6302_v19 = vadd.f32 %v6301_v9, %v10426_v61  ;;  %v6420_v54 = vmax.f32 %v6243_v39, 0.0  ;;  %v6428_v48 = vmax.f32 %v6247_v5, 0.0 }
 0x6ee   : > { %7647 = vcosq.f32 %v4479_v26 }
 0x6ef   : > { %7649 = vsinq.f32 %v4479_v26  ;;  %v6430_v26 = vmax.f32 %v6300_v59, 0.0  ;;  %v6431_v28 = vmax.f32 %v6302_v19, 0.0  ;;  %v6452_v1 = vpack.c.bf16 %v6428_v48, %v6420_v54 }
 0x6f1   : > { %v6455_v0 = vpack.c.bf16 %v6431_v28, %v6423_v2 }
 0x6f3   : > { %6593 = vmatprep.subr.bf16.mxu1 %v6455_v0 }
 0x6f6   : > { %v7644_v52 = vpop.eup %7643 }
 0x6f7   : > { %v7646_v42 = vpop.eup %7645  ;;  %v4283_v35 = vxor.u32 2147483648, %v7644_v52 }
 0x6f8   : > { %v7648_v20 = vpop.eup %7647  ;;  %v4280_v60 = vxor.u32 2147483648, %v7646_v42 }
 0x6f9   : > { %v7650_v16 = vpop.eup %7649  ;;  %v4491_v29 = vxor.u32 2147483648, %v7648_v20  ;;  %v4284_v32 = vsel %vm4282_vm7, %v4283_v35, %v7646_v42  ;;  %v4387_v31 = vsel %vm4385_vm13, %v4283_v35, %v7646_v42  ;;  %v10799_v42 = vmov 65535  }
 0x6fa   : > { %v4488_v62 = vxor.u32 2147483648, %v7650_v16  ;;  %v4281_v55 = vsel %vm4279_vm11, %v7644_v52, %v4280_v60  ;;  %v4384_v24 = vsel %vm4382_vm8, %v7644_v52, %v4280_v60  ;;  %v6454_v52 = vpack.c.bf16 %v6430_v26, %v6422_v23 }
 0x6fb   : > { %v4492_v44 = vsel %vm4490_vm4, %v4491_v29, %v7650_v16  ;;  %v4285_v46 = vsel %vm4278_vm14, %v4281_v55, %v4284_v32  ;;  %v4388_v63 = vsel %vm4381_vm2, %v4384_v24, %v4387_v31  ;;  %v4595_v7 = vsel %vm4593_vm6, %v4491_v29, %v7650_v16  ;;  %v6252_v16 = vpop.f32.mrb[84].mxu0  ;;  %v6307_v55 = vpop.f32.mrb[85].mxu1 }
 0x6fc   : > { %v4489_v56 = vsel %vm4487_vm0, %v7648_v20, %v4488_v62  ;;  %v4592_v17 = vsel %vm4590_vm9, %v7648_v20, %v4488_v62  ;;  %v4286_v21 = vsel %vm4275_vm15, nan, %v4285_v46  ;;  %v4389_v40 = vsel %vm4275_vm15, nan, %v4388_v63  ;;  %v6254_v27 = vpop.f32.mrb[85].mxu0  ;;  %6594 = vmatpush1.bf16.msra.mxu1 %v6454_v52 }
 0x6fd   : > { %v4493_v38 = vsel %vm4486_vm10, %v4489_v56, %v4492_v44  ;;  %v4596_v13 = vsel %vm4589_vm3, %v4592_v17, %v4595_v7  ;;  %v4599_v4 = vrot.slane %v4286_v21, 5  ;;  %v4602_v33 = vrot.slane %v4389_v40, 2  ;;  %v6256_v31 = vpop.f32.mrb[86].mxu0  ;;  %v6309_v56 = vpop.f32.mrb[86].mxu1 }
 0x6fe   : > { %v4494_v12 = vsel %vm4483_vm5, nan, %v4493_v38  ;;  %v4597_v3 = vsel %vm4483_vm5, nan, %v4596_v13  ;;  %vm10800_vm3 = vcmask 1046528   ;;  %vm10801_vm8 = vcmask 1045504   ;;  %v6258_v63 = vpop.f32.mrb[87].mxu0  ;;  %v6311_v38 = vpop.f32.mrb[87].mxu1 }
 0x6ff   : > { %v4605_v45 = vrot.slane %v4494_v12, 7  ;;  %v4610_v37 = vsel %vm4103_vm12, %v10222_v10, %v4599_v4  ;;  %v4608_v41 = vrot.slane %v4597_v3, 4  ;;  %v6429_v10 = vmax.f32 %v6249_v11, 0.0 }
 0x700   : > { %vm6526_vm12 = vcmask 1047552   ;;  %v6527_v36 = vsel %vm10800_vm3, 4294967295, %v10799_v42  ;;  %v4611_v60 = vsel %vm10801_vm8, %v4610_v37, %v4602_v33  ;;  %vm10802_vm11 = vcmask 1043456  }
 0x701   : > { %v4612_v8 = vsel %vm4121_vm1, %v4602_v33, %v4605_v45  ;;  %v6453_v20 = vpack.c.bf16 %v6429_v10, %v6421_v53  ;;  %v6253_v62 = vadd.f32 %v6252_v16, %v10441_v30  ;;  %v6306_v29 = vadd.f32 %v6305_v14, %v10441_v30 }
 0x702   : > { %v4613_v35 = vsel %vm10802_vm11, %v4612_v8, %v4608_v41  ;;  %v6255_v32 = vadd.f32 %v6254_v27, %v10441_v30  ;;  %v6308_v24 = vadd.f32 %v6307_v55, %v10441_v30  ;;  %v6257_v44 = vadd.f32 %v6256_v31, %v10443_v43 }
 0x703   : > { %6532 = vmatprep.subr.bf16.mxu0 %v6453_v20  ;;  %v6310_v46 = vadd.f32 %v6309_v56, %v10443_v43  ;;  %v4614_v17 = vpack.c.bf16 %v4613_v35, %v4611_v60  ;;  %v6528_v7 = vsel %vm6526_vm12, %v6527_v36, 0  ;;  %v6259_v21 = vadd.f32 %v6258_v63, %v10443_v43 }
 0x704   : > { %6533 = vmatpush1.bf16.msra.mxu0 %v6452_v1  ;;  %v6312_v40 = vadd.f32 %v6311_v38, %v10443_v43  ;;  %v6436_v12 = vmax.f32 %v6253_v62, 0.0  ;;  %v6438_v13 = vmax.f32 %v6306_v29, 0.0  ;;  %v6444_v4 = vmax.f32 %v6257_v44, 0.0 }
 0x705   : > { %v6446_v33 = vmax.f32 %v6310_v46, 0.0  ;;  %v6437_v45 = vmax.f32 %v6255_v32, 0.0  ;;  %v6439_v18 = vmax.f32 %v6308_v24, 0.0  ;;  %v6445_v49 = vmax.f32 %v6259_v21, 0.0 }
 0x706   : > { %v6447_v3 = vmax.f32 %v6312_v40, 0.0  ;;  %v6460_v39 = vpack.c.bf16 %v6444_v4, %v6436_v12  ;;  %v10458_v22 = vand.u32 %v6528_v7, %v4614_v17  ;;  %vm6516_vm7 = vcmask 384000  }
 0x707   : > { %v6462_v15 = vpack.c.bf16 %v6446_v33, %v6438_v13  ;;  %v6461_v57 = vpack.c.bf16 %v6445_v49, %v6437_v45 }
 0x708   : > { %v6463_v25 = vpack.c.bf16 %v6447_v3, %v6439_v18 }
 0x709   : > { %6534 = vmatprep.subr.bf16.mxu0 %v6461_v57 }
 0x70a   : > { %6595 = vmatprep.subr.bf16.mxu1 %v6463_v25  ;;  %6535 = vmatpush1.bf16.msra.mxu0 %v6460_v39 }
 0x70b   : > { %6596 = vmatpush1.bf16.msra.mxu1 %v6462_v15  ;;  %6536 = vmatprep.subr.bf16.mxu0 %v10458_v22 }
 0x70c   : > { %6597 = vmatprep.subr.bf16.mxu1 %v10458_v22 }
 0x70e   : > { %6537 = vmatpush1.bf16.msra.mxu0 %v10458_v22 }
 0x70f   : > { %6598 = vmatpush1.bf16.msra.mxu1 %v10458_v22 }
 0x711   : > { %7409 = vmatmul.mubr.msk.bf16.vlgmr.msra.gmra.mrb[96].mxu0 %vm6516_vm7, %v10467_v47 }
 0x712   : > { %7412 = vmatmul.mubr.msk.bf16.vlgmr.msra.gmra.mrb[96].mxu1 %vm6516_vm7, %v10467_v47  ;;  %6574 = vmatprep.mubr.bf16.mxu0 %v10789_v58 }
 0x713   : > { %6635 = vmatprep.mubr.bf16.mxu1 %v10789_v58 }
 0x719   : > { %7410 = vmatmul.mubr.msk.bf16.gmra.mrb[100].mxu0 %vm6516_vm7, %v10478_v51 }
 0x71a   : > { %7413 = vmatmul.mubr.msk.bf16.gmra.mrb[100].mxu1 %vm6516_vm7, %v10478_v51  ;;  %6584 = vmatprep.mubr.bf16.mxu0 %v10789_v58 }
 0x71b   : > { %6645 = vmatprep.mubr.bf16.mxu1 %v10789_v58 }
 0x721   : > { %7411 = vmatmul.mubr.msk.bf16.gmra.mrb[104].mxu0 %vm6516_vm7, %v10489_v6 }
 0x722   : > { %7414 = vmatmul.mubr.msk.bf16.gmra.mrb[104].mxu1 %vm6516_vm7, %v10489_v6  ;;  %6686 = vmatprep.mubr.bf16.mxu0 %v10789_v58 }
 0x723   : > { %6747 = vmatprep.mubr.bf16.mxu1 %v10789_v58 }
 0x78e   : > { %v6348_v37 = vpop.f32.mrb[88].mxu0 }
 0x78f   : > { %v6349_v5 = vadd.f32 %v6348_v37, %v10424_v50  ;;  %v6350_v59 = vpop.f32.mrb[89].mxu0 }
 0x790   : > { %v6351_v34 = vadd.f32 %v6350_v59, %v10424_v50  ;;  %v6352_v9 = vpop.f32.mrb[90].mxu0 }
 0x791   : > { %v6353_v41 = vadd.f32 %v6352_v9, %v10426_v61  ;;  %v6354_v8 = vpop.f32.mrb[91].mxu0  ;;  %v6424_v19 = vmax.f32 %v6349_v5, 0.0 }
 0x792   : > { %v6355_v11 = vadd.f32 %v6354_v8, %v10426_v61  ;;  %v6425_v23 = vmax.f32 %v6351_v34, 0.0 }
 0x793   : > { %v6432_v54 = vmax.f32 %v6353_v41, 0.0 }
 0x794   : > { %v6433_v48 = vmax.f32 %v6355_v11, 0.0 }
 0x795   : > { %v6456_v26 = vpack.c.bf16 %v6432_v54, %v6424_v19 }
 0x796   : > { %v6457_v53 = vpack.c.bf16 %v6433_v48, %v6425_v23  ;;  %v6358_v2 = vpop.f32.mrb[92].mxu0 }
 0x797   : > { %v6359_v10 = vadd.f32 %v6358_v2, %v10441_v30  ;;  %v6360_v28 = vpop.f32.mrb[93].mxu0 }
 0x798   : > { %v6361_v1 = vadd.f32 %v6360_v28, %v10441_v30  ;;  %v6362_v52 = vpop.f32.mrb[94].mxu0  ;;  %6654 = vmatprep.subr.bf16.mxu0 %v6457_v53 }
 0x799   : > { %v6363_v42 = vadd.f32 %v6362_v52, %v10443_v43  ;;  %v6364_v36 = vpop.f32.mrb[95].mxu0  ;;  %6655 = vmatpush1.bf16.msra.mxu0 %v6456_v26  ;;  %v6440_v0 = vmax.f32 %v6359_v10, 0.0 }
 0x79a   : > { %v6365_v20 = vadd.f32 %v6364_v36, %v10443_v43  ;;  %v6441_v14 = vmax.f32 %v6361_v1, 0.0 }
 0x79b   : > { %v6448_v16 = vmax.f32 %v6363_v42, 0.0 }
 0x79c   : > { %v6449_v60 = vmax.f32 %v6365_v20, 0.0 }
 0x79d   : > { %v6464_v35 = vpack.c.bf16 %v6448_v16, %v6440_v0 }
 0x79e   : > { %v6465_v62 = vpack.c.bf16 %v6449_v60, %v6441_v14 }
 0x7a0   : > { %6656 = vmatprep.subr.bf16.mxu0 %v6465_v62 }
 0x7a1   : > { %6657 = vmatpush1.bf16.msra.mxu0 %v6464_v35 }
 0x7a2   : > { %6658 = vmatprep.subr.bf16.mxu0 %v10458_v22 }
 0x7a5   : > { %6659 = vmatpush1.bf16.msra.mxu0 %v10458_v22 }
 0x7a8   : > { %7415 = vmatmul.mubr.msk.bf16.vlgmr.msra.gmra.mrb[108].mxu0 %vm6516_vm7, %v10467_v47 }
 0x7a9   : > { %6696 = vmatprep.mubr.bf16.mxu0 %v10789_v58 }
 0x7af   : > { %v6401_v29 = vpop.f32.mrb[88].mxu1 }
 0x7b0   : > { %7416 = vmatmul.mubr.msk.bf16.gmra.mrb[112].mxu0 %vm6516_vm7, %v10478_v51  ;;  %v6402_v27 = vadd.f32 %v6401_v29, %v10424_v50  ;;  %v6403_v55 = vpop.f32.mrb[89].mxu1 }
 0x7b1   : > { %6706 = vmatprep.mubr.bf16.mxu0 %v10789_v58  ;;  %v6404_v32 = vadd.f32 %v6403_v55, %v10424_v50  ;;  %v6405_v24 = vpop.f32.mrb[90].mxu1 }
 0x7b2   : > { %v6406_v31 = vadd.f32 %v6405_v24, %v10426_v61  ;;  %v6407_v56 = vpop.f32.mrb[91].mxu1  ;;  %v6426_v46 = vmax.f32 %v6402_v27, 0.0 }
 0x7b3   : > { %v6408_v44 = vadd.f32 %v6407_v56, %v10426_v61  ;;  %v6427_v38 = vmax.f32 %v6404_v32, 0.0 }
 0x7b4   : > { %v6434_v63 = vmax.f32 %v6406_v31, 0.0 }
 0x7b5   : > { %v6435_v17 = vmax.f32 %v6408_v44, 0.0 }
 0x7b6   : > { %v6458_v7 = vpack.c.bf16 %v6434_v63, %v6426_v46 }
 0x7b7   : > { %v6459_v21 = vpack.c.bf16 %v6435_v17, %v6427_v38  ;;  %v6411_v40 = vpop.f32.mrb[92].mxu1 }
 0x7b8   : > { %7417 = vmatmul.mubr.msk.bf16.gmra.mrb[116].mxu0 %vm6516_vm7, %v10489_v6  ;;  %v6412_v12 = vadd.f32 %v6411_v40, %v10441_v30  ;;  %v6413_v13 = vpop.f32.mrb[93].mxu1 }
 0x7b9   : > { %6909 = vmatprep.mubr.bf16.mxu0 %v10789_v58  ;;  %v6414_v50 = vadd.f32 %v6413_v13, %v10441_v30  ;;  %v6415_v4 = vpop.f32.mrb[94].mxu1  ;;  %6715 = vmatprep.subr.bf16.mxu1 %v6459_v21  ;;  %v10535_v30 = vpop.permute.xlu0 %6480 }
 0x7ba   : > { %v6416_v61 = vadd.f32 %v6415_v4, %v10443_v43  ;;  %v6417_v33 = vpop.f32.mrb[95].mxu1  ;;  %6716 = vmatpush1.bf16.msra.mxu1 %v6458_v7  ;;  %v6442_v18 = vmax.f32 %v6412_v12, 0.0 }
 0x7bb   : > { %v6418_v45 = vadd.f32 %v6417_v33, %v10443_v43  ;;  %v6443_v3 = vmax.f32 %v6414_v50, 0.0  ;;  %v10537_v43 = vpop.permute.xlu1 %6485 }
 0x7bc   : > { %v6450_v49 = vmax.f32 %v6416_v61, 0.0 }
 0x7bd   : > { %v6451_v39 = vmax.f32 %v6418_v45, 0.0  ;;  %v10547_v42 = vpop.permute.xlu0 %6490 }
 0x7be   : > { %v6466_v15 = vpack.c.bf16 %v6450_v49, %v6442_v18 }
 0x7bf   : > { %v6467_v57 = vpack.c.bf16 %v6451_v39, %v6443_v3  ;;  %v10549_v36 = vpop.permute.xlu1 %6495 }
 0x7c1   : > { %6717 = vmatprep.subr.bf16.mxu1 %v6467_v57  ;;  %v10559_v45 = vpop.permute.xlu0 %6500 }
 0x7c2   : > { %6718 = vmatpush1.bf16.msra.mxu1 %v6466_v15 }
 0x7c3   : > { %6719 = vmatprep.subr.bf16.mxu1 %v10458_v22 }
 0x7c6   : > { %6720 = vmatpush1.bf16.msra.mxu1 %v10458_v22 }
 0x7c9   : > { %7418 = vmatmul.mubr.msk.bf16.vlgmr.msra.gmra.mrb[108].mxu1 %vm6516_vm7, %v10467_v47 }
 0x7ca   : > { %6757 = vmatprep.mubr.bf16.mxu1 %v10789_v58 }
 0x7d1   : > { %7419 = vmatmul.mubr.msk.bf16.gmra.mrb[112].mxu1 %vm6516_vm7, %v10478_v51 }
 0x7d2   : > { %6767 = vmatprep.mubr.bf16.mxu1 %v10789_v58 }
 0x7d9   : > { %7420 = vmatmul.mubr.msk.bf16.gmra.mrb[116].mxu1 %vm6516_vm7, %v10489_v6 }
 0x7da   : > { %6950 = vmatprep.mubr.bf16.mxu1 %v10789_v58 }
 0x7e4   : > { %v6566_v22 = vpop.f32.mrb[96].mxu0 }
 0x7e5   : > { %v6627_v25 = vpop.f32.mrb[96].mxu1  ;;  %v6567_v47 = vadd.f32 %v6566_v22, %v10535_v30  ;;  %v6568_v5 = vpop.f32.mrb[97].mxu0 }
 0x7e6   : > { %v6628_v37 = vadd.f32 %v6627_v25, %v10535_v30  ;;  %v6629_v59 = vpop.f32.mrb[97].mxu1  ;;  %v6569_v51 = vadd.f32 %v6568_v5, %v10535_v30  ;;  %v6570_v9 = vpop.f32.mrb[98].mxu0 }
 0x7e7   : > { %v6630_v34 = vadd.f32 %v6629_v59, %v10535_v30  ;;  %v6631_v6 = vpop.f32.mrb[98].mxu1  ;;  %v6571_v41 = vadd.f32 %v6570_v9, %v10537_v43  ;;  %v6572_v11 = vpop.f32.mrb[99].mxu0  ;;  %v6776_v48 = vmax.f32 %v6567_v47, 0.0 }
 0x7e8   : > { %v6632_v8 = vadd.f32 %v6631_v6, %v10537_v43  ;;  %v6633_v19 = vpop.f32.mrb[99].mxu1  ;;  %v6573_v54 = vadd.f32 %v6572_v11, %v10537_v43  ;;  %v6778_v26 = vmax.f32 %v6628_v37, 0.0  ;;  %v6777_v10 = vmax.f32 %v6569_v51, 0.0 }
 0x7e9   : > { %v6634_v23 = vadd.f32 %v6633_v19, %v10537_v43  ;;  %v6784_v53 = vmax.f32 %v6571_v41, 0.0  ;;  %v6779_v28 = vmax.f32 %v6630_v34, 0.0 }
 0x7ea   : > { %v6786_v2 = vmax.f32 %v6632_v8, 0.0  ;;  %v6785_v1 = vmax.f32 %v6573_v54, 0.0 }
 0x7eb   : > { %v6787_v52 = vmax.f32 %v6634_v23, 0.0  ;;  %v6816_v20 = vpack.c.bf16 %v6784_v53, %v6776_v48  ;;  %v10567_v23 = vsel %vm4121_vm1, 65535, %v10789_v58  ;;  %vm6847_vm1 = vcmask 269312  }
 0x7ec   : > { %v6818_v0 = vpack.c.bf16 %v6786_v2, %v6778_v26  ;;  %v6817_v16 = vpack.c.bf16 %v6785_v1, %v6777_v10  ;;  %v6576_v60 = vpop.f32.mrb[100].mxu0 }
 0x7ed   : > { %v6819_v14 = vpack.c.bf16 %v6787_v52, %v6779_v28  ;;  %v6637_v35 = vpop.f32.mrb[100].mxu1  ;;  %v6577_v62 = vadd.f32 %v6576_v60, %v10547_v42  ;;  %v6578_v27 = vpop.f32.mrb[101].mxu0  ;;  %v10576_v52 = vld [vmem:[%s10712_s9] sm:$0xf] }
 0x7ee   : > { %v6638_v29 = vadd.f32 %v6637_v35, %v10547_v42  ;;  %v6639_v55 = vpop.f32.mrb[101].mxu1  ;;  %v6579_v32 = vadd.f32 %v6578_v27, %v10547_v42  ;;  %v6580_v31 = vpop.f32.mrb[102].mxu0  ;;  %6877 = vmatprep.subr.bf16.mxu0 %v6817_v16 }
 0x7ef   : > { %v6640_v24 = vadd.f32 %v6639_v55, %v10547_v42  ;;  %v6641_v56 = vpop.f32.mrb[102].mxu1  ;;  %6918 = vmatprep.subr.bf16.mxu1 %v6819_v14  ;;  %v6581_v44 = vadd.f32 %v6580_v31, %v10549_v36  ;;  %v6582_v63 = vpop.f32.mrb[103].mxu0  ;;  %6878 = vmatpush1.bf16.msra.mxu0 %v6816_v20  ;;  %v6792_v21 = vmax.f32 %v6577_v62, 0.0 }
 0x7f0   : > { %v6642_v46 = vadd.f32 %v6641_v56, %v10549_v36  ;;  %v6643_v38 = vpop.f32.mrb[103].mxu1  ;;  %6919 = vmatpush1.bf16.msra.mxu1 %v6818_v0  ;;  %v6583_v17 = vadd.f32 %v6582_v63, %v10549_v36  ;;  %v6794_v40 = vmax.f32 %v6638_v29, 0.0  ;;  %v6793_v50 = vmax.f32 %v6579_v32, 0.0 }
 0x7f1   : > { %v6644_v7 = vadd.f32 %v6643_v38, %v10549_v36  ;;  %v6800_v12 = vmax.f32 %v6581_v44, 0.0  ;;  %v6795_v4 = vmax.f32 %v6640_v24, 0.0 }
 0x7f2   : > { %v6802_v13 = vmax.f32 %v6642_v46, 0.0  ;;  %v6801_v61 = vmax.f32 %v6583_v17, 0.0 }
 0x7f3   : > { %v6803_v33 = vmax.f32 %v6644_v7, 0.0  ;;  %v6824_v18 = vpack.c.bf16 %v6800_v12, %v6792_v21 }
 0x7f4   : > { %v6826_v49 = vpack.c.bf16 %v6802_v13, %v6794_v40  ;;  %v6825_v3 = vpack.c.bf16 %v6801_v61, %v6793_v50  ;;  %v6586_v15 = vpop.f32.mrb[104].mxu0 }
 0x7f5   : > { %v6827_v39 = vpack.c.bf16 %v6803_v33, %v6795_v4  ;;  %v6647_v57 = vpop.f32.mrb[104].mxu1  ;;  %v6587_v22 = vadd.f32 %v6586_v15, %v10559_v45  ;;  %v6588_v47 = vpop.f32.mrb[105].mxu0 }
 0x7f6   : > { %v6648_v25 = vadd.f32 %v6647_v57, %v10559_v45  ;;  %v6649_v37 = vpop.f32.mrb[105].mxu1  ;;  %v6589_v5 = vadd.f32 %v6588_v47, %v10559_v45  ;;  %6879 = vmatprep.subr.bf16.mxu0 %v6825_v3  ;;  %v6590_v51 = vpop.f32.mrb[106].mxu0 }
 0x7f7   : > { %v6650_v59 = vadd.f32 %v6649_v37, %v10559_v45  ;;  %6920 = vmatprep.subr.bf16.mxu1 %v6827_v39  ;;  %v6651_v34 = vpop.f32.mrb[106].mxu1  ;;  %v6808_v9 = vmax.f32 %v6587_v22, 0.0  ;;  %6880 = vmatpush1.bf16.msra.mxu0 %v6824_v18  ;;  %v6591_v41 = vpop.f32.mrb[107].mxu0 }
 0x7f8   : > { %v6810_v6 = vmax.f32 %v6648_v25, 0.0  ;;  %6921 = vmatpush1.bf16.msra.mxu1 %v6826_v49  ;;  %v6652_v8 = vpop.f32.mrb[107].mxu1  ;;  %v6809_v11 = vmax.f32 %v6589_v5, 0.0 }
 0x7f9   : > { %v6811_v19 = vmax.f32 %v6650_v59, 0.0  ;;  %v6832_v54 = vpack.c.bf16 %v6808_v9, %v6808_v9 }
 0x7fa   : > { %v6834_v48 = vpack.c.bf16 %v6810_v6, %v6810_v6  ;;  %v6833_v26 = vpack.c.bf16 %v6809_v11, %v6809_v11 }
 0x7fb   : > { %v6835_v53 = vpack.c.bf16 %v6811_v19, %v6811_v19  ;;  %v6854_v28 = vand.u32 %v10567_v23, %v6832_v54 }
 0x7fc   : > { %v6857_v2 = vand.u32 %v10567_v23, %v6833_v26  ;;  %v6860_v1 = vand.u32 %v10567_v23, %v6834_v48 }
 0x7fd   : > { %v6863_v10 = vand.u32 %v10567_v23, %v6835_v53 }
 0x7fe   : > { %6881 = vmatprep.subr.bf16.mxu0 %v6857_v2 }
 0x7ff   : > { %6922 = vmatprep.subr.bf16.mxu1 %v6863_v10  ;;  %6882 = vmatpush1.bf16.msra.mxu0 %v6854_v28 }
 0x800   : > { %6923 = vmatpush1.bf16.msra.mxu1 %v6860_v1 }
 0x802   : > { %7421 = vmatmul.mubr.msk.bf16.vlgmr.msra.gmra.mrb[120].mxu0 %vm6847_vm1, %v10576_v52 }
 0x803   : > { %7422 = vmatmul.mubr.msk.bf16.vlgmr.msra.gmra.mrb[120].mxu1 %vm6847_vm1, %v10576_v52  ;;  %6991 = vmatprep.mubr.bf16.mxu0 %v10789_v58 }
 0x804   : > { %7032 = vmatprep.mubr.bf16.mxu1 %v10789_v58 }
 0x87b   : > { %v6688_v20 = vpop.f32.mrb[108].mxu0 }
 0x87c   : > { %v6689_v0 = vadd.f32 %v6688_v20, %v10535_v30  ;;  %v6690_v16 = vpop.f32.mrb[109].mxu0 }
 0x87d   : > { %v6691_v14 = vadd.f32 %v6690_v16, %v10535_v30  ;;  %v6692_v60 = vpop.f32.mrb[110].mxu0 }
 0x87e   : > { %v6693_v35 = vadd.f32 %v6692_v60, %v10537_v43  ;;  %v6694_v62 = vpop.f32.mrb[111].mxu0  ;;  %v6780_v27 = vmax.f32 %v6689_v0, 0.0 }
 0x87f   : > { %v6695_v29 = vadd.f32 %v6694_v62, %v10537_v43  ;;  %v6781_v32 = vmax.f32 %v6691_v14, 0.0 }
 0x880   : > { %v6788_v55 = vmax.f32 %v6693_v35, 0.0 }
 0x881   : > { %v6789_v24 = vmax.f32 %v6695_v29, 0.0 }
 0x882   : > { %v6820_v31 = vpack.c.bf16 %v6788_v55, %v6780_v27 }
 0x883   : > { %v6821_v56 = vpack.c.bf16 %v6789_v24, %v6781_v32  ;;  %v6698_v44 = vpop.f32.mrb[112].mxu0 }
 0x884   : > { %v6699_v58 = vadd.f32 %v6698_v44, %v10547_v42  ;;  %v6700_v46 = vpop.f32.mrb[113].mxu0 }
 0x885   : > { %v6701_v63 = vadd.f32 %v6700_v46, %v10547_v42  ;;  %v6702_v38 = vpop.f32.mrb[114].mxu0  ;;  %6959 = vmatprep.subr.bf16.mxu0 %v6821_v56 }
 0x886   : > { %v6703_v17 = vadd.f32 %v6702_v38, %v10549_v36  ;;  %v6704_v7 = vpop.f32.mrb[115].mxu0  ;;  %6960 = vmatpush1.bf16.msra.mxu0 %v6820_v31  ;;  %v6796_v40 = vmax.f32 %v6699_v58, 0.0 }
 0x887   : > { %v6705_v21 = vadd.f32 %v6704_v7, %v10549_v36  ;;  %v6797_v13 = vmax.f32 %v6701_v63, 0.0 }
 0x888   : > { %v6804_v12 = vmax.f32 %v6703_v17, 0.0  ;;  %v10612_v17 = vpop.permute.xlu1 %6844 }
 0x889   : > { %v6805_v50 = vmax.f32 %v6705_v21, 0.0 }
 0x88a   : > { %v6828_v4 = vpack.c.bf16 %v6804_v12, %v6796_v40 }
 0x88b   : > { %v6829_v61 = vpack.c.bf16 %v6805_v50, %v6797_v13  ;;  %v6708_v33 = vpop.f32.mrb[116].mxu0 }
 0x88c   : > { %v6709_v18 = vadd.f32 %v6708_v33, %v10559_v45  ;;  %v6710_v49 = vpop.f32.mrb[117].mxu0 }
 0x88d   : > { %v6711_v3 = vadd.f32 %v6710_v49, %v10559_v45  ;;  %6961 = vmatprep.subr.bf16.mxu0 %v6829_v61  ;;  %v6712_v39 = vpop.f32.mrb[118].mxu0 }
 0x88e   : > { %v6812_v15 = vmax.f32 %v6709_v18, 0.0  ;;  %6962 = vmatpush1.bf16.msra.mxu0 %v6828_v4  ;;  %v6713_v57 = vpop.f32.mrb[119].mxu0 }
 0x88f   : > { %v6813_v22 = vmax.f32 %v6711_v3, 0.0 }
 0x890   : > { %v6836_v25 = vpack.c.bf16 %v6812_v15, %v6812_v15 }
 0x891   : > { %v6837_v47 = vpack.c.bf16 %v6813_v22, %v6813_v22 }
 0x892   : > { %v6866_v5 = vand.u32 %v10567_v23, %v6836_v25 }
 0x893   : > { %v6869_v37 = vand.u32 %v10567_v23, %v6837_v47 }
 0x895   : > { %6963 = vmatprep.subr.bf16.mxu0 %v6869_v37 }
 0x896   : > { %6964 = vmatpush1.bf16.msra.mxu0 %v6866_v5  ;;  %v7041_v5 = vlaneseq }
 0x899   : > { %7423 = vmatmul.mubr.msk.bf16.vlgmr.msra.gmra.mrb[124].mxu0 %vm6847_vm1, %v10576_v52 }
 0x89c   : > { %v6749_v59 = vpop.f32.mrb[108].mxu1 }
 0x89d   : > { %v6750_v51 = vadd.f32 %v6749_v59, %v10535_v30  ;;  %v6751_v34 = vpop.f32.mrb[109].mxu1 }
 0x89e   : > { %v6752_v9 = vadd.f32 %v6751_v34, %v10535_v30  ;;  %v6753_v6 = vpop.f32.mrb[110].mxu1  ;;  %v10619_v34 = vshrl.u32 %v7041_v5, 7 }
 0x89f   : > { %v6754_v41 = vadd.f32 %v6753_v6, %v10537_v43  ;;  %v6755_v8 = vpop.f32.mrb[111].mxu1  ;;  %v6782_v19 = vmax.f32 %v6750_v51, 0.0 }
 0x8a0   : > { %v6756_v11 = vadd.f32 %v6755_v8, %v10537_v43  ;;  %v6783_v48 = vmax.f32 %v6752_v9, 0.0  ;;  %vm7043_vm13 = vcmp.eq.s32.totalorder %v10619_v34, 0 }
 0x8a1   : > { %v6790_v54 = vmax.f32 %v6754_v41, 0.0 }
 0x8a2   : > { %v6791_v26 = vmax.f32 %v6756_v11, 0.0 }
 0x8a3   : > { %v6822_v53 = vpack.c.bf16 %v6790_v54, %v6782_v19 }
 0x8a4   : > { %v6823_v2 = vpack.c.bf16 %v6791_v26, %v6783_v48  ;;  %v6759_v10 = vpop.f32.mrb[112].mxu1 }
 0x8a5   : > { %v6760_v28 = vadd.f32 %v6759_v10, %v10547_v42  ;;  %v6761_v1 = vpop.f32.mrb[113].mxu1 }
 0x8a6   : > { %v6762_v20 = vadd.f32 %v6761_v1, %v10547_v42  ;;  %v6763_v0 = vpop.f32.mrb[114].mxu1  ;;  %7000 = vmatprep.subr.bf16.mxu1 %v6823_v2 }
 0x8a7   : > { %v6764_v30 = vadd.f32 %v6763_v0, %v10549_v36  ;;  %v6765_v16 = vpop.f32.mrb[115].mxu1  ;;  %7001 = vmatpush1.bf16.msra.mxu1 %v6822_v53  ;;  %v6798_v14 = vmax.f32 %v6760_v28, 0.0 }
 0x8a8   : > { %v6766_v43 = vadd.f32 %v6765_v16, %v10549_v36  ;;  %v6799_v35 = vmax.f32 %v6762_v20, 0.0 }
 0x8a9   : > { %v6806_v60 = vmax.f32 %v6764_v30, 0.0 }
 0x8aa   : > { %v6807_v62 = vmax.f32 %v6766_v43, 0.0 }
 0x8ab   : > { %v6830_v29 = vpack.c.bf16 %v6806_v60, %v6798_v14 }
 0x8ac   : > { %v6831_v27 = vpack.c.bf16 %v6807_v62, %v6799_v35  ;;  %v6769_v55 = vpop.f32.mrb[116].mxu1 }
 0x8ad   : > { %v6770_v32 = vadd.f32 %v6769_v55, %v10559_v45  ;;  %v6771_v24 = vpop.f32.mrb[117].mxu1 }
 0x8ae   : > { %v6772_v42 = vadd.f32 %v6771_v24, %v10559_v45  ;;  %7002 = vmatprep.subr.bf16.mxu1 %v6831_v27  ;;  %v6773_v31 = vpop.f32.mrb[118].mxu1 }
 0x8af   : > { %v6814_v56 = vmax.f32 %v6770_v32, 0.0  ;;  %7003 = vmatpush1.bf16.msra.mxu1 %v6830_v29  ;;  %v6774_v44 = vpop.f32.mrb[119].mxu1 }
 0x8b0   : > { %v6815_v58 = vmax.f32 %v6772_v42, 0.0 }
 0x8b1   : > { %v6838_v46 = vpack.c.bf16 %v6814_v56, %v6814_v56 }
 0x8b2   : > { %v6839_v36 = vpack.c.bf16 %v6815_v58, %v6815_v58 }
 0x8b3   : > { %v6872_v38 = vand.u32 %v10567_v23, %v6838_v46 }
 0x8b4   : > { %v6875_v63 = vand.u32 %v10567_v23, %v6839_v36 }
 0x8b6   : > { %7004 = vmatprep.subr.bf16.mxu1 %v6875_v63 }
 0x8b7   : > { %7005 = vmatpush1.bf16.msra.mxu1 %v6872_v38 }
 0x8ba   : > { %7424 = vmatmul.mubr.msk.bf16.vlgmr.msra.gmra.mrb[124].mxu1 %vm6847_vm1, %v10576_v52 }
 0x8d5   : > { %v6911_v45 = vpop.f32.mrb[120].mxu0 }
 0x8d6   : > { %v6952_v7 = vpop.f32.mrb[120].mxu1  ;;  %v6912_v21 = vadd.f32 %v6911_v45, %v10612_v17  ;;  %v6913_v12 = vpop.f32.mrb[121].mxu0 }
 0x8d7   : > { %v6953_v40 = vadd.f32 %v6952_v7, %v10612_v17  ;;  %v6954_v13 = vpop.f32.mrb[121].mxu1  ;;  %v6914_v50 = vadd.f32 %v6913_v12, %v10612_v17  ;;  %v6915_v23 = vpop.f32.mrb[122].mxu0 }
 0x8d8   : > { %v6955_v4 = vadd.f32 %v6954_v13, %v10612_v17  ;;  %v6956_v61 = vpop.f32.mrb[122].mxu1  ;;  %v7425_v33 = vmul.f32 -1.442695, %v6912_v21  ;;  %v6916_v49 = vpop.f32.mrb[123].mxu0 }
 0x8d9   : > { %v7427_v18 = vmul.f32 -1.442695, %v6953_v40  ;;  %v6957_v52 = vpop.f32.mrb[123].mxu1  ;;  %v7426_v3 = vmul.f32 -1.442695, %v6914_v50 }
 0x8da   : > { %v7428_v39 = vmul.f32 -1.442695, %v6955_v4  ;;  %7651 = vpow2.f32 %v7425_v33 }
 0x8db   : > { %7653 = vpow2.f32 %v7427_v18 }
 0x8dc   : > { %7655 = vpow2.f32 %v7426_v3 }
 0x8dd   : > { %7657 = vpow2.f32 %v7428_v39 }
 0x8e4   : > { %v7652_v15 = vpop.eup %7651 }
 0x8e5   : > { %v7654_v57 = vpop.eup %7653  ;;  %v7068_v22 = vadd.f32 1.0, %v7652_v15 }
 0x8e6   : > { %v7656_v25 = vpop.eup %7655  ;;  %v7070_v47 = vadd.f32 1.0, %v7654_v57 }
 0x8e7   : > { %v7658_v37 = vpop.eup %7657  ;;  %7659 = vrcp.f32 %v7068_v22  ;;  %v7069_v59 = vadd.f32 1.0, %v7656_v25 }
 0x8e8   : > { %7661 = vrcp.f32 %v7070_v47  ;;  %v7071_v51 = vadd.f32 1.0, %v7658_v37 }
 0x8e9   : > { %7663 = vrcp.f32 %v7069_v59 }
 0x8ea   : > { %7665 = vrcp.f32 %v7071_v51 }
 0x8f1   : > { %v7660_v9 = vpop.eup %7659 }
 0x8f2   : > { %v7662_v6 = vpop.eup %7661  ;;  %v7092_v41 = vsel %vm7043_vm13, %v6912_v21, %v7660_v9 }
 0x8f3   : > { %v7664_v8 = vpop.eup %7663  ;;  %7100 = vst [vmem:[%s10626_s5] sm:$0xff] %v7092_v41  ;;  %v7094_v11 = vsel %vm7043_vm13, %v6953_v40, %v7662_v6 }
 0x8f4   : > { %v7666_v19 = vpop.eup %7665  ;;  %7102 = vst [vmem:[%s10626_s5 + $0x10] sm:$0xff] %v7094_v11  ;;  %v7093_v54 = vsel %vm7043_vm13, %v6914_v50, %v7664_v8 }
 0x8f5   : > { %7101 = vst [vmem:[%s10626_s5 + $0x8] sm:$0xff] %v7093_v54  ;;  %v7095_v48 = vsel %vm7043_vm13, %v6955_v4, %v7666_v19 }
 0x8f6   : > { %7103 = vst [vmem:[%s10626_s5 + $0x18] sm:$0xff] %v7095_v48 }
 0x96c   : > { %v6993_v26 = vpop.f32.mrb[124].mxu0 }
 0x96d   : > { %v6994_v53 = vadd.f32 %v6993_v26, %v10612_v17  ;;  %v6995_v2 = vpop.f32.mrb[125].mxu0 }
 0x96e   : > { %v6996_v10 = vadd.f32 %v6995_v2, %v10612_v17  ;;  %v6997_v28 = vpop.f32.mrb[126].mxu0 }
 0x96f   : > { %v7429_v1 = vmul.f32 -1.442695, %v6994_v53  ;;  %v6998_v20 = vpop.f32.mrb[127].mxu0 }
 0x970   : > { %v7430_v0 = vmul.f32 -1.442695, %v6996_v10 }
 0x971   : > { %7667 = vpow2.f32 %v7429_v1 }
 0x972   : > { %7669 = vpow2.f32 %v7430_v0 }
 0x97b   : > { %v7668_v30 = vpop.eup %7667 }
 0x97c   : > { %v7670_v16 = vpop.eup %7669  ;;  %v7072_v43 = vadd.f32 1.0, %v7668_v30 }
 0x97d   : > { %v7073_v14 = vadd.f32 1.0, %v7670_v16 }
 0x97e   : > { %7671 = vrcp.f32 %v7072_v43 }
 0x97f   : > { %7673 = vrcp.f32 %v7073_v14 }
 0x988   : > { %v7672_v60 = vpop.eup %7671 }
 0x989   : > { %v7674_v35 = vpop.eup %7673  ;;  %v7096_v62 = vsel %vm7043_vm13, %v6994_v53, %v7672_v60 }
 0x98a   : > { %7104 = vst [vmem:[%s10626_s5 + $0x20] sm:$0xff] %v7096_v62  ;;  %v7097_v29 = vsel %vm7043_vm13, %v6996_v10, %v7674_v35 }
 0x98b   : > { %7105 = vst [vmem:[%s10626_s5 + $0x28] sm:$0xff] %v7097_v29 }
 0x98d   : > { %v7034_v27 = vpop.f32.mrb[124].mxu1 }
 0x98e   : > { %v7035_v55 = vadd.f32 %v7034_v27, %v10612_v17  ;;  %v7036_v32 = vpop.f32.mrb[125].mxu1 }
 0x98f   : > { %v7037_v24 = vadd.f32 %v7036_v32, %v10612_v17  ;;  %v7038_v42 = vpop.f32.mrb[126].mxu1 }
 0x990   : > { %v7431_v31 = vmul.f32 -1.442695, %v7035_v55  ;;  %v7039_v56 = vpop.f32.mrb[127].mxu1 }
 0x991   : > { %v7432_v44 = vmul.f32 -1.442695, %v7037_v24 }
 0x992   : > { %7675 = vpow2.f32 %v7431_v31 }
 0x993   : > { %7677 = vpow2.f32 %v7432_v44 }
 0x99c   : > { %v7676_v58 = vpop.eup %7675 }
 0x99d   : > { %v7678_v46 = vpop.eup %7677  ;;  %v7074_v36 = vadd.f32 1.0, %v7676_v58 }
 0x99e   : > { %v7075_v63 = vadd.f32 1.0, %v7678_v46 }
 0x99f   : > { %7679 = vrcp.f32 %v7074_v36 }
 0x9a0   : > { %7681 = vrcp.f32 %v7075_v63 }
 0x9a9   : > { %v7680_v38 = vpop.eup %7679 }
 0x9aa   : > { %v7682_v17 = vpop.eup %7681  ;;  %v7098_v45 = vsel %vm7043_vm13, %v7035_v55, %v7680_v38 }
 0x9ab   : > { %7106 = vst [vmem:[%s10626_s5 + $0x30] sm:$0xff] %v7098_v45  ;;  %v7099_v7 = vsel %vm7043_vm13, %v7037_v24, %v7682_v17 }
 0x9ac   : > { %7107 = vst [vmem:[%s10626_s5 + $0x38] sm:$0xff] %v7099_v7 }
 0x9ad   : > { %7702 = shalt.err (!%p7699_p4)
}
 0x9ae   : > { %s7703_s3 = scalar_lea.hbm %s10655_s21, 1024  ;;  %s7707_s19 = scalar_lea.hbm %s10721_s18, 4096 }
 0x9af   : > { %p7704_p7 = scmp.ne.s32.totalorder %s10655_s21, %s7703_s3  ;;  %p7708_p10 = scmp.lt.u32.totalorder %s10655_s21, %s10721_s18 }
 0x9b0   : > { %p7709_p11 = scmp.lt.u32.totalorder %s7707_s19, %s7703_s3  ;;  %p7711_p13 = scmp.lt.u32.totalorder %s7703_s3, %s10655_s21 }
 0x9b1   : > { %p7705_p8 = pnand %p7704_p7, %p7895_p5 }
 0x9b2   : > { %p7710_p12 = por %p7709_p11, %p7708_p10 }
 0x9b3   : > { %p7706_p9 = pneg %p7705_p8 }
 0x9b4   : > { %p7712_p0 = por %p7711_p13, %p7710_p12 }
 0x9b6   : > { %p7713_p1 = pnand %p7712_p0, %p7706_p9 }
 0x9b8   : > { %7716 = shalt.err (!%p7713_p1)
}
 0x9b9   : > { %7511 = dma.vmem_to_hbm [thread:$0]  (%p7895_p5), %s10657_s25, 1024, %s10655_s21, %s7109_s0  }
 0x9ba PF: > { %p7517_p2 = scmp.ge.s32.totalorder %s7751_s30, 2  ;;  %s7135_s6 = sand.u32 1, %s7739_s27  }
 0x9bb   : > { %s7136_s7 = scalar_lea.sflag [#allocation3], %s7135_s6 }
 0x9bc   : > { %p7514_p3 = pnand %p7517_p2, %p7899_p6 }
 0x9be   : > { %7734 = dma.done.wait (!%p7514_p3), %s7136_s7, 1024  }
 0x9bf   : > { %7736 = vsyncadd (!%p7514_p3), %s7136_s7, 4294966272  ;;  %p28_p4 = scmp.ge.s32.totalorder %s7882_s1, 6   ;;  %s10803_s27 = smov %s7743_s28 }
 0x9c0   : > { %s10804_s28 = smov %s7747_s29  ;;  %s10805_s29 = smov %s7893_s22 }
 0x9c1   : > { %s10806_s30 = smov %s7882_s1  ;;  %30 = sbr.rel (!%p28_p4) target bundleno = 12 (0xc), region = 130 }
 0x9c8   :  { %7141 = vsyncpa [#allocation3], 1 }
 0x9c9   :  { %7143 = vsyncpa [#allocation3 + $0x1], 1 }

</bundles_post_ra>
